<compile_context>
chip_gen: v7x
topology: tpu7x:2x2x1
jax: 0.10.0
libtpu: 0.0.40
codegen_flags: <defaults>
</compile_context>

<pallas_src>
import functools

import jax
import jax.numpy as jnp
from jax.experimental import pallas as pl
from jax.experimental.pallas import tpu as pltpu

HIDDEN = (128, 256, 512, 256, 128)
NEG_SLOPE = 0.01  # F.leaky_relu default negative_slope


def _leaky_relu(v):
    return jnp.where(v >= 0, v, NEG_SLOPE * v)


def _pointwisenet_kernel(x_ref, *refs, res, offs, douts, in_ch, out_ch):
    """One grid step = one (batch, point-tile) pair, channels-first (C, TN).

    x_ref:   (1, in_ch, TN) f32
    refs:    [W0   (1, dout0, in_ch)  f32   gate-folded layer-0 weight (VPU),
              W1..Wn-2 (1, dout, din) bf16  gate-folded hidden weights (MXU),
              Wlast (1, din, out_ch)  f32   gate-folded last-layer weight (VPU),
              shift (1, total_pad, 1) f32   all hyper-bias columns, packed,
              out   (1, out_ch, TN)   f32]
    """
    out_ref = refs[-1]
    shift_ref = refs[-2]
    w_refs = refs[:-2]
    n_layers = len(w_refs)

    x = x_ref[0]                                              # (in_ch, TN) f32

    # ---- layer 0: K = in_ch (3) is far too small for the MXU ----------------
    # -> in_ch broadcast-FMA passes on the VPU instead of a padded K=8 matmul.
    w0 = w_refs[0][0]                                         # (dout0, in_ch) f32
    h = w0[:, 0:1] * x[0:1, :]
    for k in range(1, in_ch):
        h = h + w0[:, k:k + 1] * x[k:k + 1, :]
    h = h + shift_ref[0, offs[0]:offs[0] + douts[0], :]
    h = _leaky_relu(h).astype(jnp.bfloat16)                   # quantize once, feed MXU

    # ---- hidden layers: bf16 MXU matmuls with gate-folded weights, f32 acc --
    for i in range(1, n_layers - 1):
        lin = jnp.dot(w_refs[i][0], h,
                      preferred_element_type=jnp.float32)      # (dout, TN) f32
        hf = lin + shift_ref[0, offs[i]:offs[i] + douts[i], :]
        hf = _leaky_relu(hf)
        # last hidden layer output stays f32: it feeds the VPU tail, not the MXU
        h = hf.astype(jnp.bfloat16) if i < n_layers - 2 else hf

    # ---- last layer: M = out_ch (3) -> sublane reductions, fused epilogue ---
    w_last = w_refs[n_layers - 1][0]                           # (din, out_ch) f32
    off_l = offs[n_layers - 1]
    rows = [jnp.sum(h * w_last[:, j:j + 1], axis=0, keepdims=True)
            for j in range(out_ch)]                            # out_ch x (1, TN)
    y = jnp.concatenate(rows, axis=0)                          # (out_ch, TN)
    y = y + shift_ref[0, off_l:off_l + out_ch, :]
    if res:
        y = y + x[:out_ch, :]                                  # residual (out_ch == in_ch)
    out_ref[0] = y.astype(out_ref.dtype)


def make_params(key, in_channels, out_channels, context_dim):
    """Deterministic synthetic parameters (same shapes as the torch module, transposed)."""
    dims = (in_channels,) + HIDDEN + (out_channels,)
    dctx = context_dim + 3  # context_dim + 3 time features
    params = []
    for i in range(len(dims) - 1):
        din, dout = dims[i], dims[i + 1]
        key, k0, k1, k2, k3, k4 = jax.random.split(key, 6)
        s = 1.0 / jnp.sqrt(jnp.float32(din))
        cs = 1.0 / jnp.sqrt(jnp.float32(dctx))
        params += [
            jax.random.normal(k0, (din, dout), jnp.float32) * s,    # _layer.weight^T
            jax.random.normal(k1, (1, dout), jnp.float32) * s,      # _layer.bias
            jax.random.normal(k2, (dctx, dout), jnp.float32) * cs,  # _hyper_gate.weight^T
            jax.random.normal(k3, (1, dout), jnp.float32) * cs,     # _hyper_gate.bias
            jax.random.normal(k4, (dctx, dout), jnp.float32) * cs,  # _hyper_bias.weight^T
        ]
    return params


def pointwise_net(x, beta, context, params, res=True):
    """x: (B, d, N) f32, beta: (B,), context: (B, F). Returns (B, out_ch, N) f32."""
    B, d, N = x.shape
    n_layers = len(params) // 5
    out_ch = params[5 * (n_layers - 1)].shape[1]
    if res and out_ch != d:
        raise ValueError("residual requires out_channels == in_channels")

    candidates = [c for c in (512, 256, 128) if N % c == 0]
    if not candidates:
        # TODO(synk): pad N up to a multiple of 128 for ragged point counts.
        raise NotImplementedError("N must be a multiple of 128")
    # Largest tile that still yields >= ~16 grid steps (>= ~8 per TensorCore on
    # v7x's 2-TC megacore) so the software pipeline has work to overlap; else the
    # smallest dividing tile.
    tn = candidates[-1]
    for c in candidates:
        if B * (N // c) >= 16:
            tn = c
            break

    # ---- context embedding (tiny, per batch element) ------------------------
    beta = beta.reshape(B, 1, 1).astype(jnp.float32)
    time_emb = jnp.concatenate([beta, jnp.sin(beta), jnp.cos(beta)], axis=-1)   # (B,1,3)
    # TODO(synk): per-point context branch (context of shape (B, N, F)) not implemented.
    ctx = jnp.concatenate(
        [time_emb, context.reshape(B, 1, -1).astype(jnp.float32)], axis=-1)     # (B,1,3+F)

    # ---- hoist ConcatSquash ctx math; fold the gate into the weights --------
    w_args = []
    shifts = []
    douts = []
    for i in range(n_layers):
        W, b, gW, gb, bW = params[5 * i:5 * i + 5]
        dout = W.shape[1]
        douts.append(dout)
        gate = jax.nn.sigmoid(ctx @ gW + gb)[:, 0, :]             # (B, dout)
        hbias = (ctx @ bW)[:, 0, :]                               # (B, dout)
        shifts.append(gate * b + hbias)                           # (B, dout)
        # gate folded into the weight rows: Wf[b, o, i] = gate[b, o] * W[i, o]
        Wf = jnp.transpose(W)[None, :, :] * gate[:, :, None]      # (B, dout, din) f32
        if i == 0:
            w_args.append(Wf)                                     # f32 (VPU layer)
        elif i == n_layers - 1:
            w_args.append(jnp.transpose(Wf, (0, 2, 1)))           # (B, din, out_ch) f32 (VPU)
        else:
            w_args.append(Wf.astype(jnp.bfloat16))                # bf16 (MXU layer)

    offs = []
    acc = 0
    for dout in douts:
        offs.append(acc)
        acc += dout
    total = acc
    total_pad = ((total + 7) // 8) * 8
    shift_packed = jnp.concatenate(shifts, axis=1)                # (B, total)
    if total_pad != total:
        shift_packed = jnp.pad(shift_packed, ((0, 0), (0, total_pad - total)))
    shift_packed = shift_packed.reshape(B, total_pad, 1)

    in_specs = [pl.BlockSpec((1, d, tn), lambda b, n: (b, 0, n))]
    for w in w_args:
        in_specs.append(pl.BlockSpec((1,) + tuple(w.shape[1:]), lambda b, n: (b, 0, 0)))
    in_specs.append(pl.BlockSpec((1, total_pad, 1), lambda b, n: (b, 0, 0)))

    out = pl.pallas_call(
        functools.partial(_pointwisenet_kernel, res=res, offs=tuple(offs),
                          douts=tuple(douts), in_ch=d, out_ch=out_ch),
        out_shape=jax.ShapeDtypeStruct((B, out_ch, N), jnp.float32),
        grid=(B, N // tn),
        in_specs=in_specs,
        out_specs=pl.BlockSpec((1, out_ch, tn), lambda b, n: (b, 0, n)),
        compiler_params=pltpu.CompilerParams(
            dimension_semantics=("parallel", "parallel"),
            vmem_limit_bytes=32 * 1024 * 1024),
    )(x.astype(jnp.float32), *w_args, shift_packed)
    return out                                                     # (B, out_ch, N)


def _reference(x, beta, context, params, res=True):
    """Pure-JAX reference mirroring the kernel's numerics (bf16 hidden matmuls,
    f32 first/last layer, gate folded into the weights)."""
    B, d, N = x.shape
    beta = beta.reshape(B, 1, 1).astype(jnp.float32)
    time_emb = jnp.concatenate([beta, jnp.sin(beta), jnp.cos(beta)], axis=-1)
    ctx = jnp.concatenate([time_emb, context.reshape(B, 1, -1)], axis=-1)
    out = jnp.transpose(x, (0, 2, 1)).astype(jnp.float32)          # (B, N, d)
    n_layers = len(params) // 5
    for i in range(n_layers):
        W, b, gW, gb, bW = params[5 * i:5 * i + 5]
        gate = jax.nn.sigmoid(ctx @ gW + gb)                       # (B, 1, dout)
        hbias = ctx @ bW
        Wf = W[None, :, :] * gate                                  # (B, din, dout), gate-folded
        if 0 < i < n_layers - 1:
            lin = jnp.einsum('bnd,bdo->bno', out.astype(jnp.bfloat16),
                             Wf.astype(jnp.bfloat16),
                             preferred_element_type=jnp.float32)
        else:
            lin = jnp.einsum('bnd,bdo->bno', out, Wf,
                             preferred_element_type=jnp.float32)
        out = lin + (gate * b + hbias)
        if i < n_layers - 1:
            out = jnp.where(out >= 0, out, NEG_SLOPE * out)
    out = jnp.transpose(out, (0, 2, 1))
    return out + x if res else out


if __name__ == "__main__":
    B, in_channels, out_channels, context_dim, N = 2, 3, 3, 16, 1024

    key = jax.random.PRNGKey(0)
    kx, kb, kc, kp = jax.random.split(key, 4)
    x = jax.random.normal(kx, (B, in_channels, N), jnp.float32)
    beta = jax.random.uniform(kb, (B,), jnp.float32)
    context = jax.random.normal(kc, (B, context_dim), jnp.float32)
    params = make_params(kp, in_channels, out_channels, context_dim)

    y = pointwise_net(x, beta, context, params, res=True)
    y = jax.block_until_ready(y)

    y_ref = _reference(x, beta, context, params, res=True)
    assert y.shape == (B, out_channels, N)
    max_err = float(jnp.max(jnp.abs(y - y_ref)))
    assert jnp.allclose(y, y_ref, atol=3e-3, rtol=3e-3), f"mismatch vs reference (max abs err {max_err})"
    print("KERNEL_OK")
</pallas_src>

<mosaic_0001>
module attributes {stable_mosaic.version = 11 : i64} {
  func.func @_pointwisenet_kernel(%arg0: i32, %arg1: i32, %arg2: memref<1x3x128xf32, #tpu.memory_space<vmem>>, %arg3: memref<1x128x3xf32, #tpu.memory_space<vmem>>, %arg4: memref<1x256x128xbf16, #tpu.memory_space<vmem>>, %arg5: memref<1x512x256xbf16, #tpu.memory_space<vmem>>, %arg6: memref<1x256x512xbf16, #tpu.memory_space<vmem>>, %arg7: memref<1x128x256xbf16, #tpu.memory_space<vmem>>, %arg8: memref<1x128x3xf32, #tpu.memory_space<vmem>>, %arg9: memref<1x1288x1xf32, #tpu.memory_space<vmem>>, %arg10: memref<1x3x128xf32, #tpu.memory_space<vmem>>) attributes {dimension_semantics = [#tpu.dimension_semantics<parallel>, #tpu.dimension_semantics<parallel>], iteration_bounds = array<i64: 2, 8>, scalar_prefetch = 0 : i64, scratch_operands = 0 : i64, tpu.core_type = #tpu.core_type<tc>, window_params = [{transform_indices = @transform_0, window_bounds = array<i64: 1, 3, 128>}, {transform_indices = @transform_1, window_bounds = array<i64: 1, 128, 3>}, {transform_indices = @transform_2, window_bounds = array<i64: 1, 256, 128>}, {transform_indices = @transform_3, window_bounds = array<i64: 1, 512, 256>}, {transform_indices = @transform_4, window_bounds = array<i64: 1, 256, 512>}, {transform_indices = @transform_5, window_bounds = array<i64: 1, 128, 256>}, {transform_indices = @transform_6, window_bounds = array<i64: 1, 128, 3>}, {transform_indices = @transform_7, window_bounds = array<i64: 1, 1288, 1>}, {transform_indices = @transform_8, window_bounds = array<i64: 1, 3, 128>}]} {
    %c0 = arith.constant 0 : index
    %c0_0 = arith.constant 0 : index
    %c0_1 = arith.constant 0 : index
    %0 = vector.load %arg2[%c0, %c0_0, %c0_1] : memref<1x3x128xf32, #tpu.memory_space<vmem>>, vector<1x3x128xf32>
    %1 = vector.shape_cast %0 : vector<1x3x128xf32> to vector<3x128xf32>
    %c0_2 = arith.constant 0 : index
    %c0_3 = arith.constant 0 : index
    %c0_4 = arith.constant 0 : index
    %2 = vector.load %arg3[%c0_2, %c0_3, %c0_4] : memref<1x128x3xf32, #tpu.memory_space<vmem>>, vector<1x128x3xf32>
    %3 = vector.shape_cast %2 : vector<1x128x3xf32> to vector<128x3xf32>
    %4 = vector.extract_strided_slice %3 {offsets = [0, 0], sizes = [128, 1], strides = [1, 1]} : vector<128x3xf32> to vector<128x1xf32>
    %5 = vector.extract_strided_slice %1 {offsets = [0, 0], sizes = [1, 128], strides = [1, 1]} : vector<3x128xf32> to vector<1x128xf32>
    %6 = vector.broadcast %4 : vector<128x1xf32> to vector<128x128xf32>
    %7 = vector.broadcast %5 : vector<1x128xf32> to vector<128x128xf32>
    %8 = arith.mulf %6, %7 : vector<128x128xf32>
    %9 = vector.extract_strided_slice %3 {offsets = [0, 1], sizes = [128, 1], strides = [1, 1]} : vector<128x3xf32> to vector<128x1xf32>
    %10 = vector.extract_strided_slice %1 {offsets = [1, 0], sizes = [1, 128], strides = [1, 1]} : vector<3x128xf32> to vector<1x128xf32>
    %11 = vector.broadcast %9 : vector<128x1xf32> to vector<128x128xf32>
    %12 = vector.broadcast %10 : vector<1x128xf32> to vector<128x128xf32>
    %13 = arith.mulf %11, %12 : vector<128x128xf32>
    %14 = arith.addf %8, %13 : vector<128x128xf32>
    %15 = vector.extract_strided_slice %3 {offsets = [0, 2], sizes = [128, 1], strides = [1, 1]} : vector<128x3xf32> to vector<128x1xf32>
    %16 = vector.extract_strided_slice %1 {offsets = [2, 0], sizes = [1, 128], strides = [1, 1]} : vector<3x128xf32> to vector<1x128xf32>
    %17 = vector.broadcast %15 : vector<128x1xf32> to vector<128x128xf32>
    %18 = vector.broadcast %16 : vector<1x128xf32> to vector<128x128xf32>
    %19 = arith.mulf %17, %18 : vector<128x128xf32>
    %20 = arith.addf %14, %19 : vector<128x128xf32>
    %c0_5 = arith.constant 0 : index
    %c0_6 = arith.constant 0 : index
    %c0_7 = arith.constant 0 : index
    %21 = vector.load %arg9[%c0_5, %c0_6, %c0_7] : memref<1x1288x1xf32, #tpu.memory_space<vmem>>, vector<1x128x1xf32>
    %22 = vector.shape_cast %21 : vector<1x128x1xf32> to vector<128x1xf32>
    %23 = vector.broadcast %22 : vector<128x1xf32> to vector<128x128xf32>
    %24 = arith.addf %20, %23 : vector<128x128xf32>
    %cst = arith.constant 0.000000e+00 : f32
    %25 = vector.broadcast %cst : f32 to vector<128x128xf32>
    %26 = arith.cmpf oge, %24, %25 : vector<128x128xf32>
    %cst_8 = arith.constant 0.00999999977 : f32
    %27 = vector.broadcast %cst_8 : f32 to vector<128x128xf32>
    %28 = arith.mulf %27, %24 : vector<128x128xf32>
    %29 = arith.select %26, %24, %28 : vector<128x128xi1>, vector<128x128xf32>
    %30 = arith.truncf %29 : vector<128x128xf32> to vector<128x128xbf16>
    %c0_9 = arith.constant 0 : index
    %c0_10 = arith.constant 0 : index
    %c0_11 = arith.constant 0 : index
    %31 = vector.load %arg4[%c0_9, %c0_10, %c0_11] : memref<1x256x128xbf16, #tpu.memory_space<vmem>>, vector<1x256x128xbf16>
    %32 = vector.shape_cast %31 : vector<1x256x128xbf16> to vector<256x128xbf16>
    %cst_12 = arith.constant dense<0.000000e+00> : vector<256x128xf32>
    %33 = tpu.matmul %32, %30, %cst_12 {dimension_numbers = #tpu.dot_dimension_numbers<[1], [0], [0], [1], [0, 0, 1, 1], [], []>} : vector<256x128xbf16>, vector<128x128xbf16>, vector<256x128xf32> -> vector<256x128xf32>
    %c0_13 = arith.constant 0 : index
    %c128 = arith.constant 128 : index
    %c0_14 = arith.constant 0 : index
    %34 = vector.load %arg9[%c0_13, %c128, %c0_14] : memref<1x1288x1xf32, #tpu.memory_space<vmem>>, vector<1x256x1xf32>
    %35 = vector.shape_cast %34 : vector<1x256x1xf32> to vector<256x1xf32>
    %36 = vector.broadcast %35 : vector<256x1xf32> to vector<256x128xf32>
    %37 = arith.addf %33, %36 : vector<256x128xf32>
    %cst_15 = arith.constant 0.000000e+00 : f32
    %38 = vector.broadcast %cst_15 : f32 to vector<256x128xf32>
    %39 = arith.cmpf oge, %37, %38 : vector<256x128xf32>
    %cst_16 = arith.constant 0.00999999977 : f32
    %40 = vector.broadcast %cst_16 : f32 to vector<256x128xf32>
    %41 = arith.mulf %40, %37 : vector<256x128xf32>
    %42 = arith.select %39, %37, %41 : vector<256x128xi1>, vector<256x128xf32>
    %43 = arith.truncf %42 : vector<256x128xf32> to vector<256x128xbf16>
    %c0_17 = arith.constant 0 : index
    %c0_18 = arith.constant 0 : index
    %c0_19 = arith.constant 0 : index
    %44 = vector.load %arg5[%c0_17, %c0_18, %c0_19] : memref<1x512x256xbf16, #tpu.memory_space<vmem>>, vector<1x512x256xbf16>
    %45 = vector.shape_cast %44 : vector<1x512x256xbf16> to vector<512x256xbf16>
    %cst_20 = arith.constant dense<0.000000e+00> : vector<512x128xf32>
    %46 = tpu.matmul %45, %43, %cst_20 {dimension_numbers = #tpu.dot_dimension_numbers<[1], [0], [0], [1], [0, 0, 1, 1], [], []>} : vector<512x256xbf16>, vector<256x128xbf16>, vector<512x128xf32> -> vector<512x128xf32>
    %c0_21 = arith.constant 0 : index
    %c384 = arith.constant 384 : index
    %c0_22 = arith.constant 0 : index
    %47 = vector.load %arg9[%c0_21, %c384, %c0_22] : memref<1x1288x1xf32, #tpu.memory_space<vmem>>, vector<1x512x1xf32>
    %48 = vector.shape_cast %47 : vector<1x512x1xf32> to vector<512x1xf32>
    %49 = vector.broadcast %48 : vector<512x1xf32> to vector<512x128xf32>
    %50 = arith.addf %46, %49 : vector<512x128xf32>
    %cst_23 = arith.constant 0.000000e+00 : f32
    %51 = vector.broadcast %cst_23 : f32 to vector<512x128xf32>
    %52 = arith.cmpf oge, %50, %51 : vector<512x128xf32>
    %cst_24 = arith.constant 0.00999999977 : f32
    %53 = vector.broadcast %cst_24 : f32 to vector<512x128xf32>
    %54 = arith.mulf %53, %50 : vector<512x128xf32>
    %55 = arith.select %52, %50, %54 : vector<512x128xi1>, vector<512x128xf32>
    %56 = arith.truncf %55 : vector<512x128xf32> to vector<512x128xbf16>
    %c0_25 = arith.constant 0 : index
    %c0_26 = arith.constant 0 : index
    %c0_27 = arith.constant 0 : index
    %57 = vector.load %arg6[%c0_25, %c0_26, %c0_27] : memref<1x256x512xbf16, #tpu.memory_space<vmem>>, vector<1x256x512xbf16>
    %58 = vector.shape_cast %57 : vector<1x256x512xbf16> to vector<256x512xbf16>
    %cst_28 = arith.constant dense<0.000000e+00> : vector<256x128xf32>
    %59 = tpu.matmul %58, %56, %cst_28 {dimension_numbers = #tpu.dot_dimension_numbers<[1], [0], [0], [1], [0, 0, 1, 1], [], []>} : vector<256x512xbf16>, vector<512x128xbf16>, vector<256x128xf32> -> vector<256x128xf32>
    %c0_29 = arith.constant 0 : index
    %c896 = arith.constant 896 : index
    %c0_30 = arith.constant 0 : index
    %60 = vector.load %arg9[%c0_29, %c896, %c0_30] : memref<1x1288x1xf32, #tpu.memory_space<vmem>>, vector<1x256x1xf32>
    %61 = vector.shape_cast %60 : vector<1x256x1xf32> to vector<256x1xf32>
    %62 = vector.broadcast %61 : vector<256x1xf32> to vector<256x128xf32>
    %63 = arith.addf %59, %62 : vector<256x128xf32>
    %cst_31 = arith.constant 0.000000e+00 : f32
    %64 = vector.broadcast %cst_31 : f32 to vector<256x128xf32>
    %65 = arith.cmpf oge, %63, %64 : vector<256x128xf32>
    %cst_32 = arith.constant 0.00999999977 : f32
    %66 = vector.broadcast %cst_32 : f32 to vector<256x128xf32>
    %67 = arith.mulf %66, %63 : vector<256x128xf32>
    %68 = arith.select %65, %63, %67 : vector<256x128xi1>, vector<256x128xf32>
    %69 = arith.truncf %68 : vector<256x128xf32> to vector<256x128xbf16>
    %c0_33 = arith.constant 0 : index
    %c0_34 = arith.constant 0 : index
    %c0_35 = arith.constant 0 : index
    %70 = vector.load %arg7[%c0_33, %c0_34, %c0_35] : memref<1x128x256xbf16, #tpu.memory_space<vmem>>, vector<1x128x256xbf16>
    %71 = vector.shape_cast %70 : vector<1x128x256xbf16> to vector<128x256xbf16>
    %cst_36 = arith.constant dense<0.000000e+00> : vector<128x128xf32>
    %72 = tpu.matmul %71, %69, %cst_36 {dimension_numbers = #tpu.dot_dimension_numbers<[1], [0], [0], [1], [0, 0, 1, 1], [], []>} : vector<128x256xbf16>, vector<256x128xbf16>, vector<128x128xf32> -> vector<128x128xf32>
    %c0_37 = arith.constant 0 : index
    %c1152 = arith.constant 1152 : index
    %c0_38 = arith.constant 0 : index
    %73 = vector.load %arg9[%c0_37, %c1152, %c0_38] : memref<1x1288x1xf32, #tpu.memory_space<vmem>>, vector<1x128x1xf32>
    %74 = vector.shape_cast %73 : vector<1x128x1xf32> to vector<128x1xf32>
    %75 = vector.broadcast %74 : vector<128x1xf32> to vector<128x128xf32>
    %76 = arith.addf %72, %75 : vector<128x128xf32>
    %cst_39 = arith.constant 0.000000e+00 : f32
    %77 = vector.broadcast %cst_39 : f32 to vector<128x128xf32>
    %78 = arith.cmpf oge, %76, %77 : vector<128x128xf32>
    %cst_40 = arith.constant 0.00999999977 : f32
    %79 = vector.broadcast %cst_40 : f32 to vector<128x128xf32>
    %80 = arith.mulf %79, %76 : vector<128x128xf32>
    %81 = arith.select %78, %76, %80 : vector<128x128xi1>, vector<128x128xf32>
    %c0_41 = arith.constant 0 : index
    %c0_42 = arith.constant 0 : index
    %c0_43 = arith.constant 0 : index
    %82 = vector.load %arg8[%c0_41, %c0_42, %c0_43] : memref<1x128x3xf32, #tpu.memory_space<vmem>>, vector<1x128x3xf32>
    %83 = vector.shape_cast %82 : vector<1x128x3xf32> to vector<128x3xf32>
    %84 = vector.extract_strided_slice %83 {offsets = [0, 0], sizes = [128, 1], strides = [1, 1]} : vector<128x3xf32> to vector<128x1xf32>
    %85 = vector.broadcast %84 : vector<128x1xf32> to vector<128x128xf32>
    %86 = arith.mulf %81, %85 : vector<128x128xf32>
    %cst_44 = arith.constant dense<0.000000e+00> : vector<128xf32>
    %87 = vector.multi_reduction <add>, %86, %cst_44 [0] : vector<128x128xf32> to vector<128xf32>
    %88 = vector.shape_cast %87 : vector<128xf32> to vector<1x128xf32>
    %89 = vector.extract_strided_slice %83 {offsets = [0, 1], sizes = [128, 1], strides = [1, 1]} : vector<128x3xf32> to vector<128x1xf32>
    %90 = vector.broadcast %89 : vector<128x1xf32> to vector<128x128xf32>
    %91 = arith.mulf %81, %90 : vector<128x128xf32>
    %cst_45 = arith.constant dense<0.000000e+00> : vector<128xf32>
    %92 = vector.multi_reduction <add>, %91, %cst_45 [0] : vector<128x128xf32> to vector<128xf32>
    %93 = vector.shape_cast %92 : vector<128xf32> to vector<1x128xf32>
    %94 = vector.extract_strided_slice %83 {offsets = [0, 2], sizes = [128, 1], strides = [1, 1]} : vector<128x3xf32> to vector<128x1xf32>
    %95 = vector.broadcast %94 : vector<128x1xf32> to vector<128x128xf32>
    %96 = arith.mulf %81, %95 : vector<128x128xf32>
    %cst_46 = arith.constant dense<0.000000e+00> : vector<128xf32>
    %97 = vector.multi_reduction <add>, %96, %cst_46 [0] : vector<128x128xf32> to vector<128xf32>
    %98 = vector.shape_cast %97 : vector<128xf32> to vector<1x128xf32>
    %99 = tpu.concatenate %88, %93, %98 in 0 : vector<1x128xf32>, vector<1x128xf32>, vector<1x128xf32> -> vector<3x128xf32>
    %c0_47 = arith.constant 0 : index
    %c1280 = arith.constant 1280 : index
    %c0_48 = arith.constant 0 : index
    %100 = vector.load %arg9[%c0_47, %c1280, %c0_48] : memref<1x1288x1xf32, #tpu.memory_space<vmem>>, vector<1x3x1xf32>
    %101 = vector.shape_cast %100 : vector<1x3x1xf32> to vector<3x1xf32>
    %102 = vector.broadcast %101 : vector<3x1xf32> to vector<3x128xf32>
    %103 = arith.addf %99, %102 : vector<3x128xf32>
    %104 = arith.addf %103, %1 : vector<3x128xf32>
    %c0_49 = arith.constant 0 : index
    %c0_50 = arith.constant 0 : index
    %c0_51 = arith.constant 0 : index
    %105 = vector.load %arg10[%c0_49, %c0_50, %c0_51] : memref<1x3x128xf32, #tpu.memory_space<vmem>>, vector<1x3x128xf32>
    %106 = vector.shape_cast %105 : vector<1x3x128xf32> to vector<3x128xf32>
    %107 = vector.shape_cast %104 : vector<3x128xf32> to vector<1x3x128xf32>
    tpu.vector_store %arg10[%c0_49, %c0_50, %c0_51], %107 {strides = array<i32>} : memref<1x3x128xf32, #tpu.memory_space<vmem>>, vector<1x3x128xf32>,
    return
  }
  func.func @transform_0(%arg0: i32, %arg1: i32) -> (i32, i32, i32) {
    %c0_i32 = arith.constant 0 : i32
    %c0_i32_0 = arith.constant 0 : i32
    return %arg0, %c0_i32, %arg1 : i32, i32, i32
  }
  func.func @transform_1(%arg0: i32, %arg1: i32) -> (i32, i32, i32) {
    %c0_i32 = arith.constant 0 : i32
    %c0_i32_0 = arith.constant 0 : i32
    %c0_i32_1 = arith.constant 0 : i32
    return %arg0, %c0_i32, %c0_i32_0 : i32, i32, i32
  }
  func.func @transform_2(%arg0: i32, %arg1: i32) -> (i32, i32, i32) {
    %c0_i32 = arith.constant 0 : i32
    %c0_i32_0 = arith.constant 0 : i32
    %c0_i32_1 = arith.constant 0 : i32
    return %arg0, %c0_i32, %c0_i32_0 : i32, i32, i32
  }
  func.func @transform_3(%arg0: i32, %arg1: i32) -> (i32, i32, i32) {
    %c0_i32 = arith.constant 0 : i32
    %c0_i32_0 = arith.constant 0 : i32
    %c0_i32_1 = arith.constant 0 : i32
    return %arg0, %c0_i32, %c0_i32_0 : i32, i32, i32
  }
  func.func @transform_4(%arg0: i32, %arg1: i32) -> (i32, i32, i32) {
    %c0_i32 = arith.constant 0 : i32
    %c0_i32_0 = arith.constant 0 : i32
    %c0_i32_1 = arith.constant 0 : i32
    return %arg0, %c0_i32, %c0_i32_0 : i32, i32, i32
  }
  func.func @transform_5(%arg0: i32, %arg1: i32) -> (i32, i32, i32) {
    %c0_i32 = arith.constant 0 : i32
    %c0_i32_0 = arith.constant 0 : i32
    %c0_i32_1 = arith.constant 0 : i32
    return %arg0, %c0_i32, %c0_i32_0 : i32, i32, i32
  }
  func.func @transform_6(%arg0: i32, %arg1: i32) -> (i32, i32, i32) {
    %c0_i32 = arith.constant 0 : i32
    %c0_i32_0 = arith.constant 0 : i32
    %c0_i32_1 = arith.constant 0 : i32
    return %arg0, %c0_i32, %c0_i32_0 : i32, i32, i32
  }
  func.func @transform_7(%arg0: i32, %arg1: i32) -> (i32, i32, i32) {
    %c0_i32 = arith.constant 0 : i32
    %c0_i32_0 = arith.constant 0 : i32
    %c0_i32_1 = arith.constant 0 : i32
    return %arg0, %c0_i32, %c0_i32_0 : i32, i32, i32
  }
  func.func @transform_8(%arg0: i32, %arg1: i32) -> (i32, i32, i32) {
    %c0_i32 = arith.constant 0 : i32
    %c0_i32_0 = arith.constant 0 : i32
    return %arg0, %c0_i32, %arg1 : i32, i32, i32
  }
}

</mosaic_0001>

<bundles_post_ra>
// kernel: tpu_custom_call.1
= control target key start
LH: loop header
LB: loop body
LE: loop exit
PB: predicated region body
PF: predicated region fallthrough
CT: control target
= control target key end

     0   :  { %s5667_s27 = smov 0   ;;  %s5669_s28 = smov 0   ;;  %s7171_s0 = inlined_call_operand.vmem [shape: f32[2,3,1024], index: 0, kind: input, shape index: {}]   ;;  %s7172_s1 = inlined_call_operand.vmem [shape: f32[2,128,3], index: 1, kind: input, shape index: {}]   ;;  %s7173_s2 = inlined_call_operand.vmem [shape: bf16[2,256,128], index: 2, kind: input, shape index: {}]   ;;  %s7174_s3 = inlined_call_operand.vmem [shape: bf16[2,512,256], index: 3, kind: input, shape index: {}]   ;;  %s7175_s4 = inlined_call_operand.vmem [shape: bf16[2,256,512], index: 4, kind: input, shape index: {}]   ;;  %s7176_s5 = inlined_call_operand.vmem [shape: bf16[2,128,256], index: 5, kind: input, shape index: {}]   ;;  %s7177_s6 = inlined_call_operand.vmem [shape: f32[2,128,3], index: 6, kind: input, shape index: {}]   ;;  %s7178_s7 = inlined_call_operand.vmem [shape: f32[2,1288,1], index: 7, kind: input, shape index: {}]   ;;  %s7179_s8 = inlined_call_operand.vmem [shape: f32[2,3,1024], index: 8, kind: output, shape index: {}]  }
   0x1   :  { %s5671_s29 = smov 0   ;;  %s5673_s30 = smov 0  }
   0x2   :  { %s5675_s9 = smov 0  }
   0x3 LB: > { %s27_s10 = sadd.s32 1, %s5609_s29  ;;  %s30_s11 = sadd.s32 1, %s5613_s30  ;;  %s5617_s9 = sphi %s5675_s9, %s18_s9   ;;  %s5613_s30 = sphi %s5673_s30, %s7314_s30   ;;  %s5609_s29 = sphi %s5671_s29, %s7313_s29   ;;  %s5605_s28 = sphi %s5669_s28, %s7312_s28   ;;  %s5601_s27 = sphi %s5667_s27, %s7311_s27  }
   0x4   : > { %p28_p0 = scmp.ge.s32.totalorder %s27_s10, 8  ;;  %p4706_p1 = scmp.ge.s32.totalorder %s5617_s9, 1 }
   0x5   : > { %p351_p2 = scmp.lt.s32.totalorder %s5617_s9, 17 }
   0x6   : > { %s7316_s10 = smov (%p28_p0, %s27_s10), 0  ;;  %s7318_s11 = smov (!%p28_p0, %s30_s11), %s5613_s30 }
   0x7   : > { %p352_p3 = pnand %p4706_p1, %p351_p2  ;;  %p32_p4 = scmp.ge.s32.totalorder %s7318_s11, 2 }
   0x9   : > { %s7320_s11 = smov (%p32_p4, %s7318_s11), 0  ;;  %355 = sbr.rel (%p352_p3) target bundleno = 1732 (0x6c4), region = 52 }
  0x10   : > { %p426_p5 = scmp.lt.s32.totalorder %s5605_s28, 1  ;;  %v7182_v0 = vmov 2   ;;  %v7184_v1 = vmov 1   ;;  %v7180_v2 = vmov 0   ;;  %p428_p6 = scmp.lt.s32.totalorder %s5601_s27, 7  ;;  %v575_v57 = vlaneseq }
  0x11   : > { %5313 = vset.pattern.permute.xlu0 %v7182_v0  ;;  %5312 = vset.pattern.permute.xlu1 %v7184_v1 }
  0x12   : > { %s7322_s28 = smov (!%p426_p5, %s5605_s28), 1  ;;  %2324 = vmatprep.subr.bf16.mxu1 %v7180_v2  ;;  %s7324_s27 = smov (!%p428_p6, %s5601_s27), 7  ;;  %v576_v62 = vshrl.u32 %v575_v57, 7 }
  0x13   : > { %s5705_s12 = sshll.u32 %s7322_s28, 7  ;;  %s4888_s19 = sshll.u32 %s7322_s28, 9 }
  0x14   : > { %s5711_s15 = scalar_lea.vmem %s7172_s1, %s5705_s12  ;;  %s5723_s18 = scalar_lea.vmem %s7173_s2, %s5705_s12 }
  0x15   : > { %v479_v3 = vld [vmem:[%s5711_s15] sm:$0xff]  ;;  %v481_v4 = vld [vmem:[%s5711_s15 + $0x10] sm:$0xff]  ;;  %v480_v5 = vld [vmem:[%s5711_s15 + $0x8] sm:$0xff]  ;;  %s5268_s20 = smul.u32 1288, %s7322_s28  ;;  %s5744_s23 = scalar_lea.vmem %s7174_s3, %s4888_s19 }
  0x16   : > { %696 = vperm.xlu0 %5313, %v479_v3   ;;  %596 = vperm.xlu1 %5312, %v479_v3   ;;  %v484_v6 = vld [vmem:[%s5711_s15 + $0x28] sm:$0xff]  ;;  %v483_v7 = vld [vmem:[%s5711_s15 + $0x20] sm:$0xff]  ;;  %v486_v8 = vld [vmem:[%s5711_s15 + $0x38] sm:$0xff]  ;;  %s5771_s16 = scalar_lea.vmem %s7175_s4, %s4888_s19  ;;  %s4707_s17 = sshll.u32 %s7322_s28, 3 }
  0x17   : > { %v5730_v9 = vld [vmem:[%s5711_s15 + $0x48] sm:$0xff]  ;;  %v482_v10 = vld [vmem:[%s5711_s15 + $0x18] sm:$0xff]  ;;  %s5753_s26 = scalar_lea.vmem %s7178_s7, %s5268_s20  ;;  %v485_v16 = vld [vmem:[%s5711_s15 + $0x30] sm:$0xff]  ;;  %s5846_s19 = sadd.s32 %s4707_s17, %s7324_s27 }
  0x18   : > { %v5737_v11 = vld [vmem:[%s5711_s15 + $0x58] sm:$0xff]  ;;  %v5748_v12 = vld [vmem:[%s5711_s15 + $0x68] sm:$0xff]  ;;  %v795_v14 = vld [vmem:[%s5753_s26] sm:$0xff]  ;;  %s4708_s28 = sshll.u32 %s5846_s19, 2  ;;  %s6219_s22 = scalar_lea.vmem %s7177_s6, %s5705_s12 }
  0x19   : > { %v5757_v13 = vld [vmem:[%s5711_s15 + $0x78] sm:$0xff]  ;;  %v796_v15 = vld [vmem:[%s5753_s26 + $0x8] sm:$0xff]  ;;  %v797_v17 = vld [vmem:[%s5753_s26 + $0x10] sm:$0xff]  ;;  %s5864_s21 = scalar_lea.vmem %s7171_s0, %s4708_s28  ;;  %s6896_s25 = scalar_lea.vmem %s7176_s5, %s5705_s12 }
  0x1a   : > { %704 = vperm.xlu0 %5313, %v481_v4   ;;  %600 = vperm.xlu1 %5312, %v480_v5   ;;  %v799_v18 = vld [vmem:[%s5753_s26 + $0x20] sm:$0xff]  ;;  %v798_v19 = vld [vmem:[%s5753_s26 + $0x18] sm:$0xff]  ;;  %v801_v20 = vld [vmem:[%s5753_s26 + $0x30] sm:$0xff]  ;;  %s476_s13 = scalar_lea.vmem %s7179_s8, %s4708_s28 }
  0x1b   : > { %v803_v21 = vld [vmem:[%s5753_s26 + $0x40] sm:$0xff]  ;;  %v805_v22 = vld [vmem:[%s5753_s26 + $0x50] sm:$0xff]  ;;  %v800_v23 = vld [vmem:[%s5753_s26 + $0x28] sm:$0xff] }
  0x1c   : > { %v487_v24 = vld [vmem:[%s5711_s15 + $0x40] sm:$0xff]  ;;  %v810_v26 = vld [vmem:[%s5753_s26 + $0x78] sm:$0xff]  ;;  %v996_v27 = vld [vmem:[%s5753_s26 + $0x88] sm:$0xff] }
  0x1d   : > { %v807_v25 = vld [vmem:[%s5753_s26 + $0x60] sm:$0xff]  ;;  %v998_v28 = vld [vmem:[%s5753_s26 + $0x98] sm:$0xff]  ;;  %v1000_v29 = vld [vmem:[%s5753_s26 + $0xa8] sm:$0xff] }
  0x1e   : > { %716 = vperm.xlu0 %5313, %v484_v6   ;;  %5314 = vset.pattern.permute.xlu1 %v7182_v0  ;;  %v802_v30 = vld [vmem:[%s5753_s26 + $0x38] sm:$0xff]  ;;  %v489_v32 = vld [vmem:[%s5711_s15 + $0x50] sm:$0xff]  ;;  %v1004_v33 = vld [vmem:[%s5753_s26 + $0xc8] sm:$0xff] }
  0x1f   : > { %700 = vperm.xlu1 %5314, %v480_v5   ;;  %v1002_v31 = vld [vmem:[%s5753_s26 + $0xb8] sm:$0xff]  ;;  %v1008_v35 = vld [vmem:[%s5753_s26 + $0xe8] sm:$0xff]  ;;  %v491_v41 = vld [vmem:[%s5711_s15 + $0x60] sm:$0xff] }
  0x20   : > { %v1006_v34 = vld [vmem:[%s5753_s26 + $0xd8] sm:$0xff]  ;;  %v804_v37 = vld [vmem:[%s5753_s26 + $0x48] sm:$0xff]  ;;  %v493_v61 = vld [vmem:[%s5711_s15 + $0x70] sm:$0xff] }
  0x21   : > { %v1010_v36 = vld [vmem:[%s5753_s26 + $0xf8] sm:$0xff]  ;;  %v1012_v40 = vld [vmem:[%s5753_s26 + $0x108] sm:$0xff] }
  0x22   : > { %5321 = vset.pattern.permute.xlu0 %v7184_v1  ;;  %v1014_v44 = vld [vmem:[%s5753_s26 + $0x118] sm:$0xff]  ;;  %v1016_v46 = vld [vmem:[%s5753_s26 + $0x128] sm:$0xff] }
  0x23   : > { %612 = vperm.xlu0 %5321, %v483_v7   ;;  %5315 = vset.pattern.permute.xlu1 %v7180_v2  ;;  %v1018_v48 = vld [vmem:[%s5753_s26 + $0x138] sm:$0xff]  ;;  %v1020_v51 = vld [vmem:[%s5753_s26 + $0x148] sm:$0xff] }
  0x24   : > { %507 = vperm.xlu1 %5315, %v481_v4   ;;  %v1022_v54 = vld [vmem:[%s5753_s26 + $0x158] sm:$0xff]  ;;  %v1024_v59 = vld [vmem:[%s5753_s26 + $0x168] sm:$0xff] }
  0x25   : > { %v806_v56 = vld [vmem:[%s5753_s26 + $0x58] sm:$0xff] }
  0x27   : > { %624 = vperm.xlu0 %5321, %v486_v8  }
  0x28   : > { %5316 = vset.pattern.permute.xlu1 %v7184_v1 }
  0x29   : > { %604 = vperm.xlu1 %5316, %v481_v4  }
  0x2b   : > { %632 = vperm.xlu0 %5321, %v5730_v9  }
  0x2d   : > { %608 = vperm.xlu1 %5316, %v482_v10  }
  0x2f   : > { %640 = vperm.xlu0 %5321, %v5737_v11  }
  0x31   : > { %5317 = vset.pattern.permute.xlu1 %v7182_v0 }
  0x32   : > { %708 = vperm.xlu1 %5317, %v482_v10  }
  0x33   : > { %648 = vperm.xlu0 %5321, %v5748_v12  }
  0x36   : > { %5318 = vset.pattern.permute.xlu1 %v7180_v2 }
  0x37   : > { %656 = vperm.xlu0 %5321, %v5757_v13   ;;  %813 = vperm.xlu1 %5318, %v795_v14   ;;  %v1621_v14 = vld [vmem:[%s5753_s26 + $0x188] sm:$0xff] }
  0x3b   : > { %5336 = vset.pattern.permute.xlu0 %v7180_v2  ;;  %517 = vperm.xlu1 %5318, %v483_v7  }
  0x3c   : > { %497 = vperm.xlu0 %5336, %v479_v3   ;;  %v1026_v3 = vld [vmem:[%s5753_s26 + $0x178] sm:$0xff] }
  0x3f   : > { %522 = vperm.xlu1 %5318, %v484_v6  }
  0x40   : > { %502 = vperm.xlu0 %5336, %v480_v5   ;;  %v661_v5 = vsub.s32 1, %v576_v62 }
  0x43   : > { %5319 = vset.pattern.permute.xlu1 %v7184_v1 }
  0x44   : > { %512 = vperm.xlu0 %5336, %v482_v10   ;;  %616 = vperm.xlu1 %5319, %v484_v6   ;;  %v478_v6 = vld [vmem:[%s5864_s21] sm:$0x7] }
  0x48   : > { %818 = vperm.xlu0 %5336, %v796_v15   ;;  %5320 = vset.pattern.permute.xlu1 %v7182_v0 }
  0x49   : > { %712 = vperm.xlu1 %5320, %v483_v7   ;;  %v1637_v7 = vld [vmem:[%s5753_s26 + $0x208] sm:$0xff] }
  0x4c   : > { %527 = vperm.xlu0 %5336, %v485_v16  }
  0x4d   : > { %5322 = vset.pattern.permute.xlu1 %v7180_v2 }
  0x4e   : > { %823 = vperm.xlu1 %5322, %v797_v17  }
  0x50   : > { %833 = vperm.xlu0 %5336, %v799_v18  }
  0x52   : > { %828 = vperm.xlu1 %5322, %v798_v19  }
  0x54   : > { %542 = vperm.xlu0 %5336, %v5730_v9  }
  0x56   : > { %532 = vperm.xlu1 %5322, %v486_v8  }
  0x58   : > { %843 = vperm.xlu0 %5336, %v801_v20  }
  0x5a   : > { %5323 = vset.pattern.permute.xlu1 %v7184_v1 }
  0x5b   : > { %620 = vperm.xlu1 %5323, %v485_v16  }
  0x5c   : > { %552 = vperm.xlu0 %5336, %v5737_v11  }
  0x5f   : > { %5324 = vset.pattern.permute.xlu1 %v7182_v0 }
  0x60   : > { %853 = vperm.xlu0 %5336, %v803_v21   ;;  %720 = vperm.xlu1 %5324, %v485_v16  }
  0x64   : > { %562 = vperm.xlu0 %5336, %v5748_v12   ;;  %724 = vperm.xlu1 %5324, %v486_v8   ;;  %v577_v8 = vsub.s32 0, %v576_v62 }
  0x66   : > { %v5876_v15 = vrot.slane %v478_v6, %v577_v8 }
  0x68   : > { %863 = vperm.xlu0 %5336, %v805_v22   ;;  %5325 = vset.pattern.permute.xlu1 %v7180_v2  ;;  %v1639_v22 = vld [vmem:[%s5753_s26 + $0x218] sm:$0xff] }
  0x69   : > { %838 = vperm.xlu1 %5325, %v800_v23  }
  0x6c   : > { %572 = vperm.xlu0 %5336, %v5757_v13  }
  0x6d   : > { %537 = vperm.xlu1 %5325, %v487_v24  }
  0x70   : > { %873 = vperm.xlu0 %5336, %v807_v25  }
  0x71   : > { %5326 = vset.pattern.permute.xlu1 %v7184_v1 }
  0x72   : > { %628 = vperm.xlu1 %5326, %v487_v24  }
  0x74   : > { %888 = vperm.xlu0 %5336, %v810_v26  }
  0x76   : > { %5327 = vset.pattern.permute.xlu1 %v7182_v0 }
  0x77   : > { %728 = vperm.xlu1 %5327, %v487_v24  }
  0x78   : > { %1034 = vperm.xlu0 %5336, %v996_v27  }
  0x7b   : > { %732 = vperm.xlu1 %5327, %v5730_v9   ;;  %v761_v9 = vsub.s32 2, %v576_v62 }
  0x7c   : > { %1044 = vperm.xlu0 %5336, %v998_v28  }
  0x7d   : > { %v5878_v16 = vrot.slane %v478_v6, %v761_v9 }
  0x7f   : > { %5328 = vset.pattern.permute.xlu1 %v7180_v2 }
  0x80   : > { %1054 = vperm.xlu0 %5336, %v1000_v29   ;;  %848 = vperm.xlu1 %5328, %v802_v30   ;;  %v1623_v29 = vld [vmem:[%s5753_s26 + $0x198] sm:$0xff] }
  0x84   : > { %1064 = vperm.xlu0 %5336, %v1002_v31   ;;  %547 = vperm.xlu1 %5328, %v489_v32   ;;  %v808_v31 = vld [vmem:[%s5753_s26 + $0x68] sm:$0xff] }
  0x88   : > { %1074 = vperm.xlu0 %5336, %v1004_v33   ;;  %5329 = vset.pattern.permute.xlu1 %v7184_v1 }
  0x89   : > { %636 = vperm.xlu1 %5329, %v489_v32  }
  0x8c   : > { %1084 = vperm.xlu0 %5336, %v1006_v34  }
  0x8d   : > { %5330 = vset.pattern.permute.xlu1 %v7182_v0 }
  0x8e   : > { %736 = vperm.xlu1 %5330, %v489_v32  }
  0x90   : > { %1094 = vperm.xlu0 %5336, %v1008_v35  }
  0x92   : > { %740 = vperm.xlu1 %5330, %v5737_v11  }
  0x94   : > { %1104 = vperm.xlu0 %5336, %v1010_v36  }
  0x95   : > { %v5811_v38 = vpop.permute.xlu1 %596  ;;  %v5813_v39 = vpop.permute.xlu0 %696 }
  0x96   : > { %5331 = vset.pattern.permute.xlu1 %v7180_v2  ;;  %v763_v20 = vmul.f32 %v5878_v16, %v5813_v39  ;;  %v809_v39 = vld [vmem:[%s5753_s26 + $0x70] sm:$0xff] }
  0x97   : > { %858 = vperm.xlu1 %5331, %v804_v37   ;;  %v1641_v37 = vld [vmem:[%s5753_s26 + $0x228] sm:$0xff] }
  0x98   : > { %1114 = vperm.xlu0 %5336, %v1012_v40  }
  0x99   : > { %v5818_v42 = vpop.permute.xlu1 %600  ;;  %v5820_v43 = vpop.permute.xlu0 %704 }
  0x9a   : > { %v765_v40 = vmul.f32 %v5878_v16, %v5820_v43 }
  0x9b   : > { %557 = vperm.xlu1 %5331, %v491_v41  }
  0x9c   : > { %1124 = vperm.xlu0 %5336, %v1014_v44  }
  0x9d   : > { %v5823_v45 = vpop.permute.xlu0 %716 }
  0x9e   : > { %v5826_v47 = vpop.permute.xlu1 %700 }
  0x9f   : > { %5332 = vset.pattern.permute.xlu1 %v7184_v1  ;;  %v764_v34 = vmul.f32 %v5878_v16, %v5826_v47 }
  0xa0   : > { %1134 = vperm.xlu0 %5336, %v1016_v46   ;;  %644 = vperm.xlu1 %5332, %v491_v41  }
  0xa2   : > { %v5830_v49 = vpop.permute.xlu0 %612 }
  0xa3   : > { %v5832_v50 = vpop.permute.xlu1 %507 }
  0xa4   : > { %1144 = vperm.xlu0 %5336, %v1018_v48   ;;  %5333 = vset.pattern.permute.xlu1 %v7182_v0 }
  0xa5   : > { %744 = vperm.xlu1 %5333, %v491_v41  }
  0xa6   : > { %v5837_v52 = vpop.permute.xlu0 %624 }
  0xa8   : > { %1154 = vperm.xlu0 %5336, %v1020_v51   ;;  %v605_v53 = vpop.permute.xlu1 %604  ;;  %v1625_v51 = vld [vmem:[%s5753_s26 + $0x1a8] sm:$0xff] }
  0xa9   : > { %748 = vperm.xlu1 %5333, %v5748_v12   ;;  %v5873_v12 = vrot.slane %v478_v6, %v661_v5  ;;  %v1643_v5 = vld [vmem:[%s5753_s26 + $0x238] sm:$0xff] }
  0xaa   : > { %v5843_v55 = vpop.permute.xlu0 %632 }
  0xab   : > { %v663_v19 = vmul.f32 %v5873_v12, %v5811_v38  ;;  %v664_v26 = vmul.f32 %v5873_v12, %v5818_v42  ;;  %v665_v35 = vmul.f32 %v5873_v12, %v605_v53 }
  0xac   : > { %1164 = vperm.xlu0 %5336, %v1022_v54   ;;  %v5848_v58 = vpop.permute.xlu1 %608  ;;  %v995_v54 = vld [vmem:[%s5753_s26 + $0x80] sm:$0xff] }
  0xad   : > { %5334 = vset.pattern.permute.xlu1 %v7180_v2 }
  0xae   : > { %868 = vperm.xlu1 %5334, %v806_v56   ;;  %v5852_v60 = vpop.permute.xlu0 %640 }
  0xb0   : > { %1174 = vperm.xlu0 %5336, %v1024_v59  }
  0xb1   : > { %v5856_v63 = vpop.permute.xlu1 %708 }
  0xb2   : > { %567 = vperm.xlu1 %5334, %v493_v61   ;;  %v5866_v4 = vpop.permute.xlu0 %648 }
  0xb4   : > { %1184 = vperm.xlu0 %5336, %v1026_v3  }
  0xb6   : > { %5335 = vset.pattern.permute.xlu1 %v7184_v1  ;;  %v814_v10 = vpop.permute.xlu1 %813  ;;  %v5871_v11 = vpop.permute.xlu0 %656 }
  0xb7   : > { %652 = vperm.xlu1 %5335, %v493_v61  }
  0xb8   : > { %1771 = vperm.xlu0 %5336, %v1637_v7   ;;  %v997_v7 = vld [vmem:[%s5753_s26 + $0x90] sm:$0xff] }
  0xba   : > { %v5880_v17 = vpop.permute.xlu1 %517 }
  0xbb   : > { %v498_v18 = vpop.permute.xlu0 %497  ;;  %5337 = vset.pattern.permute.xlu1 %v7182_v0  ;;  %v2925_v0 = vld [vmem:[%s5753_s26 + $0x440] sm:$0xff] }
  0xbc   : > { %v579_v21 = vmul.f32 %v5876_v15, %v498_v18  ;;  %1691 = vperm.xlu0 %5336, %v1621_v14   ;;  %752 = vperm.xlu1 %5337, %v493_v61   ;;  %v1627_v14 = vld [vmem:[%s5753_s26 + $0x1b8] sm:$0xff]  ;;  %v5346_v18 = vld [vmem:[%s5723_s18] sm:$0xff]  }
  0xbd   : > { %5220 = vmatprep.mubr.bf16.mxu0 %v5346_v18 }
  0xbe   : > { %v679_v23 = vadd.f32 %v663_v19, %v579_v21  ;;  %v5889_v24 = vpop.permute.xlu1 %522  ;;  %v999_v21 = vld [vmem:[%s5753_s26 + $0xa0] sm:$0xff] }
  0xbf   : > { %v503_v25 = vpop.permute.xlu0 %502 }
  0xc0   : > { %v779_v27 = vadd.f32 %v763_v20, %v679_v23  ;;  %v580_v28 = vmul.f32 %v5876_v15, %v503_v25  ;;  %1781 = vperm.xlu0 %5336, %v1639_v22   ;;  %756 = vperm.xlu1 %5337, %v5757_v13   ;;  %v581_v13 = vmul.f32 %v5876_v15, %v5832_v50  ;;  %v1645_v25 = vld [vmem:[%s5753_s26 + $0x248] sm:$0xff] }
  0xc1   : > { %v666_v50 = vmul.f32 %v5873_v12, %v5848_v58  ;;  %v766_v58 = vmul.f32 %v5878_v16, %v5856_v63 }
  0xc2   : > { %v680_v30 = vadd.f32 %v664_v26, %v580_v28  ;;  %v891_v36 = vadd.f32 %v814_v10, %v779_v27  ;;  %v681_v42 = vadd.f32 %v665_v35, %v581_v13  ;;  %v1001_v26 = vld [vmem:[%s5753_s26 + $0xb0] sm:$0xff]  ;;  %v1647_v13 = vld [vmem:[%s5753_s26 + $0x258] sm:$0xff] }
  0xc3   : > { %v513_v32 = vpop.permute.xlu0 %512  ;;  %v5897_v33 = vpop.permute.xlu1 %616 }
  0xc4   : > { %1701 = vperm.xlu0 %5336, %v1623_v29   ;;  %5338 = vset.pattern.permute.xlu1 %v7180_v2  ;;  %v780_v38 = vadd.f32 %v764_v34, %v680_v30  ;;  %v582_v44 = vmul.f32 %v5876_v15, %v513_v32  ;;  %v923_v48 = vmul.f32 0.01, %v891_v36  ;;  %vm907_vm0 = vcmp.ge.f32.partialorder %v891_v36, 0.0  ;;  %v1003_v34 = vld [vmem:[%s5753_s26 + $0xc0] sm:$0xff] }
  0xc5   : > { %878 = vperm.xlu1 %5338, %v808_v31   ;;  %v781_v57 = vadd.f32 %v765_v40, %v681_v42  ;;  %v1629_v31 = vld [vmem:[%s5753_s26 + $0x1c8] sm:$0xff] }
  0xc6   : > { %v682_v56 = vadd.f32 %v666_v50, %v582_v44  ;;  %v939_v59 = vsel %vm907_vm0, %v891_v36, %v923_v48  ;;  %v667_v36 = vmul.f32 %v5873_v12, %v5830_v49  ;;  %v584_v49 = vmul.f32 %v5876_v15, %v5889_v24 }
  0xc7   : > { %v819_v41 = vpop.permute.xlu0 %818  ;;  %v768_v48 = vmul.f32 %v5878_v16, %v5823_v45 }
  0xc8   : > { %v892_v46 = vadd.f32 %v819_v41, %v780_v38  ;;  %1791 = vperm.xlu0 %5336, %v1641_v37   ;;  %v5910_v47 = vpop.permute.xlu1 %712  ;;  %v782_v9 = vadd.f32 %v766_v58, %v682_v56  ;;  %v583_v37 = vmul.f32 %v5876_v15, %v5880_v17  ;;  %v1005_v38 = vld [vmem:[%s5753_s26 + $0xd0] sm:$0xff]  ;;  %v1631_v17 = vld [vmem:[%s5753_s26 + $0x1d8] sm:$0xff] }
  0xc9   : > { %883 = vperm.xlu1 %5338, %v809_v39   ;;  %v668_v39 = vmul.f32 %v5873_v12, %v5897_v33  ;;  %v767_v40 = vmul.f32 %v5878_v16, %v5910_v47  ;;  %v1009_v56 = vld [vmem:[%s5753_s26 + $0xf0] sm:$0xff] }
  0xca   : > { %v924_v53 = vmul.f32 0.01, %v892_v46  ;;  %vm908_vm1 = vcmp.ge.f32.partialorder %v892_v46, 0.0  ;;  %v683_v44 = vadd.f32 %v667_v36, %v583_v37 }
  0xcb   : > { %v5916_v43 = vpop.permute.xlu0 %527  ;;  %v684_v33 = vadd.f32 %v668_v39, %v584_v49 }
  0xcc   : > { %1711 = vperm.xlu0 %5336, %v1625_v51   ;;  %v940_v61 = vsel %vm908_vm1, %v892_v46, %v924_v53  ;;  %v1007_v46 = vld [vmem:[%s5753_s26 + $0xe0] sm:$0xff]  ;;  %v783_v51 = vadd.f32 %v767_v40, %v683_v44 }
  0xcd   : > { %1029 = vperm.xlu1 %5338, %v995_v54   ;;  %v824_v62 = vpop.permute.xlu1 %823  ;;  %v955_v3 = vpack.c.bf16 %v940_v61, %v939_v59  ;;  %v1649_v54 = vld [vmem:[%s5753_s26 + $0x268] sm:$0xff]  ;;  %v784_v24 = vadd.f32 %v768_v48, %v684_v33  ;;  %v1019_v40 = vld [vmem:[%s5753_s26 + $0x140] sm:$0xff] }
  0xce   : > { %v893_v6 = vadd.f32 %v824_v62, %v781_v57  ;;  %v1633_v62 = vld [vmem:[%s5753_s26 + $0x1e8] sm:$0xff] }
  0xcf   : > { %v834_v8 = vpop.permute.xlu0 %833  ;;  %5204 = vmatprep.subr.bf16.mxu0 %v955_v3 }
  0xd0   : > { %1801 = vperm.xlu0 %5336, %v1643_v5   ;;  %5205 = vmatpush3.bf16.msra.mxu0 %v955_v3  ;;  %v925_v19 = vmul.f32 0.01, %v893_v6  ;;  %vm909_vm2 = vcmp.ge.f32.partialorder %v893_v6, 0.0  ;;  %v895_v53 = vadd.f32 %v834_v8, %v783_v51  ;;  %v1011_v3 = vld [vmem:[%s5753_s26 + $0x100] sm:$0xff] }
  0xd1   : > { %1039 = vperm.xlu1 %5338, %v997_v7   ;;  %v829_v10 = vpop.permute.xlu1 %828  ;;  %v1651_v7 = vld [vmem:[%s5753_s26 + $0x278] sm:$0xff] }
  0xd2   : > { %v894_v20 = vadd.f32 %v829_v10, %v782_v9  ;;  %v941_v27 = vsel %vm909_vm2, %v893_v6, %v925_v19  ;;  %v927_v61 = vmul.f32 0.01, %v895_v53  ;;  %vm911_vm4 = vcmp.ge.f32.partialorder %v895_v53, 0.0 }
  0xd3   : > { %v5925_v22 = vpop.permute.xlu0 %542 }
  0xd4   : > { %vm910_vm3 = vcmp.ge.f32.partialorder %v894_v20, 0.0  ;;  %v926_v63 = vmul.f32 0.01, %v894_v20  ;;  %1721 = vperm.xlu0 %5336, %v1627_v14   ;;  %v943_v8 = vsel %vm911_vm4, %v895_v53, %v927_v61  ;;  %v1013_v14 = vld [vmem:[%s5753_s26 + $0x110] sm:$0xff] }
  0xd5   : > { %1049 = vperm.xlu1 %5338, %v999_v21   ;;  %v5927_v23 = vpop.permute.xlu1 %532  ;;  %v585_v21 = vmul.f32 %v5876_v15, %v5916_v43  ;;  %v670_v43 = vmul.f32 %v5873_v12, %v5837_v52  ;;  %v1671_v52 = vld [vmem:[%s5753_s26 + $0x318] sm:$0xff] }
  0xd6   : > { %v942_v28 = vsel %vm910_vm3, %v894_v20, %v926_v63  ;;  %v1635_v20 = vld [vmem:[%s5753_s26 + $0x1f8] sm:$0xff] }
  0xd7   : > { %v5931_v29 = vpop.permute.xlu0 %843  ;;  %v956_v30 = vpack.c.bf16 %v942_v28, %v941_v27  ;;  %v1669_v28 = vld [vmem:[%s5753_s26 + $0x308] sm:$0xff] }
  0xd8   : > { %1811 = vperm.xlu0 %5336, %v1645_v25   ;;  %v1015_v25 = vld [vmem:[%s5753_s26 + $0x120] sm:$0xff] }
  0xd9   : > { %1059 = vperm.xlu1 %5338, %v1001_v26   ;;  %5206 = vmatprep.subr.bf16.mxu0 %v956_v30 }
  0xda   : > { %v621_v32 = vpop.permute.xlu1 %620  ;;  %5207 = vmatpush3.bf16.msra.mxu0 %v956_v30 }
  0xdb   : > { %v5935_v35 = vpop.permute.xlu0 %552  ;;  %v669_v63 = vmul.f32 %v5873_v12, %v621_v32  ;;  %v586_v32 = vmul.f32 %v5876_v15, %v5927_v23  ;;  %v1021_v23 = vld [vmem:[%s5753_s26 + $0x150] sm:$0xff] }
  0xdc   : > { %1731 = vperm.xlu0 %5336, %v1629_v31  }
  0xdd   : > { %1069 = vperm.xlu1 %5338, %v1003_v34   ;;  %v685_v30 = vadd.f32 %v669_v63, %v585_v21  ;;  %v1017_v34 = vld [vmem:[%s5753_s26 + $0x130] sm:$0xff]  ;;  %v686_v44 = vadd.f32 %v670_v43, %v586_v32  ;;  %v672_v21 = vmul.f32 %v5873_v12, %v5843_v55  ;;  %v588_v63 = vmul.f32 %v5876_v15, %v5925_v22  ;;  %v1659_v55 = vld [vmem:[%s5753_s26 + $0x2b8] sm:$0xff] }
  0xde   : > { %v1638_v32 = vld [vmem:[%s5753_s26 + $0x210] sm:$0xff] }
  0xdf   : > { %v5947_v41 = vpop.permute.xlu0 %853  ;;  %v721_v42 = vpop.permute.xlu1 %720 }
  0xe0   : > { %1821 = vperm.xlu0 %5336, %v1647_v13   ;;  %v769_v27 = vmul.f32 %v5878_v16, %v721_v42  ;;  %v1653_v13 = vld [vmem:[%s5753_s26 + $0x288] sm:$0xff] }
  0xe1   : > { %1079 = vperm.xlu1 %5338, %v1005_v38  }
  0xe2   : > { %v785_v37 = vadd.f32 %v769_v27, %v685_v30  ;;  %v1675_v27 = vld [vmem:[%s5753_s26 + $0x338] sm:$0xff] }
  0xe3   : > { %v5955_v47 = vpop.permute.xlu0 %562  ;;  %v725_v50 = vpop.permute.xlu1 %724 }
  0xe4   : > { %1741 = vperm.xlu0 %5336, %v1631_v17   ;;  %v770_v38 = vmul.f32 %v5878_v16, %v725_v50  ;;  %v897_v49 = vadd.f32 %v5931_v29, %v785_v37  ;;  %v1655_v50 = vld [vmem:[%s5753_s26 + $0x298] sm:$0xff]  ;;  %v1023_v29 = vld [vmem:[%s5753_s26 + $0x160] sm:$0xff] }
  0xe5   : > { %1089 = vperm.xlu1 %5338, %v1007_v46  }
  0xe6   : > { %v786_v17 = vadd.f32 %v770_v38, %v686_v44  ;;  %v929_v51 = vmul.f32 0.01, %v897_v49  ;;  %vm913_vm6 = vcmp.ge.f32.partialorder %v897_v49, 0.0  ;;  %v1677_v38 = vld [vmem:[%s5753_s26 + $0x348] sm:$0xff]  ;;  %v1622_v44 = vld [vmem:[%s5753_s26 + $0x190] sm:$0xff] }
  0xe7   : > { %v5959_v57 = vpop.permute.xlu0 %863 }
  0xe8   : > { %1831 = vperm.xlu0 %5336, %v1649_v54   ;;  %v839_v59 = vpop.permute.xlu1 %838 }
  0xe9   : > { %v896_v45 = vadd.f32 %v839_v59, %v784_v24  ;;  %1099 = vperm.xlu1 %5338, %v1009_v56   ;;  %v945_v24 = vsel %vm913_vm6, %v897_v49, %v929_v51 }
  0xeb   : > { %vm912_vm5 = vcmp.ge.f32.partialorder %v896_v45, 0.0  ;;  %v928_v5 = vmul.f32 0.01, %v896_v45  ;;  %v5963_v58 = vpop.permute.xlu0 %572 }
  0xec   : > { %1751 = vperm.xlu0 %5336, %v1633_v62   ;;  %v5965_v6 = vpop.permute.xlu1 %537  ;;  %v1025_v62 = vld [vmem:[%s5753_s26 + $0x170] sm:$0xff] }
  0xed   : > { %1109 = vperm.xlu1 %5338, %v1011_v3   ;;  %v944_v9 = vsel %vm912_vm5, %v896_v45, %v928_v5  ;;  %v1673_v45 = vld [vmem:[%s5753_s26 + $0x328] sm:$0xff] }
  0xee   : > { %v957_v10 = vpack.c.bf16 %v944_v9, %v943_v8  ;;  %v1657_v8 = vld [vmem:[%s5753_s26 + $0x2a8] sm:$0xff]  ;;  %v1636_v9 = vld [vmem:[%s5753_s26 + $0x200] sm:$0xff] }
  0xef   : > { %v5969_v18 = vpop.permute.xlu0 %873 }
  0xf0   : > { %1841 = vperm.xlu0 %5336, %v1651_v7   ;;  %5208 = vmatprep.subr.bf16.mxu0 %v957_v10 }
  0xf1   : > { %1119 = vperm.xlu1 %5338, %v1013_v14   ;;  %v629_v19 = vpop.permute.xlu1 %628  ;;  %5209 = vmatpush3.bf16.msra.mxu0 %v957_v10  ;;  %v587_v10 = vmul.f32 %v5876_v15, %v5965_v6 }
  0xf2   : > { %v671_v7 = vmul.f32 %v5873_v12, %v629_v19 }
  0xf3   : > { %v5976_v26 = vpop.permute.xlu0 %888 }
  0xf4   : > { %1761 = vperm.xlu0 %5336, %v1635_v20   ;;  %v687_v19 = vadd.f32 %v671_v7, %v587_v10 }
  0xf5   : > { %1129 = vperm.xlu1 %5338, %v1015_v25  }
  0xf6   : > { %v729_v31 = vpop.permute.xlu1 %728 }
  0xf7   : > { %v5981_v36 = vpop.permute.xlu0 %1034  ;;  %v771_v14 = vmul.f32 %v5878_v16, %v729_v31  ;;  %v688_v31 = vadd.f32 %v672_v21, %v588_v63  ;;  %v1681_v21 = vld [vmem:[%s5753_s26 + $0x368] sm:$0xff]  ;;  %v590_v63 = vmul.f32 %v5876_v15, %v5935_v35 }
  0xf8   : > { %1931 = vperm.xlu0 %5336, %v1669_v28   ;;  %v1620_v28 = vld [vmem:[%s5753_s26 + $0x180] sm:$0xff] }
  0xf9   : > { %1139 = vperm.xlu1 %5338, %v1017_v34   ;;  %v787_v6 = vadd.f32 %v771_v14, %v687_v19 }
  0xfa   : > { %v733_v39 = vpop.permute.xlu1 %732 }
  0xfb   : > { %v5990_v42 = vpop.permute.xlu0 %1044  ;;  %v772_v34 = vmul.f32 %v5878_v16, %v733_v39  ;;  %v899_v22 = vadd.f32 %v5947_v41, %v787_v6  ;;  %v1665_v6 = vld [vmem:[%s5753_s26 + $0x2e8] sm:$0xff] }
  0xfc   : > { %1851 = vperm.xlu0 %5336, %v1653_v13  }
  0xfd   : > { %1149 = vperm.xlu1 %5338, %v1019_v40   ;;  %v788_v13 = vadd.f32 %v772_v34, %v688_v31  ;;  %v931_v39 = vmul.f32 0.01, %v899_v22  ;;  %vm915_vm8 = vcmp.ge.f32.partialorder %v899_v22, 0.0 }
  0xff   : > { %v5995_v46 = vpop.permute.xlu0 %1054  ;;  %v849_v48 = vpop.permute.xlu1 %848  ;;  %v947_v51 = vsel %vm915_vm8, %v899_v22, %v931_v39  ;;  %v1683_v22 = vld [vmem:[%s5753_s26 + $0x378] sm:$0xff]  ;;  %v1646_v39 = vld [vmem:[%s5753_s26 + $0x250] sm:$0xff] }
 0x100   : > { %v898_v33 = vadd.f32 %v849_v48, %v786_v17  ;;  %1941 = vperm.xlu0 %5336, %v1671_v52   ;;  %v1661_v17 = vld [vmem:[%s5753_s26 + $0x2c8] sm:$0xff]  ;;  %v1640_v48 = vld [vmem:[%s5753_s26 + $0x220] sm:$0xff] }
 0x101   : > { %1159 = vperm.xlu1 %5338, %v1021_v23  }
 0x102   : > { %vm914_vm7 = vcmp.ge.f32.partialorder %v898_v33, 0.0  ;;  %v930_v53 = vmul.f32 0.01, %v898_v33 }
 0x103   : > { %v5999_v54 = vpop.permute.xlu0 %1064  ;;  %v6001_v56 = vpop.permute.xlu1 %547 }
 0x104   : > { %1861 = vperm.xlu0 %5336, %v1655_v50   ;;  %v946_v59 = vsel %vm914_vm7, %v898_v33, %v930_v53  ;;  %v589_v7 = vmul.f32 %v5876_v15, %v6001_v56  ;;  %v1626_v56 = vld [vmem:[%s5753_s26 + $0x1b0] sm:$0xff] }
 0x105   : > { %1169 = vperm.xlu1 %5338, %v1023_v29   ;;  %v958_v61 = vpack.c.bf16 %v946_v59, %v945_v24  ;;  %v1679_v29 = vld [vmem:[%s5753_s26 + $0x358] sm:$0xff]  ;;  %v1624_v24 = vld [vmem:[%s5753_s26 + $0x1a0] sm:$0xff] }
 0x107   : > { %v6005_v3 = vpop.permute.xlu0 %1074  ;;  %5210 = vmatprep.subr.bf16.mxu0 %v958_v61 }
 0x108   : > { %1951 = vperm.xlu0 %5336, %v1673_v45   ;;  %v637_v5 = vpop.permute.xlu1 %636  ;;  %5211 = vmatpush3.bf16.msra.mxu0 %v958_v61 }
 0x109   : > { %1179 = vperm.xlu1 %5338, %v1025_v62   ;;  %v673_v61 = vmul.f32 %v5873_v12, %v637_v5  ;;  %v1663_v62 = vld [vmem:[%s5753_s26 + $0x2d8] sm:$0xff]  ;;  %v674_v5 = vmul.f32 %v5873_v12, %v5852_v60 }
 0x10b   : > { %v6013_v20 = vpop.permute.xlu0 %1084  ;;  %v689_v10 = vadd.f32 %v673_v61, %v589_v7  ;;  %v690_v31 = vadd.f32 %v674_v5, %v590_v63  ;;  %v2902_v7 = vld [vmem:[%s5753_s26 + $0x388] sm:$0xff]  ;;  %v676_v5 = vmul.f32 %v5873_v12, %v5866_v4  ;;  %v2920_v63 = vld [vmem:[%s5753_s26 + $0x418] sm:$0xff] }
 0x10c   : > { %1871 = vperm.xlu0 %5336, %v1657_v8  }
 0x10d   : > { %1766 = vperm.xlu1 %5338, %v1636_v9   ;;  %v737_v25 = vpop.permute.xlu1 %736  ;;  %v1642_v9 = vld [vmem:[%s5753_s26 + $0x230] sm:$0xff] }
 0x10e   : > { %v773_v8 = vmul.f32 %v5878_v16, %v737_v25 }
 0x10f   : > { %v6021_v30 = vpop.permute.xlu0 %1094 }
 0x110   : > { %1961 = vperm.xlu0 %5336, %v1675_v27   ;;  %v789_v19 = vadd.f32 %v773_v8, %v689_v10  ;;  %v1648_v8 = vld [vmem:[%s5753_s26 + $0x260] sm:$0xff] }
 0x111   : > { %1686 = vperm.xlu1 %5338, %v1620_v28   ;;  %v741_v43 = vpop.permute.xlu1 %740 }
 0x112   : > { %v774_v25 = vmul.f32 %v5878_v16, %v741_v43  ;;  %v901_v34 = vadd.f32 %v5959_v57, %v789_v19 }
 0x113   : > { %v6027_v37 = vpop.permute.xlu0 %1104 }
 0x114   : > { %1881 = vperm.xlu0 %5336, %v1659_v55   ;;  %v1644_v55 = vld [vmem:[%s5753_s26 + $0x240] sm:$0xff]  ;;  %v790_v35 = vadd.f32 %v774_v25, %v690_v31  ;;  %v933_v43 = vmul.f32 0.01, %v901_v34  ;;  %vm917_vm10 = vcmp.ge.f32.partialorder %v901_v34, 0.0 }
 0x115   : > { %1776 = vperm.xlu1 %5338, %v1638_v32  }
 0x116   : > { %v859_v40 = vpop.permute.xlu1 %858 }
 0x117   : > { %v900_v49 = vadd.f32 %v859_v40, %v788_v13  ;;  %v6031_v52 = vpop.permute.xlu0 %1114 }
 0x118   : > { %1971 = vperm.xlu0 %5336, %v1677_v38   ;;  %v1628_v38 = vld [vmem:[%s5753_s26 + $0x1c0] sm:$0xff] }
 0x119   : > { %vm916_vm9 = vcmp.ge.f32.partialorder %v900_v49, 0.0  ;;  %v932_v41 = vmul.f32 0.01, %v900_v49  ;;  %1696 = vperm.xlu1 %5338, %v1622_v44   ;;  %v1667_v44 = vld [vmem:[%s5753_s26 + $0x2f8] sm:$0xff] }
 0x11a   : > { %v6034_v23 = vpop.permute.xlu1 %557 }
 0x11b   : > { %v6037_v33 = vpop.permute.xlu0 %1124  ;;  %v948_v50 = vsel %vm916_vm9, %v900_v49, %v932_v41  ;;  %v949_v41 = vsel %vm917_vm10, %v901_v34, %v933_v43  ;;  %v591_v61 = vmul.f32 %v5876_v15, %v6034_v23  ;;  %v592_v23 = vmul.f32 %v5876_v15, %v5955_v47  ;;  %v2904_v34 = vld [vmem:[%s5753_s26 + $0x398] sm:$0xff] }
 0x11c   : > { %1891 = vperm.xlu0 %5336, %v1661_v17   ;;  %v959_v53 = vpack.c.bf16 %v948_v50, %v947_v51  ;;  %v2918_v51 = vld [vmem:[%s5753_s26 + $0x408] sm:$0xff] }
 0x11d   : > { %1786 = vperm.xlu1 %5338, %v1640_v48   ;;  %v692_v31 = vadd.f32 %v676_v5, %v592_v23  ;;  %v5347_v23 = vld [vmem:[%s5723_s18 + $0x8] sm:$0xff]  }
 0x11e   : > { %5212 = vmatprep.subr.bf16.mxu0 %v959_v53 }
 0x11f   : > { %v645_v59 = vpop.permute.xlu1 %644  ;;  %5213 = vmatpush3.bf16.msra.mxu0 %v959_v53  ;;  %v6042_v45 = vpop.permute.xlu0 %1134  ;;  %v1630_v53 = vld [vmem:[%s5753_s26 + $0x1d0] sm:$0xff] }
 0x120   : > { %1981 = vperm.xlu0 %5336, %v1679_v29   ;;  %v675_v29 = vmul.f32 %v5873_v12, %v645_v59  ;;  %v594_v59 = vmul.f32 %v5876_v15, %v5963_v58 }
 0x121   : > { %1706 = vperm.xlu1 %5338, %v1624_v24  }
 0x123   : > { %v6054_v27 = vpop.permute.xlu0 %1144 }
 0x124   : > { %1901 = vperm.xlu0 %5336, %v1663_v62   ;;  %v745_v14 = vpop.permute.xlu1 %744 }
 0x125   : > { %1796 = vperm.xlu1 %5338, %v1642_v9   ;;  %v775_v62 = vmul.f32 %v5878_v16, %v745_v14  ;;  %v691_v9 = vadd.f32 %v675_v29, %v591_v61  ;;  %v1668_v29 = vld [vmem:[%s5753_s26 + $0x300] sm:$0xff] }
 0x127   : > { %v6061_v60 = vpop.permute.xlu0 %1154  ;;  %v791_v14 = vadd.f32 %v775_v62, %v691_v9 }
 0x128   : > { %1991 = vperm.xlu0 %5336, %v1681_v21   ;;  %v749_v28 = vpop.permute.xlu1 %748  ;;  %v678_v21 = vmul.f32 %v5873_v12, %v5871_v11 }
 0x129   : > { %1716 = vperm.xlu1 %5338, %v1626_v56   ;;  %v1632_v56 = vld [vmem:[%s5753_s26 + $0x1e0] sm:$0xff]  ;;  %v776_v11 = vmul.f32 %v5878_v16, %v749_v28  ;;  %v903_v4 = vadd.f32 %v5969_v18, %v791_v14  ;;  %v2908_v14 = vld [vmem:[%s5753_s26 + $0x3b8] sm:$0xff] }
 0x12b   : > { %v6066_v49 = vpop.permute.xlu0 %1164  ;;  %vm919_vm12 = vcmp.ge.f32.partialorder %v903_v4, 0.0 }
 0x12c   : > { %1911 = vperm.xlu0 %5336, %v1665_v6   ;;  %v694_v6 = vadd.f32 %v678_v21, %v594_v59  ;;  %v1652_v21 = vld [vmem:[%s5753_s26 + $0x280] sm:$0xff] }
 0x12d   : > { %1806 = vperm.xlu1 %5338, %v1644_v55   ;;  %v869_v32 = vpop.permute.xlu1 %868 }
 0x12e   : > { %v902_v13 = vadd.f32 %v869_v32, %v790_v35  ;;  %v1650_v35 = vld [vmem:[%s5753_s26 + $0x270] sm:$0xff] }
 0x12f   : > { %v6072_v24 = vpop.permute.xlu0 %1174 }
 0x130   : > { %vm918_vm11 = vcmp.ge.f32.partialorder %v902_v13, 0.0  ;;  %v934_v40 = vmul.f32 0.01, %v902_v13  ;;  %2001 = vperm.xlu0 %5336, %v1683_v22   ;;  %v792_v22 = vadd.f32 %v776_v11, %v692_v31 }
 0x131   : > { %1726 = vperm.xlu1 %5338, %v1628_v38   ;;  %v568_v57 = vpop.permute.xlu1 %567 }
 0x132   : > { %v950_v17 = vsel %vm918_vm11, %v902_v13, %v934_v40  ;;  %v593_v32 = vmul.f32 %v5876_v15, %v568_v57 }
 0x133   : > { %v960_v48 = vpack.c.bf16 %v950_v17, %v949_v41  ;;  %v6088_v19 = vpop.permute.xlu0 %1184  ;;  %v2906_v17 = vld [vmem:[%s5753_s26 + $0x3a8] sm:$0xff] }
 0x134   : > { %1921 = vperm.xlu0 %5336, %v1667_v44   ;;  %v935_v44 = vmul.f32 0.01, %v903_v4 }
 0x135   : > { %1816 = vperm.xlu1 %5338, %v1646_v39   ;;  %5214 = vmatprep.subr.bf16.mxu0 %v960_v48  ;;  %v1634_v39 = vld [vmem:[%s5753_s26 + $0x1f0] sm:$0xff] }
 0x136   : > { %v653_v50 = vpop.permute.xlu1 %652  ;;  %5215 = vmatpush3.bf16.msra.mxu0 %v960_v48  ;;  %v951_v48 = vsel %vm919_vm12, %v903_v4, %v935_v44  ;;  %v5349_v4 = vld [vmem:[%s5723_s18 + $0x18] sm:$0xff]   ;;  %v1674_v44 = vld [vmem:[%s5753_s26 + $0x330] sm:$0xff] }
 0x137   : > { %v677_v47 = vmul.f32 %v5873_v12, %v653_v50  ;;  %v6099_v13 = vpop.permute.xlu0 %1771  ;;  %v2922_v12 = vld [vmem:[%s5753_s26 + $0x428] sm:$0xff] }
 0x138   : > { %3020 = vperm.xlu0 %5336, %v2918_v51   ;;  %7186 = vst [vmem:[#allocation2_spill] sm:$0xff] %v6099_v13  ;;  %v3869_v13 = vld [vmem:[%s5753_s26 + $0x4b0] sm:$0xff] }
 0x139   : > { %1736 = vperm.xlu1 %5338, %v1630_v53   ;;  %v693_v43 = vadd.f32 %v677_v47, %v593_v32  ;;  %v2910_v47 = vld [vmem:[%s5753_s26 + $0x3c8] sm:$0xff] }
 0x13b   : > { %v753_v10 = vpop.permute.xlu1 %752 }
 0x13c   : > { %2940 = vperm.xlu0 %5336, %v2902_v7   ;;  %v777_v28 = vmul.f32 %v5878_v16, %v753_v10  ;;  %v2924_v7 = vld [vmem:[%s5753_s26 + $0x438] sm:$0xff] }
 0x13d   : > { %1826 = vperm.xlu1 %5338, %v1648_v8  }
 0x13e   : > { %v793_v57 = vadd.f32 %v777_v28, %v693_v43  ;;  %v2928_v28 = vld [vmem:[%s5753_s26 + $0x458] sm:$0xff]  ;;  %v5351_v43 = vld [vmem:[%s5723_s18 + $0x28] sm:$0xff]  }
 0x13f   : > { %v757_v25 = vpop.permute.xlu1 %756 }
 0x140   : > { %v778_v58 = vmul.f32 %v5878_v16, %v757_v25  ;;  %3030 = vperm.xlu0 %5336, %v2920_v63   ;;  %v5348_v63 = vld [vmem:[%s5723_s18 + $0x10] sm:$0xff]   ;;  %v2926_v25 = vld [vmem:[%s5753_s26 + $0x448] sm:$0xff] }
 0x141   : > { %1746 = vperm.xlu1 %5338, %v1632_v56   ;;  %v1670_v56 = vld [vmem:[%s5753_s26 + $0x310] sm:$0xff] }
 0x142   : > { %v794_v55 = vadd.f32 %v778_v58, %v694_v6  ;;  %v1654_v58 = vld [vmem:[%s5753_s26 + $0x290] sm:$0xff] }
 0x144   : > { %2950 = vperm.xlu0 %5336, %v2904_v34   ;;  %v879_v38 = vpop.permute.xlu1 %878  ;;  %v906_v18 = vadd.f32 %v5976_v26, %v794_v55  ;;  %v6105_v26 = vpop.permute.xlu0 %1691  ;;  %v5350_v34 = vld [vmem:[%s5723_s18 + $0x20] sm:$0xff]  }
 0x145   : > { %v904_v40 = vadd.f32 %v879_v38, %v792_v22  ;;  %1836 = vperm.xlu1 %5338, %v1650_v35   ;;  %v1672_v55 = vld [vmem:[%s5753_s26 + $0x320] sm:$0xff] }
 0x146   : > { %v938_v50 = vmul.f32 0.01, %v906_v18  ;;  %vm922_vm14 = vcmp.ge.f32.partialorder %v906_v18, 0.0  ;;  %v1656_v22 = vld [vmem:[%s5753_s26 + $0x2a0] sm:$0xff] }
 0x147   : > { %vm920_vm13 = vcmp.ge.f32.partialorder %v904_v40, 0.0  ;;  %v936_v15 = vmul.f32 0.01, %v904_v40 }
 0x148   : > { %3040 = vperm.xlu0 %5336, %v2922_v12   ;;  %v884_v16 = vpop.permute.xlu1 %883  ;;  %v954_v9 = vsel %vm922_vm14, %v906_v18, %v938_v50  ;;  %v6112_v59 = vpop.permute.xlu0 %1781  ;;  %v2912_v18 = vld [vmem:[%s5753_s26 + $0x3d8] sm:$0xff]  ;;  %v1676_v50 = vld [vmem:[%s5753_s26 + $0x340] sm:$0xff] }
 0x149   : > { %v905_v41 = vadd.f32 %v884_v16, %v793_v57  ;;  %1756 = vperm.xlu1 %5338, %v1634_v39   ;;  %v952_v51 = vsel %vm920_vm13, %v904_v40, %v936_v15  ;;  %7187 = vst [vmem:[#allocation3_spill] sm:$0xff] %v6112_v59  ;;  %v5352_v40 = vld [vmem:[%s5723_s18 + $0x30] sm:$0xff]   ;;  %v2930_v15 = vld [vmem:[%s5753_s26 + $0x468] sm:$0xff] }
 0x14a   : > { %v961_v53 = vpack.c.bf16 %v952_v51, %v951_v48  ;;  %v1658_v57 = vld [vmem:[%s5753_s26 + $0x2b0] sm:$0xff]  ;;  %v2914_v48 = vld [vmem:[%s5753_s26 + $0x3e8] sm:$0xff]  ;;  %v5354_v51 = vld [vmem:[%s5723_s18 + $0x40] sm:$0xff]  }
 0x14b   : > { %vm921_vm15 = vcmp.ge.f32.partialorder %v905_v41, 0.0  ;;  %v937_v61 = vmul.f32 0.01, %v905_v41  ;;  %v2915_v59 = vld [vmem:[%s5753_s26 + $0x3f0] sm:$0xff] }
 0x14c   : > { %2960 = vperm.xlu0 %5336, %v2906_v17   ;;  %v6108_v62 = vpop.permute.xlu1 %1029  ;;  %5216 = vmatprep.subr.bf16.mxu0 %v961_v53  ;;  %v6123_v6 = vpop.permute.xlu0 %1701  ;;  %v5353_v17 = vld [vmem:[%s5723_s18 + $0x38] sm:$0xff]  }
 0x14d   : > { %1926 = vperm.xlu1 %5338, %v1668_v29   ;;  %5217 = vmatpush3.bf16.msra.mxu0 %v961_v53  ;;  %v953_v8 = vsel %vm921_vm15, %v905_v41, %v937_v61  ;;  %v2932_v29 = vld [vmem:[%s5753_s26 + $0x478] sm:$0xff] }
 0x14e   : > { %v962_v10 = vpack.c.bf16 %v954_v9, %v953_v8  ;;  %v5355_v9 = vld [vmem:[%s5723_s18 + $0x48] sm:$0xff]  }
 0x150   : > { %3050 = vperm.xlu0 %5336, %v2924_v7   ;;  %v6114_v5 = vpop.permute.xlu1 %1039  ;;  %5218 = vmatprep.subr.bf16.mxu0 %v962_v10  ;;  %v6132_v35 = vpop.permute.xlu0 %1791  ;;  %v1660_v7 = vld [vmem:[%s5753_s26 + $0x2c0] sm:$0xff] }
 0x151   : > { %1846 = vperm.xlu1 %5338, %v1652_v21   ;;  %5219 = vmatpush3.bf16.msra.mxu0 %v962_v10  ;;  %7188 = vst [vmem:[#allocation4_spill] sm:$0xff] %v6132_v35  ;;  %v2916_v10 = vld [vmem:[%s5753_s26 + $0x3f8] sm:$0xff]  ;;  %v5356_v21 = vld [vmem:[%s5723_s18 + $0x50] sm:$0xff]   ;;  %v6290_v35 = vld [vmem:[%s6219_s22 + $0x20] sm:$0xff] }
 0x154   : > { %2970 = vperm.xlu0 %5336, %v2908_v14   ;;  %v6120_v11 = vpop.permute.xlu1 %1049  ;;  %5221 = vmatmul.mubr.bf16.vlgmr.msra.gmra.mrb[0].mxu0 %v5347_v23  ;;  %v6143_v12 = vpop.permute.xlu0 %1711  ;;  %v1678_v23 = vld [vmem:[%s5753_s26 + $0x350] sm:$0xff] }
 0x155   : > { %1936 = vperm.xlu1 %5338, %v1670_v56   ;;  %5224 = vmatprep.mubr.bf16.mxu0 %v5348_v63  ;;  %7189 = vst [vmem:[#allocation5_spill] sm:$0xff] %v6143_v12  ;;  %v3864_v56 = vld [vmem:[%s5753_s26 + $0x488] sm:$0xff] }
 0x158   : > { %3060 = vperm.xlu0 %5336, %v2926_v25   ;;  %v6126_v31 = vpop.permute.xlu1 %1059  ;;  %v6150_v16 = vpop.permute.xlu0 %1801  ;;  %v1662_v25 = vld [vmem:[%s5753_s26 + $0x2d0] sm:$0xff] }
 0x159   : > { %1856 = vperm.xlu1 %5338, %v1654_v58   ;;  %7190 = vst [vmem:[#allocation6_spill] sm:$0xff] %v6150_v16 }
 0x15c   : > { %2980 = vperm.xlu0 %5336, %v2910_v47   ;;  %v6134_v32 = vpop.permute.xlu1 %1069  ;;  %5225 = vmatmul.mubr.bf16.gmra.mrb[4].mxu0 %v5349_v4  ;;  %v6161_v61 = vpop.permute.xlu0 %1721  ;;  %v5357_v4 = vld [vmem:[%s5723_s18 + $0x58] sm:$0xff]  }
 0x15d   : > { %1946 = vperm.xlu1 %5338, %v1672_v55   ;;  %5228 = vmatprep.mubr.bf16.mxu0 %v5350_v34  ;;  %7191 = vst [vmem:[#allocation7_spill] sm:$0xff] %v6161_v61  ;;  %v3866_v47 = vld [vmem:[%s5753_s26 + $0x498] sm:$0xff]  ;;  %v5358_v34 = vld [vmem:[%s5723_s18 + $0x60] sm:$0xff]  }
 0x160   : > { %3070 = vperm.xlu0 %5336, %v2928_v28   ;;  %v6138_v38 = vpop.permute.xlu1 %1079  ;;  %v6170_v14 = vpop.permute.xlu0 %1811  ;;  %v1680_v28 = vld [vmem:[%s5753_s26 + $0x360] sm:$0xff] }
 0x161   : > { %1866 = vperm.xlu1 %5338, %v1656_v22   ;;  %7192 = vst [vmem:[#allocation8_spill] sm:$0xff] %v6170_v14  ;;  %v3868_v22 = vld [vmem:[%s5753_s26 + $0x4a8] sm:$0xff]  ;;  %v7208_v14 = vmov 1  }
 0x164   : > { %2990 = vperm.xlu0 %5336, %v2912_v18   ;;  %v6146_v39 = vpop.permute.xlu1 %1089  ;;  %5229 = vmatmul.mubr.bf16.gmra.mrb[8].mxu0 %v5351_v43  ;;  %v6181_v55 = vpop.permute.xlu0 %1731  ;;  %v1664_v18 = vld [vmem:[%s5753_s26 + $0x2e0] sm:$0xff] }
 0x165   : > { %1956 = vperm.xlu1 %5338, %v1674_v44   ;;  %5232 = vmatprep.mubr.bf16.mxu0 %v5352_v40  ;;  %7193 = vst [vmem:[#allocation9_spill] sm:$0xff] %v6181_v55  ;;  %v5359_v44 = vld [vmem:[%s5723_s18 + $0x68] sm:$0xff]  }
 0x168   : > { %3080 = vperm.xlu0 %5336, %v2930_v15   ;;  %v6152_v41 = vpop.permute.xlu1 %1099  ;;  %v6188_v40 = vpop.permute.xlu0 %1821  ;;  %v3870_v15 = vld [vmem:[%s5753_s26 + $0x4b8] sm:$0xff] }
 0x169   : > { %1876 = vperm.xlu1 %5338, %v1658_v57   ;;  %7194 = vst [vmem:[#allocation10_spill] sm:$0xff] %v6188_v40  ;;  %v5360_v57 = vld [vmem:[%s5723_s18 + $0x70] sm:$0xff]  }
 0x16a   : > { %v2911_v40 = vld [vmem:[%s5753_s26 + $0x3d0] sm:$0xff] }
 0x16c   : > { %3000 = vperm.xlu0 %5336, %v2914_v48   ;;  %v6158_v53 = vpop.permute.xlu1 %1109  ;;  %5233 = vmatmul.mubr.bf16.gmra.mrb[12].mxu0 %v5353_v17  ;;  %v1682_v17 = vld [vmem:[%s5753_s26 + $0x370] sm:$0xff] }
 0x16d   : > { %1966 = vperm.xlu1 %5338, %v1676_v50   ;;  %5236 = vmatprep.mubr.bf16.mxu0 %v5354_v51  ;;  %v3872_v51 = vld [vmem:[%s5753_s26 + $0x4c8] sm:$0xff]  ;;  %v6197_v50 = vpop.permute.xlu0 %1741 }
 0x16e   : > { %7195 = vst [vmem:[#allocation11_spill] sm:$0xff] %v6197_v50 }
 0x170   : > { %3090 = vperm.xlu0 %5336, %v2932_v29   ;;  %v6164_v8 = vpop.permute.xlu1 %1119  ;;  %v1666_v29 = vld [vmem:[%s5753_s26 + $0x2f0] sm:$0xff] }
 0x171   : > { %1886 = vperm.xlu1 %5338, %v1660_v7   ;;  %v5361_v7 = vld [vmem:[%s5723_s18 + $0x78] sm:$0xff]  }
 0x174   : > { %3010 = vperm.xlu0 %5336, %v2916_v10   ;;  %v6172_v63 = vpop.permute.xlu1 %1129  ;;  %5237 = vmatmul.mubr.bf16.gmra.mrb[16].mxu0 %v5355_v9  ;;  %v3874_v9 = vld [vmem:[%s5753_s26 + $0x4d8] sm:$0xff] }
 0x175   : > { %1976 = vperm.xlu1 %5338, %v1678_v23   ;;  %5240 = vmatprep.mubr.bf16.mxu0 %v5356_v21  ;;  %v2917_v21 = vld [vmem:[%s5753_s26 + $0x400] sm:$0xff]  ;;  %v6205_v23 = vpop.permute.xlu0 %1831 }
 0x176   : > { %7196 = vst [vmem:[#allocation12_spill] sm:$0xff] %v6205_v23 }
 0x178   : > { %3886 = vperm.xlu0 %5336, %v3864_v56   ;;  %v6176_v58 = vpop.permute.xlu1 %1139  ;;  %v3876_v56 = vld [vmem:[%s5753_s26 + $0x4e8] sm:$0xff] }
 0x179   : > { %1896 = vperm.xlu1 %5338, %v1662_v25   ;;  %v2901_v25 = vld [vmem:[%s5753_s26 + $0x380] sm:$0xff] }
 0x17c   : > { %3896 = vperm.xlu0 %5336, %v3866_v47   ;;  %5241 = vmatmul.mubr.bf16.gmra.mrb[20].mxu0 %v5357_v4  ;;  %v6185_v43 = vpop.permute.xlu1 %1149  ;;  %v3878_v47 = vld [vmem:[%s5753_s26 + $0x4f8] sm:$0xff] }
 0x17d   : > { %1986 = vperm.xlu1 %5338, %v1680_v28   ;;  %5244 = vmatprep.mubr.bf16.mxu0 %v5358_v34  ;;  %v6212_v34 = vpop.permute.xlu0 %1751  ;;  %v2919_v28 = vld [vmem:[%s5753_s26 + $0x410] sm:$0xff] }
 0x17e   : > { %7197 = vst [vmem:[#allocation13_spill] sm:$0xff] %v6212_v34 }
 0x180   : > { %3906 = vperm.xlu0 %5336, %v3868_v22   ;;  %v6194_v48 = vpop.permute.xlu1 %1159  ;;  %v4185_v22 = vld [vmem:[%s6219_s22 + $0x8] sm:$0xff] }
 0x181   : > { %1906 = vperm.xlu1 %5338, %v1664_v18  }
 0x184   : > { %3916 = vperm.xlu0 %5336, %v3870_v15   ;;  %5245 = vmatmul.mubr.bf16.gmra.mrb[24].mxu0 %v5359_v44  ;;  %v6202_v10 = vpop.permute.xlu1 %1169  ;;  %v2903_v44 = vld [vmem:[%s5753_s26 + $0x390] sm:$0xff]  ;;  %v6225_v15 = vpop.permute.xlu0 %1841 }
 0x185   : > { %1996 = vperm.xlu1 %5338, %v1682_v17   ;;  %5248 = vmatprep.mubr.bf16.mxu0 %v5360_v57  ;;  %7199 = vst [vmem:[#allocation15_spill] sm:$0xff] %v6225_v15  ;;  %v6228_v57 = vld [vmem:[%s6219_s22 + $0x18] sm:$0xff]  ;;  %v2921_v17 = vld [vmem:[%s5753_s26 + $0x420] sm:$0xff] }
 0x188   : > { %3926 = vperm.xlu0 %5336, %v3872_v51   ;;  %v6209_v4 = vpop.permute.xlu1 %1179 }
 0x189   : > { %1916 = vperm.xlu1 %5338, %v1666_v29   ;;  %v6235_v29 = vld [vmem:[%s6219_s22 + $0x28] sm:$0xff] }
 0x18c   : > { %3936 = vperm.xlu0 %5336, %v3874_v9   ;;  %5249 = vmatmul.mubr.bf16.gmra.mrb[28].mxu0 %v5361_v7  ;;  %v6222_v18 = vpop.permute.xlu1 %1766  ;;  %v6237_v7 = vpop.permute.xlu0 %1761  ;;  %v2905_v9 = vld [vmem:[%s5753_s26 + $0x3a0] sm:$0xff] }
 0x18d   : > { %3015 = vperm.xlu1 %5338, %v2917_v21   ;;  %7198 = vst [vmem:[#allocation14_spill] sm:$0xff] %v6222_v18  ;;  %7200 = vst [vmem:[#allocation16_spill] sm:$0xff] %v6237_v7  ;;  %v6242_v21 = vld [vmem:[%s6219_s22 + $0x38] sm:$0xff]  ;;  %v6335_v18 = vld [vmem:[%s6219_s22 + $0x50] sm:$0xff] }
 0x190   : > { %3946 = vperm.xlu0 %5336, %v3876_v56   ;;  %v6231_v51 = vpop.permute.xlu1 %1686 }
 0x191   : > { %2935 = vperm.xlu1 %5338, %v2901_v25   ;;  %v2923_v25 = vld [vmem:[%s5753_s26 + $0x430] sm:$0xff] }
 0x194   : > { %3956 = vperm.xlu0 %5336, %v3878_v47   ;;  %v6244_v56 = vpop.permute.xlu1 %1776  ;;  %v6247_v47 = vpop.permute.xlu0 %1931 }
 0x195   : > { %3025 = vperm.xlu1 %5338, %v2919_v28   ;;  %7201 = vst [vmem:[#allocation17_spill] sm:$0xff] %v6244_v56  ;;  %7202 = vst [vmem:[#allocation18_spill] sm:$0xff] %v6247_v47  ;;  %v6251_v28 = vld [vmem:[%s6219_s22 + $0x48] sm:$0xff]  ;;  %v2909_v47 = vld [vmem:[%s5753_s26 + $0x3c0] sm:$0xff] }
 0x198   : > { %4207 = vperm.xlu0 %5336, %v4185_v22   ;;  %v6260_v2 = vpop.permute.xlu0 %1851 }
 0x199   : > { %2945 = vperm.xlu1 %5338, %v2903_v44   ;;  %v2907_v44 = vld [vmem:[%s5753_s26 + $0x3b0] sm:$0xff]  ;;  %7203 = vst [vmem:[#allocation19_spill] sm:$0xff] %v6260_v2 }
 0x19a   : > { %v2927_v2 = vld [vmem:[%s5753_s26 + $0x450] sm:$0xff] }
 0x19c   : > { %4217 = vperm.xlu0 %5336, %v6228_v57   ;;  %v6270_v15 = vpop.permute.xlu0 %1941 }
 0x19d   : > { %3035 = vperm.xlu1 %5338, %v2921_v17   ;;  %v6254_v17 = vpop.permute.xlu1 %1696  ;;  %7205 = vst [vmem:[#allocation21_spill] sm:$0xff] %v6270_v15 }
 0x1a0   : > { %4227 = vperm.xlu0 %5336, %v6235_v29  }
 0x1a1   : > { %2955 = vperm.xlu1 %5338, %v2905_v9   ;;  %v6258_v9 = vld [vmem:[%s6219_s22 + $0x58] sm:$0xff]  ;;  %v6267_v1 = vpop.permute.xlu1 %1786 }
 0x1a2   : > { %7204 = vst [vmem:[#allocation20_spill] sm:$0xff] %v6267_v1  ;;  %v7212_v1 = vmov 2  }
 0x1a4   : > { %4237 = vperm.xlu0 %5336, %v6242_v21  }
 0x1a5   : > { %3045 = vperm.xlu1 %5338, %v2923_v25   ;;  %v6265_v25 = vld [vmem:[%s6219_s22 + $0x68] sm:$0xff]  ;;  %v6277_v23 = vpop.permute.xlu1 %1706 }
 0x1a6   : > { %7206 = vst [vmem:[#allocation22_spill] sm:$0xff] %v6277_v23 }
 0x1a8   : > { %4247 = vperm.xlu0 %5336, %v6251_v28  }
 0x1a9   : > { %2965 = vperm.xlu1 %5338, %v2907_v44   ;;  %v6274_v44 = vld [vmem:[%s6219_s22 + $0x78] sm:$0xff]  ;;  %v6284_v15 = vpop.permute.xlu1 %1796 }
 0x1aa   : > { %7209 = vst [vmem:[#allocation24_spill] sm:$0xff] %v6284_v15  ;;  %v2931_v15 = vld [vmem:[%s5753_s26 + $0x470] sm:$0xff] }
 0x1ac   : > { %4257 = vperm.xlu0 %5336, %v6258_v9  }
 0x1ad   : > { %3055 = vperm.xlu1 %5338, %v2925_v0   ;;  %v6280_v0 = vpop.permute.xlu0 %1861 }
 0x1ae   : > { %7207 = vst [vmem:[#allocation23_spill] sm:$0xff] %v6280_v0  ;;  %v6294_v0 = vpop.permute.xlu1 %1716 }
 0x1af   : > { %7211 = vst [vmem:[#allocation26_spill] sm:$0xff] %v6294_v0 }
 0x1b0   : > { %4267 = vperm.xlu0 %5336, %v6265_v25  }
 0x1b1   : > { %2975 = vperm.xlu1 %5338, %v2909_v47   ;;  %v2929_v47 = vld [vmem:[%s5753_s26 + $0x460] sm:$0xff]  ;;  %v6287_v16 = vpop.permute.xlu0 %1951 }
 0x1b2   : > { %7210 = vst [vmem:[#allocation25_spill] sm:$0xff] %v6287_v16  ;;  %v6300_v16 = vpop.permute.xlu1 %1806 }
 0x1b3   : > { %7214 = vst [vmem:[#allocation28_spill] sm:$0xff] %v6300_v16 }
 0x1b4   : > { %4277 = vperm.xlu0 %5336, %v6274_v44  }
 0x1b5   : > { %3065 = vperm.xlu1 %5338, %v2927_v2   ;;  %v2913_v2 = vld [vmem:[%s5753_s26 + $0x3e0] sm:$0xff] }
 0x1b6   : > { %v6308_v56 = vpop.permute.xlu1 %1726 }
 0x1b7   : > { %7216 = vst [vmem:[#allocation30_spill] sm:$0xff] %v6308_v56 }
 0x1b8   : > { %5340 = vset.pattern.permute.xlu0 %v7208_v14 }
 0x1b9   : > { %2985 = vperm.xlu1 %5338, %v2911_v40   ;;  %4322 = vperm.xlu0 %5340, %v4185_v22   ;;  %v6297_v40 = vpop.permute.xlu0 %1871 }
 0x1ba   : > { %7213 = vst [vmem:[#allocation27_spill] sm:$0xff] %v6297_v40  ;;  %v6311_v40 = vld [vmem:[%s6219_s22 + $0x30] sm:$0xff] }
 0x1bd   : > { %3075 = vperm.xlu1 %5338, %v2929_v47   ;;  %4334 = vperm.xlu0 %5340, %v6290_v35   ;;  %v6304_v47 = vpop.permute.xlu0 %1961 }
 0x1be   : > { %7215 = vst [vmem:[#allocation29_spill] sm:$0xff] %v6304_v47  ;;  %v6317_v47 = vpop.permute.xlu1 %1816 }
 0x1bf   : > { %7218 = vst [vmem:[#allocation32_spill] sm:$0xff] %v6317_v47  ;;  %v3871_v47 = vld [vmem:[%s5753_s26 + $0x4c0] sm:$0xff] }
 0x1c1   : > { %2995 = vperm.xlu1 %5338, %v2913_v2   ;;  %5342 = vset.pattern.permute.xlu0 %v7212_v1  ;;  %v3863_v2 = vld [vmem:[%s5753_s26 + $0x480] sm:$0xff] }
 0x1c2   : > { %4423 = vperm.xlu0 %5342, %v4185_v22   ;;  %v6313_v22 = vpop.permute.xlu0 %1881 }
 0x1c3   : > { %7217 = vst [vmem:[#allocation31_spill] sm:$0xff] %v6313_v22  ;;  %v6328_v22 = vpop.permute.xlu1 %1736 }
 0x1c4   : > { %7220 = vst [vmem:[#allocation34_spill] sm:$0xff] %v6328_v22  ;;  %v6361_v22 = vld [vmem:[%s6219_s22 + $0x70] sm:$0xff] }
 0x1c5   : > { %3085 = vperm.xlu1 %5338, %v2931_v15   ;;  %v3865_v15 = vld [vmem:[%s5753_s26 + $0x490] sm:$0xff] }
 0x1c6   : > { %4435 = vperm.xlu0 %5342, %v6290_v35   ;;  %v6321_v16 = vpop.permute.xlu0 %1971 }
 0x1c7   : > { %7219 = vst [vmem:[#allocation33_spill] sm:$0xff] %v6321_v16  ;;  %v3873_v16 = vld [vmem:[%s5753_s26 + $0x4d0] sm:$0xff] }
 0x1c9   : > { %3005 = vperm.xlu1 %5338, %v2915_v59   ;;  %v3867_v59 = vld [vmem:[%s5753_s26 + $0x4a0] sm:$0xff] }
 0x1ca   : > { %4439 = vperm.xlu0 %5342, %v6235_v29  }
 0x1cd   : > { %3881 = vperm.xlu1 %5338, %v3863_v2   ;;  %v6324_v2 = vld [vmem:[%s6219_s22 + $0x40] sm:$0xff] }
 0x1ce   : > { %4443 = vperm.xlu0 %5342, %v6311_v40  }
 0x1d1   : > { %3891 = vperm.xlu1 %5338, %v3865_v15   ;;  %v6330_v15 = vpop.permute.xlu0 %1891 }
 0x1d2   : > { %4447 = vperm.xlu0 %5342, %v6242_v21   ;;  %7221 = vst [vmem:[#allocation35_spill] sm:$0xff] %v6330_v15 }
 0x1d5   : > { %3901 = vperm.xlu1 %5338, %v3867_v59   ;;  %v6337_v59 = vpop.permute.xlu1 %1826  ;;  %v6341_v7 = vpop.permute.xlu0 %1981 }
 0x1d6   : > { %4451 = vperm.xlu0 %5342, %v6324_v2   ;;  %7222 = vst [vmem:[#allocation36_spill] sm:$0xff] %v6337_v59  ;;  %7223 = vst [vmem:[#allocation37_spill] sm:$0xff] %v6341_v7  ;;  %v3877_v59 = vld [vmem:[%s5753_s26 + $0x4f0] sm:$0xff]  ;;  %v4184_v7 = vld [vmem:[%s6219_s22] sm:$0xff] }
 0x1d9   : > { %3911 = vperm.xlu1 %5338, %v3869_v13   ;;  %v3875_v13 = vld [vmem:[%s5753_s26 + $0x4e0] sm:$0xff]  ;;  %v6345_v15 = vpop.permute.xlu1 %1746  ;;  %v6350_v34 = vpop.permute.xlu0 %1901 }
 0x1da   : > { %4455 = vperm.xlu0 %5342, %v6251_v28   ;;  %7224 = vst [vmem:[#allocation38_spill] sm:$0xff] %v6345_v15  ;;  %7225 = vst [vmem:[#allocation39_spill] sm:$0xff] %v6350_v34  ;;  %v4186_v15 = vld [vmem:[%s6219_s22 + $0x10] sm:$0xff] }
 0x1dd   : > { %3921 = vperm.xlu1 %5338, %v3871_v47   ;;  %v6348_v47 = vld [vmem:[%s6219_s22 + $0x60] sm:$0xff]  ;;  %v6354_v50 = vpop.permute.xlu1 %1836 }
 0x1de   : > { %4459 = vperm.xlu0 %5342, %v6335_v18   ;;  %7226 = vst [vmem:[#allocation40_spill] sm:$0xff] %v6354_v50 }
 0x1e1   : > { %3931 = vperm.xlu1 %5338, %v3873_v16   ;;  %v6358_v16 = vpop.permute.xlu0 %1991  ;;  %v6366_v55 = vpop.permute.xlu1 %1756 }
 0x1e2   : > { %4463 = vperm.xlu0 %5342, %v6258_v9   ;;  %7227 = vst [vmem:[#allocation41_spill] sm:$0xff] %v6358_v16  ;;  %7228 = vst [vmem:[#allocation42_spill] sm:$0xff] %v6366_v55  ;;  %v7231_v16 = vmov 0  }
 0x1e5   : > { %3941 = vperm.xlu1 %5338, %v3875_v13   ;;  %v5364_v13 = vld [vmem:[%s5744_s23 + $0x4] ss:$8 sps:$4 sm:$0xff]   ;;  %v6368_v34 = vpop.permute.xlu0 %1911 }
 0x1e6   : > { %4467 = vperm.xlu0 %5342, %v6348_v47   ;;  %2356 = vmatprep.mubr.bf16.mxu1 %v5364_v13  ;;  %7229 = vst [vmem:[#allocation43_spill] sm:$0xff] %v6368_v34 }
 0x1e9   : > { %3951 = vperm.xlu1 %5338, %v3877_v59   ;;  %v6372_v59 = vpop.permute.xlu1 %1926 }
 0x1ea   : > { %4471 = vperm.xlu0 %5342, %v6265_v25   ;;  %7230 = vst [vmem:[#allocation44_spill] sm:$0xff] %v6372_v59 }
 0x1ed   : > { %4202 = vperm.xlu1 %5338, %v4184_v7   ;;  %v6376_v50 = vpop.permute.xlu1 %1846 }
 0x1ee   : > { %4475 = vperm.xlu0 %5342, %v6361_v22   ;;  %7232 = vst [vmem:[#allocation45_spill] sm:$0xff] %v6376_v50 }
 0x1f1   : > { %4212 = vperm.xlu1 %5338, %v4186_v15   ;;  %v6380_v13 = vpop.permute.xlu1 %1936 }
 0x1f2   : > { %4479 = vperm.xlu0 %5342, %v6274_v44   ;;  %7233 = vst [vmem:[#allocation46_spill] sm:$0xff] %v6380_v13 }
 0x1f5   : > { %4222 = vperm.xlu1 %5338, %v6290_v35   ;;  %v6383_v34 = vpop.permute.xlu1 %1856 }
 0x1f6   : > { %5345 = vset.pattern.permute.xlu0 %v7231_v16  ;;  %7234 = vst [vmem:[#allocation47_spill] sm:$0xff] %v6383_v34 }
 0x1f9   : > { %4232 = vperm.xlu1 %5338, %v6311_v40   ;;  %v6387_v35 = vpop.permute.xlu1 %1946 }
 0x1fa   : > { %7235 = vst [vmem:[#allocation48_spill] sm:$0xff] %v6387_v35 }
 0x1fd   : > { %4242 = vperm.xlu1 %5338, %v6324_v2   ;;  %v6389_v59 = vpop.permute.xlu1 %1866 }
 0x1fe   : > { %7236 = vst [vmem:[#allocation49_spill] sm:$0xff] %v6389_v59 }
 0x201   : > { %4252 = vperm.xlu1 %5338, %v6335_v18   ;;  %v6392_v50 = vpop.permute.xlu1 %1956 }
 0x202   : > { %7237 = vst [vmem:[#allocation50_spill] sm:$0xff] %v6392_v50 }
 0x205   : > { %4262 = vperm.xlu1 %5338, %v6348_v47   ;;  %v6395_v13 = vpop.permute.xlu1 %1876 }
 0x206   : > { %7238 = vst [vmem:[#allocation51_spill] sm:$0xff] %v6395_v13 }
 0x209   : > { %4272 = vperm.xlu1 %5338, %v6361_v22   ;;  %v6398_v34 = vpop.permute.xlu1 %1966 }
 0x20a   : > { %7239 = vst [vmem:[#allocation52_spill] sm:$0xff] %v6398_v34 }
 0x20d   : > { %5339 = vset.pattern.permute.xlu1 %v7208_v14  ;;  %v6406_v34 = vpop.permute.xlu1 %1886 }
 0x20e   : > { %4318 = vperm.xlu1 %5339, %v4184_v7   ;;  %7240 = vst [vmem:[#allocation53_spill] sm:$0xff] %v6406_v34 }
 0x211   : > { %v6412_v34 = vpop.permute.xlu1 %1976 }
 0x212   : > { %4326 = vperm.xlu1 %5339, %v4186_v15  }
 0x216   : > { %4330 = vperm.xlu1 %5339, %v6228_v57  }
 0x21a   : > { %5341 = vset.pattern.permute.xlu1 %v7212_v1 }
 0x21b   : > { %4419 = vperm.xlu1 %5341, %v4184_v7  }
 0x21f   : > { %4427 = vperm.xlu1 %5341, %v4186_v15  }
 0x223   : > { %4431 = vperm.xlu1 %5341, %v6228_v57  }
 0x227   : > { %v5222_v55 = vpop.f32.mrb[0].mxu0  ;;  %5343 = vset.pattern.permute.xlu1 %v7208_v14 }
 0x228   : > { %v1326_v35 = vadd.f32 %v5222_v55, %v6114_v5  ;;  %v1317_v59 = vpop.f32.mrb[1].mxu0  ;;  %4338 = vperm.xlu1 %5343, %v6235_v29  }
 0x229   : > { %v1318_v50 = vadd.f32 %v1317_v59, %v6108_v62  ;;  %v5223_v56 = vpop.f32.mrb[2].mxu0 }
 0x22a   : > { %v1478_v1 = vmul.f32 0.01, %v1326_v35  ;;  %v1329_v7 = vadd.f32 %v5223_v56, %v5990_v42  ;;  %v1320_v15 = vpop.f32.mrb[3].mxu0  ;;  %vm1446_vm0 = vcmp.ge.f32.partialorder %v1326_v35, 0.0 }
 0x22b   : > { %v1476_v13 = vmul.f32 0.01, %v1318_v50  ;;  %v1321_v57 = vadd.f32 %v1320_v15, %v5981_v36  ;;  %vm1444_vm2 = vcmp.ge.f32.partialorder %v1318_v50, 0.0 }
 0x22c   : > { %vm1447_vm1 = vcmp.ge.f32.partialorder %v1329_v7, 0.0  ;;  %v1479_v14 = vmul.f32 0.01, %v1329_v7  ;;  %4342 = vperm.xlu1 %5343, %v6311_v40   ;;  %v1510_v55 = vsel %vm1446_vm0, %v1326_v35, %v1478_v1 }
 0x22d   : > { %v1477_v5 = vmul.f32 0.01, %v1321_v57  ;;  %vm1445_vm3 = vcmp.ge.f32.partialorder %v1321_v57, 0.0  ;;  %v1508_v59 = vsel %vm1444_vm2, %v1318_v50, %v1476_v13 }
 0x22e   : > { %v1511_v62 = vsel %vm1447_vm1, %v1329_v7, %v1479_v14  ;;  %v6419_v7 = vpop.permute.xlu1 %1896 }
 0x22f   : > { %v5226_v29 = vpop.f32.mrb[4].mxu0  ;;  %v1509_v61 = vsel %vm1445_vm3, %v1321_v57, %v1477_v5  ;;  %v1541_v42 = vpack.c.bf16 %v1511_v62, %v1510_v55 }
 0x230   : > { %v1342_v56 = vadd.f32 %v5226_v29, %v6126_v31  ;;  %v1333_v0 = vpop.f32.mrb[5].mxu0  ;;  %v1540_v12 = vpack.c.bf16 %v1509_v61, %v1508_v59  ;;  %4346 = vperm.xlu1 %5343, %v6242_v21  }
 0x231   : > { %v1334_v36 = vadd.f32 %v1333_v0, %v6120_v11  ;;  %v5227_v15 = vpop.f32.mrb[6].mxu0 }
 0x232   : > { %v1482_v40 = vmul.f32 0.01, %v1342_v56  ;;  %v1345_v23 = vadd.f32 %v5227_v15, %v5999_v54  ;;  %v1336_v35 = vpop.f32.mrb[7].mxu0  ;;  %2325 = vmatpush1.bf16.msra.mxu1 %v1540_v12  ;;  %vm1450_vm4 = vcmp.ge.f32.partialorder %v1342_v56, 0.0 }
 0x233   : > { %v1480_v50 = vmul.f32 0.01, %v1334_v36  ;;  %v1337_v13 = vadd.f32 %v1336_v35, %v5995_v46  ;;  %2326 = vmatprep.subr.bf16.mxu1 %v7231_v16  ;;  %vm1448_vm5 = vcmp.ge.f32.partialorder %v1334_v36, 0.0 }
 0x234   : > { %vm1451_vm6 = vcmp.ge.f32.partialorder %v1345_v23, 0.0  ;;  %v1483_v31 = vmul.f32 0.01, %v1345_v23  ;;  %4350 = vperm.xlu1 %5343, %v6324_v2   ;;  %v1514_v61 = vsel %vm1450_vm4, %v1342_v56, %v1482_v40 }
 0x235   : > { %vm1449_vm7 = vcmp.ge.f32.partialorder %v1337_v13, 0.0  ;;  %v1481_v11 = vmul.f32 0.01, %v1337_v13  ;;  %v1512_v54 = vsel %vm1448_vm5, %v1334_v36, %v1480_v50 }
 0x236   : > { %2327 = vmatpush1.bf16.msra.mxu1 %v1541_v42  ;;  %v1515_v21 = vsel %vm1451_vm6, %v1345_v23, %v1483_v31 }
 0x237   : > { %v5230_v0 = vpop.f32.mrb[8].mxu0  ;;  %2328 = vmatprep.subr.bf16.mxu1 %v7231_v16  ;;  %v1513_v12 = vsel %vm1449_vm7, %v1337_v13, %v1481_v11  ;;  %v1543_v1 = vpack.c.bf16 %v1515_v21, %v1514_v61 }
 0x238   : > { %v1358_v46 = vadd.f32 %v5230_v0, %v6138_v38  ;;  %v1349_v57 = vpop.f32.mrb[9].mxu0  ;;  %v1542_v14 = vpack.c.bf16 %v1513_v12, %v1512_v54  ;;  %4354 = vperm.xlu1 %5343, %v6251_v28  }
 0x239   : > { %v1350_v2 = vadd.f32 %v1349_v57, %v6134_v32  ;;  %v5231_v5 = vpop.f32.mrb[10].mxu0  ;;  %v6428_v32 = vpop.permute.xlu1 %1986 }
 0x23a   : > { %v1486_v55 = vmul.f32 0.01, %v1358_v46  ;;  %v1361_v23 = vadd.f32 %v5231_v5, %v6013_v20  ;;  %v1352_v62 = vpop.f32.mrb[11].mxu0  ;;  %2329 = vmatpush1.bf16.msra.mxu1 %v1542_v14  ;;  %vm1454_vm8 = vcmp.ge.f32.partialorder %v1358_v46, 0.0 }
 0x23b   : > { %v1484_v29 = vmul.f32 0.01, %v1350_v2  ;;  %v1353_v59 = vadd.f32 %v1352_v62, %v6005_v3  ;;  %2330 = vmatprep.subr.bf16.mxu1 %v7231_v16  ;;  %vm1452_vm9 = vcmp.ge.f32.partialorder %v1350_v2, 0.0 }
 0x23c   : > { %vm1455_vm10 = vcmp.ge.f32.partialorder %v1361_v23, 0.0  ;;  %v1487_v38 = vmul.f32 0.01, %v1361_v23  ;;  %4358 = vperm.xlu1 %5343, %v6335_v18   ;;  %v1518_v42 = vsel %vm1454_vm8, %v1358_v46, %v1486_v55 }
 0x23d   : > { %vm1453_vm11 = vcmp.ge.f32.partialorder %v1353_v59, 0.0  ;;  %v1485_v28 = vmul.f32 0.01, %v1353_v59  ;;  %v1516_v36 = vsel %vm1452_vm9, %v1350_v2, %v1484_v29  ;;  %v6437_v54 = vpop.permute.xlu1 %1906 }
 0x23e   : > { %2331 = vmatpush1.bf16.msra.mxu1 %v1543_v1  ;;  %v1519_v20 = vsel %vm1455_vm10, %v1361_v23, %v1487_v38 }
 0x23f   : > { %v5234_v56 = vpop.f32.mrb[12].mxu0  ;;  %2332 = vmatprep.subr.bf16.mxu1 %v7231_v16  ;;  %v1517_v15 = vsel %vm1453_vm11, %v1353_v59, %v1485_v28  ;;  %v1545_v3 = vpack.c.bf16 %v1519_v20, %v1518_v42 }
 0x240   : > { %v1374_v40 = vadd.f32 %v5234_v56, %v6152_v41  ;;  %v1365_v35 = vpop.f32.mrb[13].mxu0  ;;  %v1544_v50 = vpack.c.bf16 %v1517_v15, %v1516_v36  ;;  %4362 = vperm.xlu1 %5343, %v6258_v9  }
 0x241   : > { %v1366_v18 = vadd.f32 %v1365_v35, %v6146_v39  ;;  %v5235_v13 = vpop.f32.mrb[14].mxu0  ;;  %v6444_v55 = vpop.permute.xlu1 %1996 }
 0x242   : > { %v1490_v31 = vmul.f32 0.01, %v1374_v40  ;;  %v1377_v11 = vadd.f32 %v5235_v13, %v6027_v37  ;;  %v1368_v61 = vpop.f32.mrb[15].mxu0  ;;  %2333 = vmatpush1.bf16.msra.mxu1 %v1544_v50  ;;  %vm1458_vm12 = vcmp.ge.f32.partialorder %v1374_v40, 0.0 }
 0x243   : > { %v1488_v21 = vmul.f32 0.01, %v1366_v18  ;;  %v1369_v0 = vadd.f32 %v1368_v61, %v6021_v30  ;;  %2334 = vmatprep.subr.bf16.mxu1 %v7231_v16  ;;  %vm1456_vm13 = vcmp.ge.f32.partialorder %v1366_v18, 0.0 }
 0x244   : > { %vm1459_vm14 = vcmp.ge.f32.partialorder %v1377_v11, 0.0  ;;  %v1491_v41 = vmul.f32 0.01, %v1377_v11  ;;  %4366 = vperm.xlu1 %5343, %v6348_v47   ;;  %v1522_v9 = vsel %vm1458_vm12, %v1374_v40, %v1490_v31 }
 0x245   : > { %vm1457_vm15 = vcmp.ge.f32.partialorder %v1369_v0, 0.0  ;;  %v1489_v39 = vmul.f32 0.01, %v1369_v0  ;;  %v1520_v1 = vsel %vm1456_vm13, %v1366_v18, %v1488_v21  ;;  %v6451_v36 = vpop.permute.xlu1 %1916 }
 0x246   : > { %2335 = vmatpush1.bf16.msra.mxu1 %v1545_v3  ;;  %v1523_v37 = vsel %vm1459_vm14, %v1377_v11, %v1491_v41 }
 0x247   : > { %v5238_v12 = vpop.f32.mrb[16].mxu0  ;;  %2336 = vmatprep.subr.bf16.mxu1 %v7231_v16  ;;  %v1521_v46 = vsel %vm1457_vm15, %v1369_v0, %v1489_v39  ;;  %v1547_v30 = vpack.c.bf16 %v1523_v37, %v1522_v9 }
 0x248   : > { %v1390_v57 = vadd.f32 %v5238_v12, %v6164_v8  ;;  %v1381_v14 = vpop.f32.mrb[17].mxu0  ;;  %v1546_v2 = vpack.c.bf16 %v1521_v46, %v1520_v1  ;;  %4370 = vperm.xlu1 %5343, %v6265_v25  }
 0x249   : > { %v1382_v5 = vadd.f32 %v1381_v14, %v6158_v53  ;;  %v5239_v47 = vpop.f32.mrb[18].mxu0 }
 0x24a   : > { %v1494_v23 = vmul.f32 0.01, %v1390_v57  ;;  %v1393_v62 = vadd.f32 %v5239_v47, %v6037_v33  ;;  %v1384_v29 = vpop.f32.mrb[19].mxu0  ;;  %2337 = vmatpush1.bf16.msra.mxu1 %v1546_v2  ;;  %vm1462_vm0 = vcmp.ge.f32.partialorder %v1390_v57, 0.0 }
 0x24b   : > { %v1492_v59 = vmul.f32 0.01, %v1382_v5  ;;  %v1385_v38 = vadd.f32 %v1384_v29, %v6031_v52  ;;  %2338 = vmatprep.subr.bf16.mxu1 %v7231_v16  ;;  %vm1460_vm1 = vcmp.ge.f32.partialorder %v1382_v5, 0.0 }
 0x24c   : > { %vm1463_vm2 = vcmp.ge.f32.partialorder %v1393_v62, 0.0  ;;  %v1495_v8 = vmul.f32 0.01, %v1393_v62  ;;  %4374 = vperm.xlu1 %5343, %v6361_v22   ;;  %v1526_v25 = vsel %vm1462_vm0, %v1390_v57, %v1494_v23 }
 0x24d   : > { %vm1461_vm3 = vcmp.ge.f32.partialorder %v1385_v38, 0.0  ;;  %v1493_v53 = vmul.f32 0.01, %v1385_v38  ;;  %v1524_v33 = vsel %vm1460_vm1, %v1382_v5, %v1492_v59 }
 0x24e   : > { %2339 = vmatpush1.bf16.msra.mxu1 %v1547_v30  ;;  %v1527_v28 = vsel %vm1463_vm2, %v1393_v62, %v1495_v8 }
 0x24f   : > { %v5242_v42 = vpop.f32.mrb[20].mxu0  ;;  %2340 = vmatprep.subr.bf16.mxu1 %v7231_v16  ;;  %v1525_v20 = vsel %vm1461_vm3, %v1385_v38, %v1493_v53  ;;  %v1549_v56 = vpack.c.bf16 %v1527_v28, %v1526_v25 }
 0x250   : > { %v1406_v52 = vadd.f32 %v5242_v42, %v6176_v58  ;;  %v1397_v15 = vpop.f32.mrb[21].mxu0  ;;  %v1548_v3 = vpack.c.bf16 %v1525_v20, %v1524_v33  ;;  %4378 = vperm.xlu1 %5343, %v6274_v44  }
 0x251   : > { %v1398_v22 = vadd.f32 %v1397_v15, %v6172_v63  ;;  %v5243_v40 = vpop.f32.mrb[22].mxu0  ;;  %v5362_v15 = vld [vmem:[%s5744_s23] ss:$8 sps:$4 sm:$0xff]  }
 0x252   : > { %v1498_v35 = vmul.f32 0.01, %v1406_v52  ;;  %v1409_v50 = vadd.f32 %v5243_v40, %v6054_v27  ;;  %v1400_v18 = vpop.f32.mrb[23].mxu0  ;;  %2341 = vmatpush1.bf16.msra.mxu1 %v1548_v3  ;;  %vm1466_vm4 = vcmp.ge.f32.partialorder %v1406_v52, 0.0  ;;  %v5365_v3 = vld [vmem:[%s5744_s23 + $0x14] ss:$8 sps:$4 sm:$0xff]  }
 0x253   : > { %v1496_v13 = vmul.f32 0.01, %v1398_v22  ;;  %v1401_v31 = vadd.f32 %v1400_v18, %v6042_v45  ;;  %2342 = vmatprep.subr.bf16.mxu1 %v7231_v16  ;;  %vm1464_vm5 = vcmp.ge.f32.partialorder %v1398_v22, 0.0  ;;  %v5368_v40 = vld [vmem:[%s5744_s23 + $0x24] ss:$8 sps:$4 sm:$0xff]  }
 0x254   : > { %vm1467_vm6 = vcmp.ge.f32.partialorder %v1409_v50, 0.0  ;;  %v1499_v58 = vmul.f32 0.01, %v1409_v50  ;;  %5344 = vset.pattern.permute.xlu1 %v7231_v16  ;;  %v1530_v63 = vsel %vm1466_vm4, %v1406_v52, %v1498_v35  ;;  %v5370_v35 = vld [vmem:[%s5744_s23 + $0x20] ss:$8 sps:$4 sm:$0xff]  }
 0x255   : > { %vm1465_vm7 = vcmp.ge.f32.partialorder %v1401_v31, 0.0  ;;  %v1497_v44 = vmul.f32 0.01, %v1401_v31  ;;  %v1528_v27 = vsel %vm1464_vm5, %v1398_v22, %v1496_v13  ;;  %v5367_v22 = vld [vmem:[%s5744_s23 + $0x10] ss:$8 sps:$4 sm:$0xff]  }
 0x256   : > { %2343 = vmatpush1.bf16.msra.mxu1 %v1549_v56  ;;  %v1531_v11 = vsel %vm1467_vm6, %v1409_v50, %v1499_v58  ;;  %v5371_v50 = vld [vmem:[%s5744_s23 + $0x34] ss:$8 sps:$4 sm:$0xff]   ;;  %v5374_v18 = vld [vmem:[%s5744_s23 + $0x44] ss:$8 sps:$4 sm:$0xff]   ;;  %v5376_v13 = vld [vmem:[%s5744_s23 + $0x40] ss:$8 sps:$4 sm:$0xff]  }
 0x257   : > { %v5246_v61 = vpop.f32.mrb[24].mxu0  ;;  %2344 = vmatprep.subr.bf16.mxu1 %v7231_v16  ;;  %v1529_v21 = vsel %vm1465_vm7, %v1401_v31, %v1497_v44  ;;  %v1551_v0 = vpack.c.bf16 %v1531_v11, %v1530_v63  ;;  %v5377_v31 = vld [vmem:[%s5744_s23 + $0x54] ss:$8 sps:$4 sm:$0xff]   ;;  %v5379_v58 = vld [vmem:[%s5744_s23 + $0x50] ss:$8 sps:$4 sm:$0xff]  }
 0x258   : > { %v1422_v45 = vadd.f32 %v5246_v61, %v6194_v48  ;;  %v1413_v41 = vpop.f32.mrb[25].mxu0  ;;  %v1550_v39 = vpack.c.bf16 %v1529_v21, %v1528_v27  ;;  %v5380_v44 = vld [vmem:[%s5744_s23 + $0x64] ss:$8 sps:$4 sm:$0xff]   ;;  %v5382_v63 = vld [vmem:[%s5744_s23 + $0x60] ss:$8 sps:$4 sm:$0xff]  }
 0x259   : > { %v1414_v9 = vadd.f32 %v1413_v41, %v6185_v43  ;;  %v5247_v37 = vpop.f32.mrb[26].mxu0  ;;  %v5383_v11 = vld [vmem:[%s5744_s23 + $0x74] ss:$8 sps:$4 sm:$0xff]   ;;  %v5385_v61 = vld [vmem:[%s5744_s23 + $0x70] ss:$8 sps:$4 sm:$0xff]  }
 0x25a   : > { %v1502_v12 = vmul.f32 0.01, %v1422_v45  ;;  %v1425_v1 = vadd.f32 %v5247_v37, %v6066_v49  ;;  %v1416_v46 = vpop.f32.mrb[27].mxu0  ;;  %2345 = vmatpush1.bf16.msra.mxu1 %v1550_v39  ;;  %vm1470_vm8 = vcmp.ge.f32.partialorder %v1422_v45, 0.0  ;;  %v5386_v27 = vld [vmem:[%s5744_s23 + $0x84] ss:$8 sps:$4 sm:$0xff]  }
 0x25b   : > { %v1500_v30 = vmul.f32 0.01, %v1414_v9  ;;  %v1417_v57 = vadd.f32 %v1416_v46, %v6061_v60  ;;  %2346 = vmatprep.subr.bf16.mxu1 %v7231_v16  ;;  %vm1468_vm9 = vcmp.ge.f32.partialorder %v1414_v9, 0.0  ;;  %v5388_v21 = vld [vmem:[%s5744_s23 + $0x80] ss:$8 sps:$4 sm:$0xff]  }
 0x25c   : > { %vm1471_vm10 = vcmp.ge.f32.partialorder %v1425_v1, 0.0  ;;  %v1503_v14 = vmul.f32 0.01, %v1425_v1  ;;  %v1534_v2 = vsel %vm1470_vm8, %v1422_v45, %v1502_v12  ;;  %v5391_v45 = vld [vmem:[%s5744_s23 + $0x90] ss:$8 sps:$4 sm:$0xff]  }
 0x25d   : > { %vm1469_vm11 = vcmp.ge.f32.partialorder %v1417_v57, 0.0  ;;  %v1501_v48 = vmul.f32 0.01, %v1417_v57  ;;  %v1532_v49 = vsel %vm1468_vm9, %v1414_v9, %v1500_v30  ;;  %v5392_v41 = vld [vmem:[%s5744_s23 + $0xa4] ss:$8 sps:$4 sm:$0xff]  }
 0x25e   : > { %2347 = vmatpush1.bf16.msra.mxu1 %v1551_v0  ;;  %v1535_v43 = vsel %vm1471_vm10, %v1425_v1, %v1503_v14  ;;  %v5389_v0 = vld [vmem:[%s5744_s23 + $0x94] ss:$8 sps:$4 sm:$0xff]   ;;  %v5394_v39 = vld [vmem:[%s5744_s23 + $0xa0] ss:$8 sps:$4 sm:$0xff]   ;;  %v5397_v37 = vld [vmem:[%s5744_s23 + $0xb0] ss:$8 sps:$4 sm:$0xff]  }
 0x25f   : > { %v5250_v5 = vpop.f32.mrb[28].mxu0  ;;  %2348 = vmatprep.subr.bf16.mxu1 %v7231_v16  ;;  %v1533_v47 = vsel %vm1469_vm11, %v1417_v57, %v1501_v48  ;;  %v1553_v23 = vpack.c.bf16 %v1535_v43, %v1534_v2  ;;  %v5395_v9 = vld [vmem:[%s5744_s23 + $0xb4] ss:$8 sps:$4 sm:$0xff]   ;;  %v5398_v12 = vld [vmem:[%s5744_s23 + $0xc4] ss:$8 sps:$4 sm:$0xff]  }
 0x260   : > { %v1438_v62 = vadd.f32 %v5250_v5, %v6209_v4  ;;  %v1429_v29 = vpop.f32.mrb[29].mxu0  ;;  %v1552_v60 = vpack.c.bf16 %v1533_v47, %v1532_v49  ;;  %v5400_v1 = vld [vmem:[%s5744_s23 + $0xc0] ss:$8 sps:$4 sm:$0xff]   ;;  %v5401_v46 = vld [vmem:[%s5744_s23 + $0xd4] ss:$8 sps:$4 sm:$0xff]  }
 0x261   : > { %v1430_v59 = vadd.f32 %v1429_v29, %v6202_v10  ;;  %v5251_v38 = vpop.f32.mrb[30].mxu0  ;;  %v5403_v30 = vld [vmem:[%s5744_s23 + $0xd0] ss:$8 sps:$4 sm:$0xff]   ;;  %v5404_v57 = vld [vmem:[%s5744_s23 + $0xe4] ss:$8 sps:$4 sm:$0xff]  }
 0x262   : > { %v1506_v8 = vmul.f32 0.01, %v1438_v62  ;;  %v1441_v53 = vadd.f32 %v5251_v38, %v6088_v19  ;;  %v1432_v25 = vpop.f32.mrb[31].mxu0  ;;  %2349 = vmatpush1.bf16.msra.mxu1 %v1552_v60  ;;  %vm1474_vm12 = vcmp.ge.f32.partialorder %v1438_v62, 0.0  ;;  %v5406_v14 = vld [vmem:[%s5744_s23 + $0xe0] ss:$8 sps:$4 sm:$0xff]  }
 0x263   : > { %v1504_v28 = vmul.f32 0.01, %v1430_v59  ;;  %v1433_v42 = vadd.f32 %v1432_v25, %v6072_v24  ;;  %2350 = vmatprep.subr.bf16.mxu1 %v7231_v16  ;;  %vm1472_vm13 = vcmp.ge.f32.partialorder %v1430_v59, 0.0  ;;  %v5407_v48 = vld [vmem:[%s5744_s23 + $0xf4] ss:$8 sps:$4 sm:$0xff]  }
 0x264   : > { %vm1475_vm14 = vcmp.ge.f32.partialorder %v1441_v53, 0.0  ;;  %v1507_v4 = vmul.f32 0.01, %v1441_v53  ;;  %v1538_v10 = vsel %vm1474_vm12, %v1438_v62, %v1506_v8  ;;  %v5409_v2 = vld [vmem:[%s5744_s23 + $0xf0] ss:$8 sps:$4 sm:$0xff]  }
 0x265   : > { %vm1473_vm15 = vcmp.ge.f32.partialorder %v1433_v42, 0.0  ;;  %v1505_v33 = vmul.f32 0.01, %v1433_v42  ;;  %v1536_v20 = vsel %vm1472_vm13, %v1430_v59, %v1504_v28  ;;  %v5410_v43 = vld [vmem:[%s5744_s23 + $0x104] ss:$8 sps:$4 sm:$0xff]  }
 0x266   : > { %2351 = vmatpush1.bf16.msra.mxu1 %v1553_v23  ;;  %v1539_v19 = vsel %vm1475_vm14, %v1441_v53, %v1507_v4  ;;  %v5412_v5 = vld [vmem:[%s5744_s23 + $0x100] ss:$8 sps:$4 sm:$0xff]   ;;  %v5413_v49 = vld [vmem:[%s5744_s23 + $0x114] ss:$8 sps:$4 sm:$0xff]   ;;  %v5415_v47 = vld [vmem:[%s5744_s23 + $0x110] ss:$8 sps:$4 sm:$0xff]  }
 0x267   : > { %2352 = vmatprep.subr.bf16.mxu1 %v7231_v16  ;;  %v1537_v24 = vsel %vm1473_vm15, %v1433_v42, %v1505_v33  ;;  %v1555_v56 = vpack.c.bf16 %v1539_v19, %v1538_v10  ;;  %v5416_v23 = vld [vmem:[%s5744_s23 + $0x124] ss:$8 sps:$4 sm:$0xff]   ;;  %v5418_v62 = vld [vmem:[%s5744_s23 + $0x120] ss:$8 sps:$4 sm:$0xff]   ;;  %v5419_v29 = vld [vmem:[%s5744_s23 + $0x134] ss:$8 sps:$4 sm:$0xff]  }
 0x268   : > { %v1554_v52 = vpack.c.bf16 %v1537_v24, %v1536_v20  ;;  %v5421_v60 = vld [vmem:[%s5744_s23 + $0x130] ss:$8 sps:$4 sm:$0xff]   ;;  %v5422_v59 = vld [vmem:[%s5744_s23 + $0x144] ss:$8 sps:$4 sm:$0xff]   ;;  %v5424_v38 = vld [vmem:[%s5744_s23 + $0x140] ss:$8 sps:$4 sm:$0xff]  }
 0x269   : > { %v5425_v8 = vld [vmem:[%s5744_s23 + $0x154] ss:$8 sps:$4 sm:$0xff]   ;;  %v5427_v53 = vld [vmem:[%s5744_s23 + $0x150] ss:$8 sps:$4 sm:$0xff]   ;;  %v5428_v25 = vld [vmem:[%s5744_s23 + $0x164] ss:$8 sps:$4 sm:$0xff]  }
 0x26a   : > { %2353 = vmatpush1.bf16.msra.mxu1 %v1554_v52  ;;  %v5430_v28 = vld [vmem:[%s5744_s23 + $0x160] ss:$8 sps:$4 sm:$0xff]   ;;  %v5431_v42 = vld [vmem:[%s5744_s23 + $0x174] ss:$8 sps:$4 sm:$0xff]   ;;  %v5433_v4 = vld [vmem:[%s5744_s23 + $0x170] ss:$8 sps:$4 sm:$0xff]  }
 0x26b   : > { %2354 = vmatprep.subr.bf16.mxu1 %v7231_v16  ;;  %v5373_v16 = vld [vmem:[%s5744_s23 + $0x30] ss:$8 sps:$4 sm:$0xff]   ;;  %v5434_v33 = vld [vmem:[%s5744_s23 + $0x184] ss:$8 sps:$4 sm:$0xff]   ;;  %v5436_v10 = vld [vmem:[%s5744_s23 + $0x180] ss:$8 sps:$4 sm:$0xff]  }
 0x26c   : > { %v5437_v19 = vld [vmem:[%s5744_s23 + $0x194] ss:$8 sps:$4 sm:$0xff]   ;;  %v5439_v20 = vld [vmem:[%s5744_s23 + $0x190] ss:$8 sps:$4 sm:$0xff]   ;;  %v5440_v24 = vld [vmem:[%s5744_s23 + $0x1a4] ss:$8 sps:$4 sm:$0xff]  }
 0x26d   : > { %v5443_v52 = vld [vmem:[%s5744_s23 + $0x1b4] ss:$8 sps:$4 sm:$0xff]  }
 0x26e   : > { %2355 = vmatpush1.bf16.msra.mxu1 %v1555_v56  ;;  %v5442_v56 = vld [vmem:[%s5744_s23 + $0x1a0] ss:$8 sps:$4 sm:$0xff]  }
 0x271   : > { %2357 = vmatmul.mubr.bf16.vlgmr.msra.gmra.mrb[0].mxu1 %v5362_v15 }
 0x272   : > { %2364 = vmatprep.mubr.bf16.mxu1 %v5365_v3 }
 0x279   : > { %2365 = vmatmul.mubr.bf16.gmra.mrb[4].mxu1 %v5367_v22 }
 0x27a   : > { %2372 = vmatprep.mubr.bf16.mxu1 %v5368_v40  ;;  %v5445_v40 = vld [vmem:[%s5744_s23 + $0x1b0] ss:$8 sps:$4 sm:$0xff]  }
 0x281   : > { %2373 = vmatmul.mubr.bf16.gmra.mrb[8].mxu1 %v5370_v35 }
 0x282   : > { %2380 = vmatprep.mubr.bf16.mxu1 %v5371_v50  ;;  %v5446_v50 = vld [vmem:[%s5744_s23 + $0x1c4] ss:$8 sps:$4 sm:$0xff]  }
 0x289   : > { %2381 = vmatmul.mubr.bf16.gmra.mrb[12].mxu1 %v5373_v16 }
 0x28a   : > { %2388 = vmatprep.mubr.bf16.mxu1 %v5374_v18 }
 0x291   : > { %2389 = vmatmul.mubr.bf16.gmra.mrb[16].mxu1 %v5376_v13 }
 0x292   : > { %2396 = vmatprep.mubr.bf16.mxu1 %v5377_v31  ;;  %v5460_v31 = vld [vmem:[%s5771_s16 + $0x4] ss:$16 sps:$4 sm:$0xff]  }
 0x293   : > { %3445 = vmatprep.mubr.bf16.mxu0 %v5460_v31 }
 0x299   : > { %2397 = vmatmul.mubr.bf16.gmra.mrb[20].mxu1 %v5379_v58 }
 0x29a   : > { %2404 = vmatprep.mubr.bf16.mxu1 %v5380_v44 }
 0x2a1   : > { %2405 = vmatmul.mubr.bf16.gmra.mrb[24].mxu1 %v5382_v63 }
 0x2a2   : > { %2412 = vmatprep.mubr.bf16.mxu1 %v5383_v11 }
 0x2a9   : > { %2413 = vmatmul.mubr.bf16.gmra.mrb[28].mxu1 %v5385_v61 }
 0x2aa   : > { %2420 = vmatprep.mubr.bf16.mxu1 %v5386_v27  ;;  %v5448_v27 = vld [vmem:[%s5744_s23 + $0x1c0] ss:$8 sps:$4 sm:$0xff]  }
 0x2b1   : > { %2421 = vmatmul.mubr.bf16.gmra.mrb[32].mxu1 %v5388_v21 }
 0x2b2   : > { %2428 = vmatprep.mubr.bf16.mxu1 %v5389_v0  ;;  %v5449_v0 = vld [vmem:[%s5744_s23 + $0x1d4] ss:$8 sps:$4 sm:$0xff]  }
 0x2b9   : > { %2429 = vmatmul.mubr.bf16.gmra.mrb[36].mxu1 %v5391_v45 }
 0x2ba   : > { %2436 = vmatprep.mubr.bf16.mxu1 %v5392_v41 }
 0x2c1   : > { %2437 = vmatmul.mubr.bf16.gmra.mrb[40].mxu1 %v5394_v39 }
 0x2c2   : > { %2444 = vmatprep.mubr.bf16.mxu1 %v5395_v9 }
 0x2c9   : > { %2445 = vmatmul.mubr.bf16.gmra.mrb[44].mxu1 %v5397_v37 }
 0x2ca   : > { %2452 = vmatprep.mubr.bf16.mxu1 %v5398_v12 }
 0x2d1   : > { %2453 = vmatmul.mubr.bf16.gmra.mrb[48].mxu1 %v5400_v1 }
 0x2d2   : > { %2460 = vmatprep.mubr.bf16.mxu1 %v5401_v46  ;;  %v7241_v46 = vld [vmem:[#allocation22_spill] sm:$0xff] }
 0x2d9   : > { %2461 = vmatmul.mubr.bf16.gmra.mrb[52].mxu1 %v5403_v30 }
 0x2da   : > { %2468 = vmatprep.mubr.bf16.mxu1 %v5404_v57 }
 0x2e1   : > { %2469 = vmatmul.mubr.bf16.gmra.mrb[56].mxu1 %v5406_v14  ;;  %v5451_v14 = vld [vmem:[%s5744_s23 + $0x1d0] ss:$8 sps:$4 sm:$0xff]  }
 0x2e2   : > { %2476 = vmatprep.mubr.bf16.mxu1 %v5407_v48 }
 0x2e9   : > { %2477 = vmatmul.mubr.bf16.gmra.mrb[60].mxu1 %v5409_v2 }
 0x2ea   : > { %2484 = vmatprep.mubr.bf16.mxu1 %v5410_v43  ;;  %v7242_v43 = vld [vmem:[#allocation5_spill] sm:$0xff] }
 0x2f1   : > { %2485 = vmatmul.mubr.bf16.gmra.mrb[64].mxu1 %v5412_v5 }
 0x2f2   : > { %2492 = vmatprep.mubr.bf16.mxu1 %v5413_v49 }
 0x2f9   : > { %2493 = vmatmul.mubr.bf16.gmra.mrb[68].mxu1 %v5415_v47 }
 0x2fa   : > { %2500 = vmatprep.mubr.bf16.mxu1 %v5416_v23 }
 0x301   : > { %2501 = vmatmul.mubr.bf16.gmra.mrb[72].mxu1 %v5418_v62 }
 0x302   : > { %2508 = vmatprep.mubr.bf16.mxu1 %v5419_v29 }
 0x309   : > { %2509 = vmatmul.mubr.bf16.gmra.mrb[76].mxu1 %v5421_v60 }
 0x30a   : > { %2516 = vmatprep.mubr.bf16.mxu1 %v5422_v59  ;;  %v7243_v59 = vld [vmem:[#allocation26_spill] sm:$0xff] }
 0x311   : > { %2517 = vmatmul.mubr.bf16.gmra.mrb[80].mxu1 %v5424_v38 }
 0x312   : > { %2524 = vmatprep.mubr.bf16.mxu1 %v5425_v8 }
 0x319   : > { %2525 = vmatmul.mubr.bf16.gmra.mrb[84].mxu1 %v5427_v53  ;;  %v5454_v53 = vld [vmem:[%s5744_s23 + $0x1e0] ss:$8 sps:$4 sm:$0xff]  }
 0x31a   : > { %2532 = vmatprep.mubr.bf16.mxu1 %v5428_v25 }
 0x321   : > { %2533 = vmatmul.mubr.bf16.gmra.mrb[88].mxu1 %v5430_v28  ;;  %v5455_v28 = vld [vmem:[%s5744_s23 + $0x1f4] ss:$8 sps:$4 sm:$0xff]  }
 0x322   : > { %2540 = vmatprep.mubr.bf16.mxu1 %v5431_v42 }
 0x329   : > { %2541 = vmatmul.mubr.bf16.gmra.mrb[92].mxu1 %v5433_v4  ;;  %v7244_v4 = vld [vmem:[#allocation7_spill] sm:$0xff] }
 0x32a   : > { %2548 = vmatprep.mubr.bf16.mxu1 %v5434_v33 }
 0x331   : > { %2549 = vmatmul.mubr.bf16.gmra.mrb[96].mxu1 %v5436_v10 }
 0x332   : > { %2556 = vmatprep.mubr.bf16.mxu1 %v5437_v19 }
 0x339   : > { %2557 = vmatmul.mubr.bf16.gmra.mrb[100].mxu1 %v5439_v20 }
 0x33a   : > { %2564 = vmatprep.mubr.bf16.mxu1 %v5440_v24 }
 0x341   : > { %2565 = vmatmul.mubr.bf16.gmra.mrb[104].mxu1 %v5442_v56 }
 0x342   : > { %2572 = vmatprep.mubr.bf16.mxu1 %v5443_v52 }
 0x344   : > { %v2358_v15 = vpop.f32.mrb[0].mxu1 }
 0x345   : > { %v2359_v3 = vadd.f32 %v2358_v15, %v6231_v51  ;;  %v2360_v22 = vpop.f32.mrb[1].mxu1  ;;  %v7245_v15 = vld [vmem:[#allocation30_spill] sm:$0xff] }
 0x346   : > { %v2361_v35 = vpop.f32.mrb[2].mxu1 }
 0x347   : > { %v2677_v16 = vmul.f32 0.01, %v2359_v3  ;;  %v2362_v18 = vadd.f32 %v2361_v35, %v6105_v26  ;;  %v2363_v13 = vpop.f32.mrb[3].mxu1  ;;  %vm2613_vm0 = vcmp.ge.f32.partialorder %v2359_v3, 0.0 }
 0x349   : > { %vm2614_vm1 = vcmp.ge.f32.partialorder %v2362_v18, 0.0  ;;  %v2678_v58 = vmul.f32 0.01, %v2362_v18  ;;  %2573 = vmatmul.mubr.bf16.gmra.mrb[108].mxu1 %v5445_v40  ;;  %v6533_v44 = vsel %vm2613_vm0, %v2359_v3, %v2677_v16  ;;  %v5457_v40 = vld [vmem:[%s5744_s23 + $0x1f0] ss:$8 sps:$4 sm:$0xff]  }
 0x34a   : > { %2580 = vmatprep.mubr.bf16.mxu1 %v5446_v50  ;;  %v7246_v16 = vld [vmem:[#allocation9_spill] sm:$0xff] }
 0x34b   : > { %v6535_v51 = vsel %vm2614_vm1, %v2362_v18, %v2678_v58 }
 0x34c   : > { %v2805_v63 = vpack.c.bf16 %v6535_v51, %v6533_v44  ;;  %v2366_v11 = vpop.f32.mrb[4].mxu1 }
 0x34d   : > { %v2367_v61 = vadd.f32 %v2366_v11, %v6254_v17  ;;  %v2368_v26 = vpop.f32.mrb[5].mxu1 }
 0x34e   : > { %v2369_v21 = vpop.f32.mrb[6].mxu1 }
 0x34f   : > { %v2679_v45 = vmul.f32 0.01, %v2367_v61  ;;  %v2370_v41 = vadd.f32 %v2369_v21, %v6123_v6  ;;  %v2371_v39 = vpop.f32.mrb[7].mxu1  ;;  %vm2615_vm2 = vcmp.ge.f32.partialorder %v2367_v61, 0.0  ;;  %v5452_v6 = vld [vmem:[%s5744_s23 + $0x1e4] ss:$8 sps:$4 sm:$0xff]  }
 0x350   : > { %v7248_v39 = vld [vmem:[#allocation11_spill] sm:$0xff] }
 0x351   : > { %vm2616_vm3 = vcmp.ge.f32.partialorder %v2370_v41, 0.0  ;;  %v2680_v9 = vmul.f32 0.01, %v2370_v41  ;;  %2581 = vmatmul.mubr.bf16.gmra.mrb[112].mxu1 %v5448_v27  ;;  %v6543_v37 = vsel %vm2615_vm2, %v2367_v61, %v2679_v45  ;;  %v7247_v27 = vld [vmem:[#allocation34_spill] sm:$0xff] }
 0x352   : > { %2588 = vmatprep.mubr.bf16.mxu1 %v5449_v0 }
 0x353   : > { %v6545_v12 = vsel %vm2616_vm3, %v2370_v41, %v2680_v9 }
 0x354   : > { %v2806_v17 = vpack.c.bf16 %v6545_v12, %v6543_v37  ;;  %v2374_v1 = vpop.f32.mrb[8].mxu1 }
 0x355   : > { %v2375_v30 = vadd.f32 %v2374_v1, %v7241_v46  ;;  %v2376_v57 = vpop.f32.mrb[9].mxu1 }
 0x356   : > { %v2377_v48 = vpop.f32.mrb[10].mxu1 }
 0x357   : > { %v2681_v2 = vmul.f32 0.01, %v2375_v30  ;;  %v2378_v5 = vadd.f32 %v2377_v48, %v7242_v43  ;;  %v2379_v49 = vpop.f32.mrb[11].mxu1  ;;  %vm2617_vm4 = vcmp.ge.f32.partialorder %v2375_v30, 0.0 }
 0x359   : > { %vm2618_vm5 = vcmp.ge.f32.partialorder %v2378_v5, 0.0  ;;  %v2682_v47 = vmul.f32 0.01, %v2378_v5  ;;  %2589 = vmatmul.mubr.bf16.gmra.mrb[116].mxu1 %v5451_v14  ;;  %v6553_v23 = vsel %vm2617_vm4, %v2375_v30, %v2681_v2 }
 0x35a   : > { %2596 = vmatprep.mubr.bf16.mxu1 %v5452_v6  ;;  %v7249_v6 = vld [vmem:[#allocation38_spill] sm:$0xff] }
 0x35b   : > { %v6555_v62 = vsel %vm2618_vm5, %v2378_v5, %v2682_v47  ;;  %v7250_v47 = vld [vmem:[#allocation13_spill] sm:$0xff] }
 0x35c   : > { %v2807_v29 = vpack.c.bf16 %v6555_v62, %v6553_v23  ;;  %v2382_v60 = vpop.f32.mrb[12].mxu1 }
 0x35d   : > { %v2383_v38 = vadd.f32 %v2382_v60, %v7243_v59  ;;  %v2384_v8 = vpop.f32.mrb[13].mxu1 }
 0x35e   : > { %v2385_v25 = vpop.f32.mrb[14].mxu1 }
 0x35f   : > { %v2683_v42 = vmul.f32 0.01, %v2383_v38  ;;  %v2386_v33 = vadd.f32 %v2385_v25, %v7244_v4  ;;  %v2387_v10 = vpop.f32.mrb[15].mxu1  ;;  %vm2619_vm6 = vcmp.ge.f32.partialorder %v2383_v38, 0.0 }
 0x361   : > { %vm2620_vm7 = vcmp.ge.f32.partialorder %v2386_v33, 0.0  ;;  %v2684_v19 = vmul.f32 0.01, %v2386_v33  ;;  %2597 = vmatmul.mubr.bf16.gmra.mrb[120].mxu1 %v5454_v53  ;;  %v6563_v20 = vsel %vm2619_vm6, %v2383_v38, %v2683_v42  ;;  %v7251_v42 = vld [vmem:[#allocation42_spill] sm:$0xff] }
 0x362   : > { %2604 = vmatprep.mubr.bf16.mxu1 %v5455_v28 }
 0x363   : > { %v6565_v24 = vsel %vm2620_vm7, %v2386_v33, %v2684_v19 }
 0x364   : > { %v2808_v56 = vpack.c.bf16 %v6565_v24, %v6563_v20  ;;  %v2390_v52 = vpop.f32.mrb[16].mxu1 }
 0x365   : > { %v2391_v3 = vadd.f32 %v2390_v52, %v7245_v15  ;;  %v2392_v22 = vpop.f32.mrb[17].mxu1  ;;  %v7252_v52 = vld [vmem:[#allocation16_spill] sm:$0xff] }
 0x366   : > { %v2393_v35 = vpop.f32.mrb[18].mxu1 }
 0x367   : > { %v2685_v50 = vmul.f32 0.01, %v2391_v3  ;;  %v2394_v18 = vadd.f32 %v2393_v35, %v7246_v16  ;;  %v2395_v13 = vpop.f32.mrb[19].mxu1  ;;  %vm2621_vm8 = vcmp.ge.f32.partialorder %v2391_v3, 0.0 }
 0x369   : > { %vm2622_vm9 = vcmp.ge.f32.partialorder %v2394_v18, 0.0  ;;  %v2686_v31 = vmul.f32 0.01, %v2394_v18  ;;  %2605 = vmatmul.mubr.bf16.gmra.mrb[124].mxu1 %v5457_v40  ;;  %v6572_v58 = vsel %vm2621_vm8, %v2391_v3, %v2685_v50 }
 0x36b   : > { %v6574_v11 = vsel %vm2622_vm9, %v2394_v18, %v2686_v31  ;;  %v7253_v18 = vld [vmem:[#allocation14_spill] sm:$0xff] }
 0x36c   : > { %v2809_v61 = vpack.c.bf16 %v6574_v11, %v6572_v58  ;;  %v2398_v26 = vpop.f32.mrb[20].mxu1 }
 0x36d   : > { %v2399_v21 = vadd.f32 %v2398_v26, %v7247_v27  ;;  %v2400_v0 = vpop.f32.mrb[21].mxu1 }
 0x36e   : > { %v2401_v45 = vpop.f32.mrb[22].mxu1 }
 0x36f   : > { %v2687_v41 = vmul.f32 0.01, %v2399_v21  ;;  %v2402_v9 = vadd.f32 %v2401_v45, %v7248_v39  ;;  %v2403_v1 = vpop.f32.mrb[23].mxu1  ;;  %vm2623_vm10 = vcmp.ge.f32.partialorder %v2399_v21, 0.0 }
 0x371   : > { %vm2624_vm11 = vcmp.ge.f32.partialorder %v2402_v9, 0.0  ;;  %v2688_v46 = vmul.f32 0.01, %v2402_v9  ;;  %v6580_v30 = vsel %vm2623_vm10, %v2399_v21, %v2687_v41  ;;  %v7254_v21 = vld [vmem:[#allocation2_spill] sm:$0xff] }
 0x373   : > { %v6582_v57 = vsel %vm2624_vm11, %v2402_v9, %v2688_v46 }
 0x374   : > { %v2810_v14 = vpack.c.bf16 %v6582_v57, %v6580_v30  ;;  %v2406_v48 = vpop.f32.mrb[24].mxu1 }
 0x375   : > { %v2407_v2 = vadd.f32 %v2406_v48, %v7249_v6  ;;  %v2408_v43 = vpop.f32.mrb[25].mxu1  ;;  %v7255_v48 = vld [vmem:[#allocation17_spill] sm:$0xff] }
 0x376   : > { %v2409_v5 = vpop.f32.mrb[26].mxu1 }
 0x377   : > { %v2689_v49 = vmul.f32 0.01, %v2407_v2  ;;  %v2410_v60 = vadd.f32 %v2409_v5, %v7250_v47  ;;  %v2411_v59 = vpop.f32.mrb[27].mxu1  ;;  %vm2625_vm12 = vcmp.ge.f32.partialorder %v2407_v2, 0.0 }
 0x379   : > { %vm2626_vm13 = vcmp.ge.f32.partialorder %v2410_v60, 0.0  ;;  %v2690_v38 = vmul.f32 0.01, %v2410_v60  ;;  %v6588_v8 = vsel %vm2625_vm12, %v2407_v2, %v2689_v49  ;;  %v7256_v49 = vld [vmem:[#allocation3_spill] sm:$0xff] }
 0x37b   : > { %v6590_v53 = vsel %vm2626_vm13, %v2410_v60, %v2690_v38 }
 0x37c   : > { %v2811_v25 = vpack.c.bf16 %v6590_v53, %v6588_v8  ;;  %v2414_v28 = vpop.f32.mrb[28].mxu1  ;;  %v5461_v53 = vld [vmem:[%s5771_s16 + $0x24] ss:$16 sps:$4 sm:$0xff]  }
 0x37d   : > { %v2415_v4 = vadd.f32 %v2414_v28, %v7251_v42  ;;  %v2416_v33 = vpop.f32.mrb[29].mxu1 }
 0x37e   : > { %v2417_v10 = vpop.f32.mrb[30].mxu1  ;;  %v7257_v33 = vld [vmem:[#allocation20_spill] sm:$0xff] }
 0x37f   : > { %v2691_v19 = vmul.f32 0.01, %v2415_v4  ;;  %v2418_v15 = vadd.f32 %v2417_v10, %v7252_v52  ;;  %v2419_v3 = vpop.f32.mrb[31].mxu1  ;;  %vm2627_vm14 = vcmp.ge.f32.partialorder %v2415_v4, 0.0 }
 0x380   : > { %v7258_v3 = vld [vmem:[#allocation4_spill] sm:$0xff] }
 0x381   : > { %vm2628_vm15 = vcmp.ge.f32.partialorder %v2418_v15, 0.0  ;;  %v2692_v22 = vmul.f32 0.01, %v2418_v15  ;;  %v6596_v40 = vsel %vm2627_vm14, %v2415_v4, %v2691_v19 }
 0x383   : > { %v6598_v35 = vsel %vm2628_vm15, %v2418_v15, %v2692_v22 }
 0x384   : > { %v2812_v50 = vpack.c.bf16 %v6598_v35, %v6596_v40  ;;  %v2422_v16 = vpop.f32.mrb[32].mxu1  ;;  %v5463_v35 = vld [vmem:[%s5771_s16 + $0x20] ss:$16 sps:$4 sm:$0xff]  }
 0x385   : > { %v2423_v13 = vadd.f32 %v2422_v16, %v7253_v18  ;;  %v2424_v31 = vpop.f32.mrb[33].mxu1 }
 0x386   : > { %v2425_v26 = vpop.f32.mrb[34].mxu1  ;;  %v7259_v31 = vld [vmem:[#allocation24_spill] sm:$0xff] }
 0x387   : > { %v2693_v27 = vmul.f32 0.01, %v2423_v13  ;;  %v2426_v0 = vadd.f32 %v2425_v26, %v7254_v21  ;;  %v2427_v45 = vpop.f32.mrb[35].mxu1  ;;  %vm2629_vm0 = vcmp.ge.f32.partialorder %v2423_v13, 0.0 }
 0x388   : > { %v7260_v45 = vld [vmem:[#allocation6_spill] sm:$0xff] }
 0x389   : > { %vm2630_vm1 = vcmp.ge.f32.partialorder %v2426_v0, 0.0  ;;  %v2694_v41 = vmul.f32 0.01, %v2426_v0  ;;  %v2757_v39 = vsel %vm2629_vm0, %v2423_v13, %v2693_v27 }
 0x38b   : > { %v2758_v9 = vsel %vm2630_vm1, %v2426_v0, %v2694_v41 }
 0x38c   : > { %v2430_v1 = vpop.f32.mrb[36].mxu1  ;;  %v2813_v46 = vpack.c.bf16 %v2758_v9, %v2757_v39 }
 0x38d   : > { %v2431_v6 = vadd.f32 %v2430_v1, %v7255_v48  ;;  %v2432_v2 = vpop.f32.mrb[37].mxu1 }
 0x38e   : > { %v2433_v43 = vpop.f32.mrb[38].mxu1  ;;  %4916 = vmatprep.subr.bf16.mxu0 %v2813_v46  ;;  %v7261_v46 = vld [vmem:[#allocation28_spill] sm:$0xff] }
 0x38f   : > { %v2695_v5 = vmul.f32 0.01, %v2431_v6  ;;  %v2434_v47 = vadd.f32 %v2433_v43, %v7256_v49  ;;  %v2435_v60 = vpop.f32.mrb[39].mxu1  ;;  %4917 = vmatpush3.bf16.msra.mxu0 %v2805_v63  ;;  %vm2631_vm2 = vcmp.ge.f32.partialorder %v2431_v6, 0.0 }
 0x391   : > { %vm2632_vm3 = vcmp.ge.f32.partialorder %v2434_v47, 0.0  ;;  %v2696_v59 = vmul.f32 0.01, %v2434_v47  ;;  %v2759_v38 = vsel %vm2631_vm2, %v2431_v6, %v2695_v5  ;;  %v7262_v5 = vld [vmem:[#allocation8_spill] sm:$0xff] }
 0x393   : > { %v2760_v28 = vsel %vm2632_vm3, %v2434_v47, %v2696_v59 }
 0x394   : > { %v2438_v42 = vpop.f32.mrb[40].mxu1  ;;  %v2814_v4 = vpack.c.bf16 %v2760_v28, %v2759_v38  ;;  %v7263_v38 = vld [vmem:[#allocation32_spill] sm:$0xff] }
 0x395   : > { %v2439_v10 = vadd.f32 %v2438_v42, %v7257_v33  ;;  %v2440_v19 = vpop.f32.mrb[41].mxu1 }
 0x396   : > { %v2441_v52 = vpop.f32.mrb[42].mxu1  ;;  %4918 = vmatprep.subr.bf16.mxu0 %v2814_v4 }
 0x397   : > { %v2697_v15 = vmul.f32 0.01, %v2439_v10  ;;  %v2442_v22 = vadd.f32 %v2441_v52, %v7258_v3  ;;  %v2443_v16 = vpop.f32.mrb[43].mxu1  ;;  %4919 = vmatpush3.bf16.msra.mxu0 %v2806_v17  ;;  %vm2633_vm4 = vcmp.ge.f32.partialorder %v2439_v10, 0.0 }
 0x399   : > { %vm2634_vm5 = vcmp.ge.f32.partialorder %v2442_v22, 0.0  ;;  %v2698_v44 = vmul.f32 0.01, %v2442_v22  ;;  %v2761_v51 = vsel %vm2633_vm4, %v2439_v10, %v2697_v15  ;;  %v7264_v10 = vld [vmem:[#allocation10_spill] sm:$0xff] }
 0x39b   : > { %v2762_v63 = vsel %vm2634_vm5, %v2442_v22, %v2698_v44  ;;  %v7265_v22 = vld [vmem:[#allocation36_spill] sm:$0xff] }
 0x39c   : > { %v2446_v18 = vpop.f32.mrb[44].mxu1  ;;  %v2815_v13 = vpack.c.bf16 %v2762_v63, %v2761_v51 }
 0x39d   : > { %v2447_v26 = vadd.f32 %v2446_v18, %v7259_v31  ;;  %v2448_v27 = vpop.f32.mrb[45].mxu1  ;;  %v7266_v18 = vld [vmem:[#allocation12_spill] sm:$0xff] }
 0x39e   : > { %v2449_v21 = vpop.f32.mrb[46].mxu1  ;;  %4920 = vmatprep.subr.bf16.mxu0 %v2815_v13 }
 0x39f   : > { %v2699_v0 = vmul.f32 0.01, %v2447_v26  ;;  %v2450_v41 = vadd.f32 %v2449_v21, %v7260_v45  ;;  %v2451_v39 = vpop.f32.mrb[47].mxu1  ;;  %4921 = vmatpush3.bf16.msra.mxu0 %v2807_v29  ;;  %vm2635_vm6 = vcmp.ge.f32.partialorder %v2447_v26, 0.0  ;;  %v7267_v21 = vld [vmem:[#allocation40_spill] sm:$0xff] }
 0x3a1   : > { %vm2636_vm7 = vcmp.ge.f32.partialorder %v2450_v41, 0.0  ;;  %v2700_v37 = vmul.f32 0.01, %v2450_v41  ;;  %v2763_v12 = vsel %vm2635_vm6, %v2447_v26, %v2699_v0 }
 0x3a3   : > { %v2764_v17 = vsel %vm2636_vm7, %v2450_v41, %v2700_v37  ;;  %v7268_v37 = vld [vmem:[#allocation15_spill] sm:$0xff] }
 0x3a4   : > { %v2454_v9 = vpop.f32.mrb[48].mxu1  ;;  %v2816_v1 = vpack.c.bf16 %v2764_v17, %v2763_v12 }
 0x3a5   : > { %v2455_v48 = vadd.f32 %v2454_v9, %v7261_v46  ;;  %v2456_v6 = vpop.f32.mrb[49].mxu1  ;;  %v7269_v46 = vld [vmem:[#allocation45_spill] sm:$0xff] }
 0x3a6   : > { %v2457_v2 = vpop.f32.mrb[50].mxu1  ;;  %4922 = vmatprep.subr.bf16.mxu0 %v2816_v1 }
 0x3a7   : > { %v2701_v43 = vmul.f32 0.01, %v2455_v48  ;;  %v2458_v49 = vadd.f32 %v2457_v2, %v7262_v5  ;;  %v2459_v47 = vpop.f32.mrb[51].mxu1  ;;  %4923 = vmatpush3.bf16.msra.mxu0 %v2808_v56  ;;  %vm2637_vm8 = vcmp.ge.f32.partialorder %v2455_v48, 0.0 }
 0x3a9   : > { %vm2638_vm9 = vcmp.ge.f32.partialorder %v2458_v49, 0.0  ;;  %v2702_v23 = vmul.f32 0.01, %v2458_v49  ;;  %v2765_v62 = vsel %vm2637_vm8, %v2455_v48, %v2701_v43  ;;  %v5458_v43 = vld [vmem:[%s5771_s16] ss:$16 sps:$4 sm:$0xff]  }
 0x3ab   : > { %v2766_v29 = vsel %vm2638_vm9, %v2458_v49, %v2702_v23  ;;  %v7270_v49 = vld [vmem:[#allocation19_spill] sm:$0xff] }
 0x3ac   : > { %v2462_v60 = vpop.f32.mrb[52].mxu1  ;;  %v2817_v59 = vpack.c.bf16 %v2766_v29, %v2765_v62 }
 0x3ad   : > { %v2463_v28 = vadd.f32 %v2462_v60, %v7263_v38  ;;  %v2464_v42 = vpop.f32.mrb[53].mxu1 }
 0x3ae   : > { %v2465_v4 = vpop.f32.mrb[54].mxu1  ;;  %4924 = vmatprep.subr.bf16.mxu0 %v2817_v59  ;;  %v7271_v59 = vld [vmem:[#allocation47_spill] sm:$0xff] }
 0x3af   : > { %v2703_v33 = vmul.f32 0.01, %v2463_v28  ;;  %v2466_v19 = vadd.f32 %v2465_v4, %v7264_v10  ;;  %v2467_v52 = vpop.f32.mrb[55].mxu1  ;;  %4925 = vmatpush3.bf16.msra.mxu0 %v2809_v61  ;;  %vm2639_vm10 = vcmp.ge.f32.partialorder %v2463_v28, 0.0  ;;  %v7272_v42 = vld [vmem:[#allocation23_spill] sm:$0xff] }
 0x3b0   : > { %v5464_v10 = vld [vmem:[%s5771_s16 + $0x44] ss:$16 sps:$4 sm:$0xff]  }
 0x3b1   : > { %vm2640_vm11 = vcmp.ge.f32.partialorder %v2466_v19, 0.0  ;;  %v2704_v20 = vmul.f32 0.01, %v2466_v19  ;;  %v2767_v24 = vsel %vm2639_vm10, %v2463_v28, %v2703_v33 }
 0x3b3   : > { %v2768_v56 = vsel %vm2640_vm11, %v2466_v19, %v2704_v20 }
 0x3b4   : > { %v2470_v15 = vpop.f32.mrb[56].mxu1  ;;  %v2818_v3 = vpack.c.bf16 %v2768_v56, %v2767_v24 }
 0x3b5   : > { %v2471_v16 = vadd.f32 %v2470_v15, %v7265_v22  ;;  %v2472_v44 = vpop.f32.mrb[57].mxu1  ;;  %v7273_v15 = vld [vmem:[#allocation49_spill] sm:$0xff] }
 0x3b6   : > { %v2473_v51 = vpop.f32.mrb[58].mxu1  ;;  %4926 = vmatprep.subr.bf16.mxu0 %v2818_v3  ;;  %v5466_v44 = vld [vmem:[%s5771_s16 + $0x40] ss:$16 sps:$4 sm:$0xff]  }
 0x3b7   : > { %v2705_v63 = vmul.f32 0.01, %v2471_v16  ;;  %v2474_v13 = vadd.f32 %v2473_v51, %v7266_v18  ;;  %v2475_v31 = vpop.f32.mrb[59].mxu1  ;;  %4927 = vmatpush3.bf16.msra.mxu0 %v2810_v14  ;;  %vm2641_vm12 = vcmp.ge.f32.partialorder %v2471_v16, 0.0 }
 0x3b8   : > { %v5467_v31 = vld [vmem:[%s5771_s16 + $0x64] ss:$16 sps:$4 sm:$0xff]  }
 0x3b9   : > { %vm2642_vm13 = vcmp.ge.f32.partialorder %v2474_v13, 0.0  ;;  %v2706_v58 = vmul.f32 0.01, %v2474_v13  ;;  %v2769_v11 = vsel %vm2641_vm12, %v2471_v16, %v2705_v63  ;;  %v7274_v63 = vld [vmem:[#allocation27_spill] sm:$0xff] }
 0x3bb   : > { %v2770_v61 = vsel %vm2642_vm13, %v2474_v13, %v2706_v58 }
 0x3bc   : > { %v2478_v26 = vpop.f32.mrb[60].mxu1  ;;  %v2819_v27 = vpack.c.bf16 %v2770_v61, %v2769_v11 }
 0x3bd   : > { %v2479_v0 = vadd.f32 %v2478_v26, %v7267_v21  ;;  %v2480_v45 = vpop.f32.mrb[61].mxu1  ;;  %v7275_v21 = vld [vmem:[#allocation51_spill] sm:$0xff] }
 0x3be   : > { %v2481_v41 = vpop.f32.mrb[62].mxu1  ;;  %4928 = vmatprep.subr.bf16.mxu0 %v2819_v27 }
 0x3bf   : > { %v2707_v39 = vmul.f32 0.01, %v2479_v0  ;;  %v2482_v12 = vadd.f32 %v2481_v41, %v7268_v37  ;;  %v2483_v17 = vpop.f32.mrb[63].mxu1  ;;  %4929 = vmatpush3.bf16.msra.mxu0 %v2811_v25  ;;  %vm2643_vm14 = vcmp.ge.f32.partialorder %v2479_v0, 0.0 }
 0x3c1   : > { %vm2644_vm15 = vcmp.ge.f32.partialorder %v2482_v12, 0.0  ;;  %v2708_v30 = vmul.f32 0.01, %v2482_v12  ;;  %v2771_v57 = vsel %vm2643_vm14, %v2479_v0, %v2707_v39  ;;  %v5469_v39 = vld [vmem:[%s5771_s16 + $0x60] ss:$16 sps:$4 sm:$0xff]  }
 0x3c3   : > { %v2772_v14 = vsel %vm2644_vm15, %v2482_v12, %v2708_v30  ;;  %v7276_v12 = vld [vmem:[#allocation31_spill] sm:$0xff] }
 0x3c4   : > { %v2486_v9 = vpop.f32.mrb[64].mxu1  ;;  %v2820_v1 = vpack.c.bf16 %v2772_v14, %v2771_v57  ;;  %v5470_v57 = vld [vmem:[%s5771_s16 + $0x84] ss:$16 sps:$4 sm:$0xff]  }
 0x3c5   : > { %v2487_v48 = vadd.f32 %v2486_v9, %v7269_v46  ;;  %v2488_v6 = vpop.f32.mrb[65].mxu1 }
 0x3c6   : > { %v2489_v2 = vpop.f32.mrb[66].mxu1  ;;  %4930 = vmatprep.subr.bf16.mxu0 %v2820_v1  ;;  %v7277_v6 = vld [vmem:[#allocation53_spill] sm:$0xff] }
 0x3c7   : > { %v2709_v5 = vmul.f32 0.01, %v2487_v48  ;;  %v2490_v47 = vadd.f32 %v2489_v2, %v7270_v49  ;;  %v2491_v8 = vpop.f32.mrb[67].mxu1  ;;  %4931 = vmatpush3.bf16.msra.mxu0 %v2812_v50  ;;  %vm2645_vm0 = vcmp.ge.f32.partialorder %v2487_v48, 0.0  ;;  %v5472_v49 = vld [vmem:[%s5771_s16 + $0x80] ss:$16 sps:$4 sm:$0xff]  }
 0x3c8   : > { %v7278_v8 = vld [vmem:[#allocation35_spill] sm:$0xff] }
 0x3c9   : > { %vm2646_vm1 = vcmp.ge.f32.partialorder %v2490_v47, 0.0  ;;  %v2710_v25 = vmul.f32 0.01, %v2490_v47  ;;  %v6646_v23 = vsel %vm2645_vm0, %v2487_v48, %v2709_v5 }
 0x3ca   : > { %3446 = vmatmul.mubr.bf16.vlgmr.msra.gmra.mrb[32].mxu0 %v5458_v43 }
 0x3cb   : > { %v6648_v62 = vsel %vm2646_vm1, %v2490_v47, %v2710_v25  ;;  %3453 = vmatprep.mubr.bf16.mxu0 %v5461_v53 }
 0x3cc   : > { %v2821_v29 = vpack.c.bf16 %v6648_v62, %v6646_v23  ;;  %v2494_v60 = vpop.f32.mrb[68].mxu1  ;;  %v7286_v62 = vld [vmem:[#allocation25_spill] sm:$0xff] }
 0x3cd   : > { %v2495_v38 = vadd.f32 %v2494_v60, %v7271_v59  ;;  %v2496_v28 = vpop.f32.mrb[69].mxu1  ;;  %v5473_v60 = vld [vmem:[%s5771_s16 + $0xa4] ss:$16 sps:$4 sm:$0xff]  }
 0x3ce   : > { %v2497_v40 = vpop.f32.mrb[70].mxu1 }
 0x3cf   : > { %v2711_v50 = vmul.f32 0.01, %v2495_v38  ;;  %v2498_v4 = vadd.f32 %v2497_v40, %v7272_v42  ;;  %v2499_v33 = vpop.f32.mrb[71].mxu1  ;;  %vm2647_vm2 = vcmp.ge.f32.partialorder %v2495_v38, 0.0 }
 0x3d0   : > { %v5475_v33 = vld [vmem:[%s5771_s16 + $0xa0] ss:$16 sps:$4 sm:$0xff]  }
 0x3d1   : > { %vm2648_vm3 = vcmp.ge.f32.partialorder %v2498_v4, 0.0  ;;  %v2712_v19 = vmul.f32 0.01, %v2498_v4  ;;  %v6656_v52 = vsel %vm2647_vm2, %v2495_v38, %v2711_v50 }
 0x3d2   : > { %3454 = vmatmul.mubr.bf16.gmra.mrb[36].mxu0 %v5463_v35 }
 0x3d3   : > { %v6658_v20 = vsel %vm2648_vm3, %v2498_v4, %v2712_v19  ;;  %3461 = vmatprep.mubr.bf16.mxu0 %v5464_v10  ;;  %v7279_v19 = vld [vmem:[#allocation39_spill] sm:$0xff] }
 0x3d4   : > { %v2822_v24 = vpack.c.bf16 %v6658_v20, %v6656_v52  ;;  %v2502_v56 = vpop.f32.mrb[72].mxu1  ;;  %v7288_v20 = vld [vmem:[#allocation29_spill] sm:$0xff] }
 0x3d5   : > { %v2503_v3 = vadd.f32 %v2502_v56, %v7273_v15  ;;  %v2504_v22 = vpop.f32.mrb[73].mxu1 }
 0x3d6   : > { %v2505_v16 = vpop.f32.mrb[74].mxu1 }
 0x3d7   : > { %v2713_v51 = vmul.f32 0.01, %v2503_v3  ;;  %v2506_v18 = vadd.f32 %v2505_v16, %v7274_v63  ;;  %v2507_v13 = vpop.f32.mrb[75].mxu1  ;;  %vm2649_vm4 = vcmp.ge.f32.partialorder %v2503_v3, 0.0 }
 0x3d9   : > { %vm2650_vm5 = vcmp.ge.f32.partialorder %v2506_v18, 0.0  ;;  %v2714_v58 = vmul.f32 0.01, %v2506_v18  ;;  %v6666_v11 = vsel %vm2649_vm4, %v2503_v3, %v2713_v51  ;;  %v5476_v3 = vld [vmem:[%s5771_s16 + $0xc4] ss:$16 sps:$4 sm:$0xff]  }
 0x3da   : > { %3462 = vmatmul.mubr.bf16.gmra.mrb[40].mxu0 %v5466_v44 }
 0x3db   : > { %v6668_v61 = vsel %vm2650_vm5, %v2506_v18, %v2714_v58  ;;  %3469 = vmatprep.mubr.bf16.mxu0 %v5467_v31  ;;  %v5478_v31 = vld [vmem:[%s5771_s16 + $0xc0] ss:$16 sps:$4 sm:$0xff]  }
 0x3dc   : > { %v2823_v26 = vpack.c.bf16 %v6668_v61, %v6666_v11  ;;  %v2510_v27 = vpop.f32.mrb[76].mxu1  ;;  %v7290_v61 = vld [vmem:[#allocation33_spill] sm:$0xff] }
 0x3dd   : > { %v2511_v0 = vadd.f32 %v2510_v27, %v7275_v21  ;;  %v2512_v45 = vpop.f32.mrb[77].mxu1  ;;  %v7280_v27 = vld [vmem:[#allocation43_spill] sm:$0xff] }
 0x3de   : > { %v2513_v41 = vpop.f32.mrb[78].mxu1  ;;  %v5479_v45 = vld [vmem:[%s5771_s16 + $0xe4] ss:$16 sps:$4 sm:$0xff]  }
 0x3df   : > { %v2715_v37 = vmul.f32 0.01, %v2511_v0  ;;  %v2514_v17 = vadd.f32 %v2513_v41, %v7276_v12  ;;  %v2515_v30 = vpop.f32.mrb[79].mxu1  ;;  %vm2651_vm6 = vcmp.ge.f32.partialorder %v2511_v0, 0.0  ;;  %v6706_v41 = vpop.permute.xlu0 %2001 }
 0x3e1   : > { %vm2652_vm7 = vcmp.ge.f32.partialorder %v2514_v17, 0.0  ;;  %v2716_v14 = vmul.f32 0.01, %v2514_v17  ;;  %v6676_v9 = vsel %vm2651_vm6, %v2511_v0, %v2715_v37 }
 0x3e2   : > { %3470 = vmatmul.mubr.bf16.gmra.mrb[44].mxu0 %v5469_v39 }
 0x3e3   : > { %v6678_v1 = vsel %vm2652_vm7, %v2514_v17, %v2716_v14  ;;  %3477 = vmatprep.mubr.bf16.mxu0 %v5470_v57  ;;  %v1922_v14 = vpop.permute.xlu0 %1921 }
 0x3e4   : > { %v2824_v46 = vpack.c.bf16 %v6678_v1, %v6676_v9  ;;  %v2518_v48 = vpop.f32.mrb[80].mxu1  ;;  %v7291_v1 = vld [vmem:[#allocation37_spill] sm:$0xff] }
 0x3e5   : > { %v2519_v2 = vadd.f32 %v2518_v48, %v7277_v6  ;;  %v2520_v43 = vpop.f32.mrb[81].mxu1  ;;  %v5481_v6 = vld [vmem:[%s5771_s16 + $0xe0] ss:$16 sps:$4 sm:$0xff]  }
 0x3e6   : > { %v2521_v5 = vpop.f32.mrb[82].mxu1 }
 0x3e7   : > { %v2717_v47 = vmul.f32 0.01, %v2519_v2  ;;  %v2522_v53 = vadd.f32 %v2521_v5, %v7278_v8  ;;  %v2523_v25 = vpop.f32.mrb[83].mxu1  ;;  %vm2653_vm8 = vcmp.ge.f32.partialorder %v2519_v2, 0.0 }
 0x3e9   : > { %vm2654_vm9 = vcmp.ge.f32.partialorder %v2522_v53, 0.0  ;;  %v2718_v59 = vmul.f32 0.01, %v2522_v53  ;;  %v6686_v38 = vsel %vm2653_vm8, %v2519_v2, %v2717_v47 }
 0x3ea   : > { %3478 = vmatmul.mubr.bf16.gmra.mrb[48].mxu0 %v5472_v49  ;;  %v5482_v49 = vld [vmem:[%s5771_s16 + $0x104] ss:$16 sps:$4 sm:$0xff]  }
 0x3eb   : > { %v6688_v28 = vsel %vm2654_vm9, %v2522_v53, %v2718_v59  ;;  %3485 = vmatprep.mubr.bf16.mxu0 %v5473_v60  ;;  %v7281_v60 = vld [vmem:[#allocation44_spill] sm:$0xff] }
 0x3ec   : > { %v2825_v40 = vpack.c.bf16 %v6688_v28, %v6686_v38  ;;  %v2526_v35 = vpop.f32.mrb[84].mxu1  ;;  %v7292_v28 = vld [vmem:[#allocation41_spill] sm:$0xff] }
 0x3ed   : > { %v2527_v50 = vadd.f32 %v2526_v35, %v6419_v7  ;;  %v2528_v42 = vpop.f32.mrb[85].mxu1 }
 0x3ee   : > { %v2529_v4 = vpop.f32.mrb[86].mxu1  ;;  %v5484_v42 = vld [vmem:[%s5771_s16 + $0x100] ss:$16 sps:$4 sm:$0xff]  }
 0x3ef   : > { %v2719_v10 = vmul.f32 0.01, %v2527_v50  ;;  %v2530_v56 = vadd.f32 %v2529_v4, %v7279_v19  ;;  %v2531_v15 = vpop.f32.mrb[87].mxu1  ;;  %vm2655_vm10 = vcmp.ge.f32.partialorder %v2527_v50, 0.0 }
 0x3f1   : > { %vm2656_vm11 = vcmp.ge.f32.partialorder %v2530_v56, 0.0  ;;  %v2720_v22 = vmul.f32 0.01, %v2530_v56  ;;  %v6696_v16 = vsel %vm2655_vm10, %v2527_v50, %v2719_v10 }
 0x3f2   : > { %3486 = vmatmul.mubr.bf16.gmra.mrb[52].mxu0 %v5475_v33  ;;  %v7282_v33 = vld [vmem:[#allocation18_spill] sm:$0xff] }
 0x3f3   : > { %v6698_v44 = vsel %vm2656_vm11, %v2530_v56, %v2720_v22  ;;  %3493 = vmatprep.mubr.bf16.mxu0 %v5476_v3  ;;  %v5485_v56 = vld [vmem:[%s5771_s16 + $0x124] ss:$16 sps:$4 sm:$0xff]  }
 0x3f4   : > { %v2826_v7 = vpack.c.bf16 %v6698_v44, %v6696_v16  ;;  %v2534_v51 = vpop.f32.mrb[88].mxu1  ;;  %v5505_v16 = vld [vmem:[%s5771_s16 + $0x1e0] ss:$16 sps:$4 sm:$0xff]  }
 0x3f5   : > { %v2535_v63 = vadd.f32 %v2534_v51, %v6437_v54  ;;  %v2536_v18 = vpop.f32.mrb[89].mxu1 }
 0x3f6   : > { %v2537_v13 = vpop.f32.mrb[90].mxu1  ;;  %v7283_v18 = vld [vmem:[#allocation46_spill] sm:$0xff] }
 0x3f7   : > { %v2721_v58 = vmul.f32 0.01, %v2535_v63  ;;  %v2538_v21 = vadd.f32 %v2537_v13, %v7280_v27  ;;  %v2539_v0 = vpop.f32.mrb[91].mxu1  ;;  %vm2657_vm12 = vcmp.ge.f32.partialorder %v2535_v63, 0.0  ;;  %v5487_v27 = vld [vmem:[%s5771_s16 + $0x120] ss:$16 sps:$4 sm:$0xff]  }
 0x3f8   : > { %v7284_v0 = vld [vmem:[#allocation21_spill] sm:$0xff] }
 0x3f9   : > { %vm2658_vm13 = vcmp.ge.f32.partialorder %v2538_v21, 0.0  ;;  %v2722_v39 = vmul.f32 0.01, %v2538_v21  ;;  %v6708_v37 = vsel %vm2657_vm12, %v2535_v63, %v2721_v58 }
 0x3fa   : > { %3494 = vmatmul.mubr.bf16.gmra.mrb[56].mxu0 %v5478_v31 }
 0x3fb   : > { %v6710_v12 = vsel %vm2658_vm13, %v2538_v21, %v2722_v39  ;;  %3501 = vmatprep.mubr.bf16.mxu0 %v5479_v45 }
 0x3fc   : > { %v2827_v54 = vpack.c.bf16 %v6710_v12, %v6708_v37  ;;  %v2542_v17 = vpop.f32.mrb[92].mxu1  ;;  %v5509_v37 = vld [vmem:[%s5771_s16 + $0x2c] ss:$16 sps:$4 sm:$0xff]   ;;  %v5511_v12 = vld [vmem:[%s5771_s16 + $0x28] ss:$16 sps:$4 sm:$0xff]  }
 0x3fd   : > { %v2543_v30 = vadd.f32 %v2542_v17, %v6451_v36  ;;  %v2544_v57 = vpop.f32.mrb[93].mxu1  ;;  %v5488_v17 = vld [vmem:[%s5771_s16 + $0x144] ss:$16 sps:$4 sm:$0xff]  }
 0x3fe   : > { %v2545_v48 = vpop.f32.mrb[94].mxu1 }
 0x3ff   : > { %v2723_v2 = vmul.f32 0.01, %v2543_v30  ;;  %v2546_v43 = vadd.f32 %v2545_v48, %v1922_v14  ;;  %v2547_v5 = vpop.f32.mrb[95].mxu1  ;;  %vm2659_vm14 = vcmp.ge.f32.partialorder %v2543_v30, 0.0 }
 0x401   : > { %vm2660_vm15 = vcmp.ge.f32.partialorder %v2546_v43, 0.0  ;;  %v2724_v47 = vmul.f32 0.01, %v2546_v43  ;;  %v6717_v8 = vsel %vm2659_vm14, %v2543_v30, %v2723_v2  ;;  %v7285_v2 = vld [vmem:[#allocation48_spill] sm:$0xff] }
 0x402   : > { %3502 = vmatmul.mubr.bf16.gmra.mrb[60].mxu0 %v5481_v6 }
 0x403   : > { %v6719_v53 = vsel %vm2660_vm15, %v2546_v43, %v2724_v47  ;;  %3509 = vmatprep.mubr.bf16.mxu0 %v5482_v49  ;;  %v5490_v47 = vld [vmem:[%s5771_s16 + $0x140] ss:$16 sps:$4 sm:$0xff]  }
 0x404   : > { %v2828_v36 = vpack.c.bf16 %v6719_v53, %v6717_v8  ;;  %v2550_v25 = vpop.f32.mrb[96].mxu1  ;;  %v5518_v8 = vld [vmem:[%s5771_s16 + $0x8c] ss:$16 sps:$4 sm:$0xff]   ;;  %v5520_v53 = vld [vmem:[%s5771_s16 + $0x88] ss:$16 sps:$4 sm:$0xff]  }
 0x405   : > { %v2551_v59 = vadd.f32 %v2550_v25, %v7281_v60  ;;  %v2552_v35 = vpop.f32.mrb[97].mxu1  ;;  %v5491_v60 = vld [vmem:[%s5771_s16 + $0x164] ss:$16 sps:$4 sm:$0xff]  }
 0x406   : > { %v2553_v50 = vpop.f32.mrb[98].mxu1 }
 0x407   : > { %v2725_v4 = vmul.f32 0.01, %v2551_v59  ;;  %v2554_v10 = vadd.f32 %v2553_v50, %v7282_v33  ;;  %v2555_v19 = vpop.f32.mrb[99].mxu1  ;;  %vm2661_vm0 = vcmp.ge.f32.partialorder %v2551_v59, 0.0  ;;  %v7287_v33 = vld [vmem:[#allocation50_spill] sm:$0xff] }
 0x409   : > { %vm2662_vm1 = vcmp.ge.f32.partialorder %v2554_v10, 0.0  ;;  %v2726_v15 = vmul.f32 0.01, %v2554_v10  ;;  %v2789_v3 = vsel %vm2661_vm0, %v2551_v59, %v2725_v4 }
 0x40a   : > { %3510 = vmatmul.mubr.bf16.gmra.mrb[64].mxu0 %v5484_v42 }
 0x40b   : > { %v2790_v22 = vsel %vm2662_vm1, %v2554_v10, %v2726_v15  ;;  %3517 = vmatprep.mubr.bf16.mxu0 %v5485_v56  ;;  %v5493_v15 = vld [vmem:[%s5771_s16 + $0x160] ss:$16 sps:$4 sm:$0xff]  }
 0x40c   : > { %v2558_v51 = vpop.f32.mrb[100].mxu1  ;;  %v2829_v63 = vpack.c.bf16 %v2790_v22, %v2789_v3  ;;  %v5494_v22 = vld [vmem:[%s5771_s16 + $0x184] ss:$16 sps:$4 sm:$0xff]  }
 0x40d   : > { %v2559_v13 = vadd.f32 %v2558_v51, %v7283_v18  ;;  %v2560_v31 = vpop.f32.mrb[101].mxu1 }
 0x40e   : > { %v2561_v58 = vpop.f32.mrb[102].mxu1  ;;  %5028 = vmatprep.subr.bf16.mxu0 %v2829_v63 }
 0x40f   : > { %v2727_v21 = vmul.f32 0.01, %v2559_v13  ;;  %v2562_v45 = vadd.f32 %v2561_v58, %v7284_v0  ;;  %v2563_v39 = vpop.f32.mrb[103].mxu1  ;;  %5029 = vmatpush3.bf16.msra.mxu0 %v2821_v29  ;;  %vm2663_vm2 = vcmp.ge.f32.partialorder %v2559_v13, 0.0  ;;  %v7289_v58 = vld [vmem:[#allocation52_spill] sm:$0xff] }
 0x411   : > { %vm2664_vm3 = vcmp.ge.f32.partialorder %v2562_v45, 0.0  ;;  %v2728_v30 = vmul.f32 0.01, %v2562_v45  ;;  %v2791_v57 = vsel %vm2663_vm2, %v2559_v13, %v2727_v21 }
 0x412   : > { %3518 = vmatmul.mubr.bf16.gmra.mrb[68].mxu0 %v5487_v27 }
 0x413   : > { %v2792_v14 = vsel %vm2664_vm3, %v2562_v45, %v2728_v30  ;;  %3525 = vmatprep.mubr.bf16.mxu0 %v5488_v17  ;;  %v5496_v45 = vld [vmem:[%s5771_s16 + $0x180] ss:$16 sps:$4 sm:$0xff]   ;;  %v5497_v17 = vld [vmem:[%s5771_s16 + $0x1a4] ss:$16 sps:$4 sm:$0xff]  }
 0x414   : > { %v2566_v48 = vpop.f32.mrb[104].mxu1  ;;  %v2830_v6 = vpack.c.bf16 %v2792_v14, %v2791_v57 }
 0x415   : > { %v2567_v43 = vadd.f32 %v2566_v48, %v7285_v2  ;;  %v2568_v5 = vpop.f32.mrb[105].mxu1 }
 0x416   : > { %v2569_v49 = vpop.f32.mrb[106].mxu1  ;;  %5030 = vmatprep.subr.bf16.mxu0 %v2830_v6 }
 0x417   : > { %v2729_v23 = vmul.f32 0.01, %v2567_v43  ;;  %v2570_v29 = vadd.f32 %v2569_v49, %v7286_v62  ;;  %v2571_v25 = vpop.f32.mrb[107].mxu1  ;;  %5031 = vmatpush3.bf16.msra.mxu0 %v2822_v24  ;;  %vm2665_vm4 = vcmp.ge.f32.partialorder %v2567_v43, 0.0  ;;  %v5499_v49 = vld [vmem:[%s5771_s16 + $0x1a0] ss:$16 sps:$4 sm:$0xff]  }
 0x419   : > { %vm2666_vm5 = vcmp.ge.f32.partialorder %v2570_v29, 0.0  ;;  %v2730_v59 = vmul.f32 0.01, %v2570_v29  ;;  %v2793_v35 = vsel %vm2665_vm4, %v2567_v43, %v2729_v23  ;;  %v5500_v23 = vld [vmem:[%s5771_s16 + $0x1c4] ss:$16 sps:$4 sm:$0xff]  }
 0x41a   : > { %3526 = vmatmul.mubr.bf16.gmra.mrb[72].mxu0 %v5490_v47 }
 0x41b   : > { %v2794_v50 = vsel %vm2666_vm5, %v2570_v29, %v2730_v59  ;;  %3533 = vmatprep.mubr.bf16.mxu0 %v5491_v60 }
 0x41c   : > { %v2574_v42 = vpop.f32.mrb[108].mxu1  ;;  %v2831_v4 = vpack.c.bf16 %v2794_v50, %v2793_v35 }
 0x41d   : > { %v2575_v10 = vadd.f32 %v2574_v42, %v7287_v33  ;;  %v2576_v19 = vpop.f32.mrb[109].mxu1  ;;  %v5502_v42 = vld [vmem:[%s5771_s16 + $0x1c0] ss:$16 sps:$4 sm:$0xff]   ;;  %v5503_v33 = vld [vmem:[%s5771_s16 + $0x1e4] ss:$16 sps:$4 sm:$0xff]  }
 0x41e   : > { %v2577_v56 = vpop.f32.mrb[110].mxu1  ;;  %5032 = vmatprep.subr.bf16.mxu0 %v2831_v4 }
 0x41f   : > { %v2731_v52 = vmul.f32 0.01, %v2575_v10  ;;  %v2578_v24 = vadd.f32 %v2577_v56, %v7288_v20  ;;  %v2579_v3 = vpop.f32.mrb[111].mxu1  ;;  %5033 = vmatpush3.bf16.msra.mxu0 %v2823_v26  ;;  %vm2667_vm6 = vcmp.ge.f32.partialorder %v2575_v10, 0.0 }
 0x421   : > { %vm2668_vm7 = vcmp.ge.f32.partialorder %v2578_v24, 0.0  ;;  %v2732_v51 = vmul.f32 0.01, %v2578_v24  ;;  %v2795_v63 = vsel %vm2667_vm6, %v2575_v10, %v2731_v52 }
 0x422   : > { %3534 = vmatmul.mubr.bf16.gmra.mrb[76].mxu0 %v5493_v15 }
 0x423   : > { %v2796_v18 = vsel %vm2668_vm7, %v2578_v24, %v2732_v51  ;;  %3541 = vmatprep.mubr.bf16.mxu0 %v5494_v22  ;;  %v5508_v22 = vld [vmem:[%s5771_s16 + $0xc] ss:$16 sps:$4 sm:$0xff]  }
 0x424   : > { %v2582_v13 = vpop.f32.mrb[112].mxu1  ;;  %v2832_v31 = vpack.c.bf16 %v2796_v18, %v2795_v63 }
 0x425   : > { %v2583_v27 = vadd.f32 %v2582_v13, %v7289_v58  ;;  %v2584_v21 = vpop.f32.mrb[113].mxu1  ;;  %v5514_v13 = vld [vmem:[%s5771_s16 + $0x48] ss:$16 sps:$4 sm:$0xff]  }
 0x426   : > { %v2585_v0 = vpop.f32.mrb[114].mxu1  ;;  %5034 = vmatprep.subr.bf16.mxu0 %v2832_v31  ;;  %v5515_v31 = vld [vmem:[%s5771_s16 + $0x6c] ss:$16 sps:$4 sm:$0xff]   ;;  %v5517_v58 = vld [vmem:[%s5771_s16 + $0x68] ss:$16 sps:$4 sm:$0xff]  }
 0x427   : > { %v2733_v11 = vmul.f32 0.01, %v2583_v27  ;;  %v2586_v26 = vadd.f32 %v2585_v0, %v7290_v61  ;;  %v2587_v39 = vpop.f32.mrb[115].mxu1  ;;  %5035 = vmatpush3.bf16.msra.mxu0 %v2824_v46  ;;  %vm2669_vm8 = vcmp.ge.f32.partialorder %v2583_v27, 0.0  ;;  %v5524_v21 = vld [vmem:[%s5771_s16 + $0xcc] ss:$16 sps:$4 sm:$0xff]  }
 0x428   : > { %v5526_v0 = vld [vmem:[%s5771_s16 + $0xc8] ss:$16 sps:$4 sm:$0xff]   ;;  %v5530_v61 = vld [vmem:[%s5771_s16 + $0x10c] ss:$16 sps:$4 sm:$0xff]  }
 0x429   : > { %vm2670_vm9 = vcmp.ge.f32.partialorder %v2586_v26, 0.0  ;;  %v2734_v30 = vmul.f32 0.01, %v2586_v26  ;;  %v2797_v57 = vsel %vm2669_vm8, %v2583_v27, %v2733_v11  ;;  %v5523_v27 = vld [vmem:[%s5771_s16 + $0xa8] ss:$16 sps:$4 sm:$0xff]  }
 0x42a   : > { %3542 = vmatmul.mubr.bf16.gmra.mrb[80].mxu0 %v5496_v45  ;;  %v5527_v45 = vld [vmem:[%s5771_s16 + $0xec] ss:$16 sps:$4 sm:$0xff]   ;;  %v5529_v11 = vld [vmem:[%s5771_s16 + $0xe8] ss:$16 sps:$4 sm:$0xff]  }
 0x42b   : > { %v2798_v14 = vsel %vm2670_vm9, %v2586_v26, %v2734_v30  ;;  %3549 = vmatprep.mubr.bf16.mxu0 %v5497_v17  ;;  %v5532_v26 = vld [vmem:[%s5771_s16 + $0x108] ss:$16 sps:$4 sm:$0xff]   ;;  %v5533_v39 = vld [vmem:[%s5771_s16 + $0x12c] ss:$16 sps:$4 sm:$0xff]  }
 0x42c   : > { %v2590_v48 = vpop.f32.mrb[116].mxu1  ;;  %v2833_v6 = vpack.c.bf16 %v2798_v14, %v2797_v57  ;;  %v5535_v17 = vld [vmem:[%s5771_s16 + $0x128] ss:$16 sps:$4 sm:$0xff]   ;;  %v5536_v30 = vld [vmem:[%s5771_s16 + $0x14c] ss:$16 sps:$4 sm:$0xff]  }
 0x42d   : > { %v2591_v2 = vadd.f32 %v2590_v48, %v6412_v34  ;;  %v2592_v43 = vpop.f32.mrb[117].mxu1  ;;  %v5538_v57 = vld [vmem:[%s5771_s16 + $0x148] ss:$16 sps:$4 sm:$0xff]   ;;  %v5539_v14 = vld [vmem:[%s5771_s16 + $0x16c] ss:$16 sps:$4 sm:$0xff]  }
 0x42e   : > { %v2593_v5 = vpop.f32.mrb[118].mxu1  ;;  %5036 = vmatprep.subr.bf16.mxu0 %v2833_v6 }
 0x42f   : > { %v2735_v9 = vmul.f32 0.01, %v2591_v2  ;;  %v2594_v46 = vadd.f32 %v2593_v5, %v7291_v1  ;;  %v2595_v47 = vpop.f32.mrb[119].mxu1  ;;  %5037 = vmatpush3.bf16.msra.mxu0 %v2825_v40  ;;  %vm2671_vm10 = vcmp.ge.f32.partialorder %v2591_v2, 0.0 }
 0x431   : > { %vm2672_vm11 = vcmp.ge.f32.partialorder %v2594_v46, 0.0  ;;  %v2736_v62 = vmul.f32 0.01, %v2594_v46  ;;  %v2799_v34 = vsel %vm2671_vm10, %v2591_v2, %v2735_v9  ;;  %v5541_v2 = vld [vmem:[%s5771_s16 + $0x168] ss:$16 sps:$4 sm:$0xff]  }
 0x432   : > { %3550 = vmatmul.mubr.bf16.gmra.mrb[84].mxu0 %v5499_v49  ;;  %v5542_v49 = vld [vmem:[%s5771_s16 + $0x18c] ss:$16 sps:$4 sm:$0xff]  }
 0x433   : > { %v2800_v29 = vsel %vm2672_vm11, %v2594_v46, %v2736_v62  ;;  %3557 = vmatprep.mubr.bf16.mxu0 %v5500_v23  ;;  %v5544_v23 = vld [vmem:[%s5771_s16 + $0x188] ss:$16 sps:$4 sm:$0xff]  }
 0x434   : > { %v2598_v25 = vpop.f32.mrb[120].mxu1  ;;  %v2834_v60 = vpack.c.bf16 %v2800_v29, %v2799_v34  ;;  %v5545_v29 = vld [vmem:[%s5771_s16 + $0x1ac] ss:$16 sps:$4 sm:$0xff]  }
 0x435   : > { %v2599_v59 = vadd.f32 %v2598_v25, %v6428_v32  ;;  %v2600_v35 = vpop.f32.mrb[121].mxu1 }
 0x436   : > { %v2601_v50 = vpop.f32.mrb[122].mxu1  ;;  %5038 = vmatprep.subr.bf16.mxu0 %v2834_v60 }
 0x437   : > { %v2737_v38 = vmul.f32 0.01, %v2599_v59  ;;  %v2602_v40 = vadd.f32 %v2601_v50, %v7292_v28  ;;  %v2603_v4 = vpop.f32.mrb[123].mxu1  ;;  %5039 = vmatpush3.bf16.msra.mxu0 %v2826_v7  ;;  %vm2673_vm12 = vcmp.ge.f32.partialorder %v2599_v59, 0.0  ;;  %v5547_v50 = vld [vmem:[%s5771_s16 + $0x1a8] ss:$16 sps:$4 sm:$0xff]  }
 0x438   : > { %v5548_v28 = vld [vmem:[%s5771_s16 + $0x1cc] ss:$16 sps:$4 sm:$0xff]  }
 0x439   : > { %vm2674_vm13 = vcmp.ge.f32.partialorder %v2602_v40, 0.0  ;;  %v2738_v10 = vmul.f32 0.01, %v2602_v40  ;;  %v2801_v32 = vsel %vm2673_vm12, %v2599_v59, %v2737_v38 }
 0x43a   : > { %3558 = vmatmul.mubr.bf16.gmra.mrb[88].mxu0 %v5502_v42 }
 0x43b   : > { %v2802_v19 = vsel %vm2674_vm13, %v2602_v40, %v2738_v10  ;;  %3565 = vmatprep.mubr.bf16.mxu0 %v5503_v33 }
 0x43c   : > { %v2606_v56 = vpop.f32.mrb[124].mxu1  ;;  %v2835_v15 = vpack.c.bf16 %v2802_v19, %v2801_v32  ;;  %v5550_v32 = vld [vmem:[%s5771_s16 + $0x1c8] ss:$16 sps:$4 sm:$0xff]  }
 0x43d   : > { %v2607_v52 = vadd.f32 %v2606_v56, %v6444_v55  ;;  %v2608_v20 = vpop.f32.mrb[125].mxu1 }
 0x43e   : > { %v2609_v24 = vpop.f32.mrb[126].mxu1  ;;  %5040 = vmatprep.subr.bf16.mxu0 %v2835_v15  ;;  %v5551_v15 = vld [vmem:[%s5771_s16 + $0x1ec] ss:$16 sps:$4 sm:$0xff]  }
 0x43f   : > { %v2739_v44 = vmul.f32 0.01, %v2607_v52  ;;  %v2610_v7 = vadd.f32 %v2609_v24, %v6706_v41  ;;  %v2611_v3 = vpop.f32.mrb[127].mxu1  ;;  %5041 = vmatpush3.bf16.msra.mxu0 %v2827_v54  ;;  %vm2675_vm14 = vcmp.ge.f32.partialorder %v2607_v52, 0.0  ;;  %v5506_v41 = vld [vmem:[%s5771_s16 + $0x8] ss:$16 sps:$4 sm:$0xff]  }
 0x440   : > { %v5512_v54 = vld [vmem:[%s5771_s16 + $0x4c] ss:$16 sps:$4 sm:$0xff]  }
 0x441   : > { %vm2676_vm15 = vcmp.ge.f32.partialorder %v2610_v7, 0.0  ;;  %v2740_v55 = vmul.f32 0.01, %v2610_v7  ;;  %v2803_v51 = vsel %vm2675_vm14, %v2607_v52, %v2739_v44  ;;  %v5553_v44 = vld [vmem:[%s5771_s16 + $0x1e8] ss:$16 sps:$4 sm:$0xff]  }
 0x442   : > { %3566 = vmatmul.mubr.bf16.gmra.mrb[92].mxu0 %v5505_v16 }
 0x443   : > { %v2804_v63 = vsel %vm2676_vm15, %v2610_v7, %v2740_v55  ;;  %3606 = vmatprep.mubr.bf16.mxu0 %v5508_v22 }
 0x444   : > { %v2836_v18 = vpack.c.bf16 %v2804_v63, %v2803_v51 }
 0x446   : > { %5042 = vmatprep.subr.bf16.mxu0 %v2836_v18 }
 0x447   : > { %5043 = vmatpush3.bf16.msra.mxu0 %v2828_v36  ;;  %v5521_v36 = vld [vmem:[%s5771_s16 + $0xac] ss:$16 sps:$4 sm:$0xff]  }
 0x44a   : > { %3607 = vmatmul.mubr.bf16.vlgmr.msra.gmra.mrb[96].mxu0 %v5506_v41 }
 0x44b   : > { %3614 = vmatprep.mubr.bf16.mxu0 %v5509_v37 }
 0x452   : > { %3615 = vmatmul.mubr.bf16.gmra.mrb[100].mxu0 %v5511_v12 }
 0x453   : > { %3622 = vmatprep.mubr.bf16.mxu0 %v5512_v54 }
 0x45a   : > { %3623 = vmatmul.mubr.bf16.gmra.mrb[104].mxu0 %v5514_v13 }
 0x45b   : > { %3630 = vmatprep.mubr.bf16.mxu0 %v5515_v31 }
 0x462   : > { %3631 = vmatmul.mubr.bf16.gmra.mrb[108].mxu0 %v5517_v58 }
 0x463   : > { %3638 = vmatprep.mubr.bf16.mxu0 %v5518_v8 }
 0x46a   : > { %3639 = vmatmul.mubr.bf16.gmra.mrb[112].mxu0 %v5520_v53 }
 0x46b   : > { %3646 = vmatprep.mubr.bf16.mxu0 %v5521_v36 }
 0x472   : > { %3647 = vmatmul.mubr.bf16.gmra.mrb[116].mxu0 %v5523_v27 }
 0x473   : > { %3654 = vmatprep.mubr.bf16.mxu0 %v5524_v21 }
 0x47a   : > { %3655 = vmatmul.mubr.bf16.gmra.mrb[120].mxu0 %v5526_v0 }
 0x47b   : > { %3662 = vmatprep.mubr.bf16.mxu0 %v5527_v45 }
 0x482   : > { %3663 = vmatmul.mubr.bf16.gmra.mrb[124].mxu0 %v5529_v11 }
 0x483   : > { %3670 = vmatprep.mubr.bf16.mxu0 %v5530_v61 }
 0x48a   : > { %3671 = vmatmul.mubr.bf16.gmra.mrb[128].mxu0 %v5532_v26 }
 0x48b   : > { %3678 = vmatprep.mubr.bf16.mxu0 %v5533_v39 }
 0x492   : > { %3679 = vmatmul.mubr.bf16.gmra.mrb[132].mxu0 %v5535_v17 }
 0x493   : > { %3686 = vmatprep.mubr.bf16.mxu0 %v5536_v30 }
 0x49a   : > { %3687 = vmatmul.mubr.bf16.gmra.mrb[136].mxu0 %v5538_v57 }
 0x49b   : > { %3694 = vmatprep.mubr.bf16.mxu0 %v5539_v14 }
 0x49d   : > { %v4932_v48 = vpop.f32.mrb[32].mxu0 }
 0x49e   : > { %v4933_v6 = vpop.f32.mrb[33].mxu0 }
 0x49f   : > { %v6802_v43 = vadd.f32 %v4933_v6, %v4932_v48  ;;  %v4935_v5 = vpop.f32.mrb[34].mxu0 }
 0x4a0   : > { %v4936_v9 = vpop.f32.mrb[35].mxu0 }
 0x4a1   : > { %v6805_v1 = vadd.f32 %v4936_v9, %v4935_v5 }
 0x4a2   : > { %3695 = vmatmul.mubr.bf16.gmra.mrb[140].mxu0 %v5541_v2 }
 0x4a3   : > { %3702 = vmatprep.mubr.bf16.mxu0 %v5542_v49 }
 0x4a5   : > { %v4938_v46 = vpop.f32.mrb[36].mxu0 }
 0x4a6   : > { %v4939_v47 = vpop.f32.mrb[37].mxu0 }
 0x4a7   : > { %v6808_v62 = vadd.f32 %v4939_v47, %v4938_v46  ;;  %v4941_v34 = vpop.f32.mrb[38].mxu0 }
 0x4a8   : > { %v4942_v25 = vpop.f32.mrb[39].mxu0 }
 0x4a9   : > { %v6811_v60 = vadd.f32 %v4942_v25, %v4941_v34 }
 0x4aa   : > { %3703 = vmatmul.mubr.bf16.gmra.mrb[144].mxu0 %v5544_v23 }
 0x4ab   : > { %3710 = vmatprep.mubr.bf16.mxu0 %v5545_v29 }
 0x4ad   : > { %v4944_v59 = vpop.f32.mrb[40].mxu0 }
 0x4ae   : > { %v4945_v35 = vpop.f32.mrb[41].mxu0 }
 0x4af   : > { %v6814_v42 = vadd.f32 %v4945_v35, %v4944_v59  ;;  %v4947_v38 = vpop.f32.mrb[42].mxu0 }
 0x4b0   : > { %v4948_v40 = vpop.f32.mrb[43].mxu0 }
 0x4b1   : > { %v6817_v4 = vadd.f32 %v4948_v40, %v4947_v38  ;;  %v6858_v40 = vpop.permute.xlu1 %3015 }
 0x4b2   : > { %3711 = vmatmul.mubr.bf16.gmra.mrb[148].mxu0 %v5547_v50 }
 0x4b3   : > { %3718 = vmatprep.mubr.bf16.mxu0 %v5548_v28 }
 0x4b5   : > { %v4950_v33 = vpop.f32.mrb[44].mxu0 }
 0x4b6   : > { %v4951_v10 = vpop.f32.mrb[45].mxu0 }
 0x4b7   : > { %v6820_v19 = vadd.f32 %v4951_v10, %v4950_v33  ;;  %v4953_v56 = vpop.f32.mrb[46].mxu0  ;;  %v6860_v10 = vpop.permute.xlu0 %3020 }
 0x4b8   : > { %v4954_v52 = vpop.f32.mrb[47].mxu0 }
 0x4b9   : > { %v6823_v20 = vadd.f32 %v4954_v52, %v4953_v56 }
 0x4ba   : > { %3719 = vmatmul.mubr.bf16.gmra.mrb[152].mxu0 %v5550_v32 }
 0x4bb   : > { %3726 = vmatprep.mubr.bf16.mxu0 %v5551_v15 }
 0x4bd   : > { %v4956_v24 = vpop.f32.mrb[48].mxu0 }
 0x4be   : > { %v4957_v16 = vpop.f32.mrb[49].mxu0 }
 0x4bf   : > { %v6826_v7 = vadd.f32 %v4957_v16, %v4956_v24  ;;  %v4959_v3 = vpop.f32.mrb[50].mxu0  ;;  %v2936_v16 = vpop.permute.xlu1 %2935 }
 0x4c0   : > { %v4960_v22 = vpop.f32.mrb[51].mxu0 }
 0x4c1   : > { %v6828_v55 = vadd.f32 %v4960_v22, %v4959_v3 }
 0x4c2   : > { %3727 = vmatmul.mubr.bf16.gmra.mrb[156].mxu0 %v5553_v44  ;;  %v2941_v44 = vpop.permute.xlu0 %2940 }
 0x4c5   : > { %v4962_v51 = vpop.f32.mrb[52].mxu0 }
 0x4c6   : > { %v4963_v63 = vpop.f32.mrb[53].mxu0 }
 0x4c7   : > { %v6830_v18 = vadd.f32 %v4963_v63, %v4962_v51  ;;  %v4965_v41 = vpop.f32.mrb[54].mxu0 }
 0x4c8   : > { %v4966_v37 = vpop.f32.mrb[55].mxu0 }
 0x4c9   : > { %v6832_v12 = vadd.f32 %v4966_v37, %v4965_v41  ;;  %v6868_v41 = vpop.permute.xlu1 %3025 }
 0x4cd   : > { %v4968_v54 = vpop.f32.mrb[56].mxu0 }
 0x4ce   : > { %v4969_v13 = vpop.f32.mrb[57].mxu0 }
 0x4cf   : > { %v6834_v31 = vadd.f32 %v4969_v13, %v4968_v54  ;;  %v4971_v58 = vpop.f32.mrb[58].mxu0  ;;  %v6872_v13 = vpop.permute.xlu0 %3030 }
 0x4d0   : > { %v4972_v8 = vpop.f32.mrb[59].mxu0 }
 0x4d1   : > { %v6836_v53 = vadd.f32 %v4972_v8, %v4971_v58  ;;  %v2946_v8 = vpop.permute.xlu1 %2945 }
 0x4d5   : > { %v4974_v36 = vpop.f32.mrb[60].mxu0 }
 0x4d6   : > { %v4975_v27 = vpop.f32.mrb[61].mxu0 }
 0x4d7   : > { %v6838_v21 = vadd.f32 %v4975_v27, %v4974_v36  ;;  %v4977_v0 = vpop.f32.mrb[62].mxu0 }
 0x4d8   : > { %v4978_v45 = vpop.f32.mrb[63].mxu0 }
 0x4d9   : > { %v6840_v11 = vadd.f32 %v4978_v45, %v4977_v0  ;;  %v2951_v45 = vpop.permute.xlu0 %2950 }
 0x4dd   : > { %v4980_v61 = vpop.f32.mrb[64].mxu0 }
 0x4de   : > { %v4981_v26 = vpop.f32.mrb[65].mxu0 }
 0x4df   : > { %v6842_v39 = vadd.f32 %v4981_v26, %v4980_v61  ;;  %v4983_v17 = vpop.f32.mrb[66].mxu0 }
 0x4e0   : > { %v4984_v30 = vpop.f32.mrb[67].mxu0 }
 0x4e1   : > { %v6844_v57 = vadd.f32 %v4984_v30, %v4983_v17  ;;  %v6878_v17 = vpop.permute.xlu1 %3035 }
 0x4e5   : > { %v4986_v14 = vpop.f32.mrb[68].mxu0 }
 0x4e6   : > { %v4987_v48 = vpop.f32.mrb[69].mxu0 }
 0x4e7   : > { %v6846_v6 = vadd.f32 %v4987_v48, %v4986_v14  ;;  %v4989_v2 = vpop.f32.mrb[70].mxu0  ;;  %v6880_v14 = vpop.permute.xlu0 %3040 }
 0x4e8   : > { %v4990_v5 = vpop.f32.mrb[71].mxu0 }
 0x4e9   : > { %v6848_v49 = vadd.f32 %v4990_v5, %v4989_v2 }
 0x4ed   : > { %v4992_v9 = vpop.f32.mrb[72].mxu0 }
 0x4ee   : > { %v4993_v46 = vpop.f32.mrb[73].mxu0 }
 0x4ef   : > { %v6850_v47 = vadd.f32 %v4993_v46, %v4992_v9  ;;  %v4995_v23 = vpop.f32.mrb[74].mxu0 }
 0x4f0   : > { %v4996_v34 = vpop.f32.mrb[75].mxu0 }
 0x4f1   : > { %v6852_v29 = vadd.f32 %v4996_v34, %v4995_v23  ;;  %v2956_v23 = vpop.permute.xlu1 %2955  ;;  %v2961_v34 = vpop.permute.xlu0 %2960 }
 0x4f5   : > { %v4998_v25 = vpop.f32.mrb[76].mxu0 }
 0x4f6   : > { %v4999_v59 = vpop.f32.mrb[77].mxu0 }
 0x4f7   : > { %v6854_v35 = vadd.f32 %v4999_v59, %v4998_v25  ;;  %v5001_v50 = vpop.f32.mrb[78].mxu0 }
 0x4f8   : > { %v5002_v38 = vpop.f32.mrb[79].mxu0 }
 0x4f9   : > { %v6856_v28 = vadd.f32 %v5002_v38, %v5001_v50  ;;  %v3448_v50 = vadd.f32 %v6802_v43, %v2936_v16 }
 0x4fd   : > { %v5004_v33 = vpop.f32.mrb[80].mxu0 }
 0x4fe   : > { %v5005_v32 = vpop.f32.mrb[81].mxu0 }
 0x4ff   : > { %v6862_v56 = vadd.f32 %v5005_v32, %v5004_v33  ;;  %v5007_v15 = vpop.f32.mrb[82].mxu0  ;;  %v6887_v32 = vpop.permute.xlu1 %3045 }
 0x500   : > { %v5008_v52 = vpop.f32.mrb[83].mxu0 }
 0x501   : > { %v6864_v24 = vadd.f32 %v5008_v52, %v5007_v15  ;;  %v3451_v52 = vadd.f32 %v6805_v1, %v2941_v44  ;;  %v3456_v44 = vadd.f32 %v6808_v62, %v2946_v8 }
 0x505   : > { %v5010_v3 = vpop.f32.mrb[84].mxu0 }
 0x506   : > { %v5011_v22 = vpop.f32.mrb[85].mxu0 }
 0x507   : > { %v6866_v51 = vadd.f32 %v5011_v22, %v5010_v3  ;;  %v5013_v63 = vpop.f32.mrb[86].mxu0 }
 0x508   : > { %v5014_v37 = vpop.f32.mrb[87].mxu0 }
 0x509   : > { %v6870_v54 = vadd.f32 %v5014_v37, %v5013_v63  ;;  %v6890_v63 = vpop.permute.xlu0 %3050 }
 0x50d   : > { %v5016_v58 = vpop.f32.mrb[88].mxu0 }
 0x50e   : > { %v5017_v36 = vpop.f32.mrb[89].mxu0 }
 0x50f   : > { %v6874_v27 = vadd.f32 %v5017_v36, %v5016_v58  ;;  %v5019_v0 = vpop.f32.mrb[90].mxu0  ;;  %v5556_v36 = vld [vmem:[%s6896_s25 + $0x4] ss:$8 sps:$4 sm:$0xff]  }
 0x510   : > { %v5020_v61 = vpop.f32.mrb[91].mxu0  ;;  %4071 = vmatprep.mubr.bf16.mxu0 %v5556_v36 }
 0x511   : > { %v6876_v26 = vadd.f32 %v5020_v61, %v5019_v0  ;;  %v2966_v0 = vpop.permute.xlu1 %2965 }
 0x515   : > { %v5022_v30 = vpop.f32.mrb[92].mxu0 }
 0x516   : > { %v5023_v48 = vpop.f32.mrb[93].mxu0 }
 0x517   : > { %v6882_v2 = vadd.f32 %v5023_v48, %v5022_v30  ;;  %v5025_v5 = vpop.f32.mrb[94].mxu0 }
 0x518   : > { %v5026_v9 = vpop.f32.mrb[95].mxu0 }
 0x519   : > { %v6884_v46 = vadd.f32 %v5026_v9, %v5025_v5  ;;  %v5559_v9 = vld [vmem:[%s6896_s25 + $0x24] ss:$8 sps:$4 sm:$0xff]  }
 0x51a   : > { %4087 = vmatprep.mubr.bf16.mxu1 %v5559_v9 }
 0x51b   : > { %7293 = vst [vmem:[#allocation22_spill] sm:$0xff] %v6884_v46  ;;  %v6904_v46 = vpop.permute.xlu1 %3055 }
 0x51d   : > { %v5044_v25 = vpop.f32.mrb[96].mxu0 }
 0x51e   : > { %v5045_v59 = vpop.f32.mrb[97].mxu0 }
 0x51f   : > { %v5046_v38 = vadd.f32 %v5045_v59, %v5044_v25  ;;  %v5047_v33 = vpop.f32.mrb[98].mxu0  ;;  %v2971_v25 = vpop.permute.xlu0 %2970 }
 0x520   : > { %v5048_v15 = vpop.f32.mrb[99].mxu0 }
 0x521   : > { %v3609_v3 = vadd.f32 %v5046_v38, %v3448_v50  ;;  %v5049_v22 = vadd.f32 %v5048_v15, %v5047_v33  ;;  %v3459_v38 = vadd.f32 %v6811_v60, %v2951_v45 }
 0x523   : > { %v3767_v37 = vmul.f32 0.01, %v3609_v3  ;;  %v3612_v58 = vadd.f32 %v5049_v22, %v3451_v52  ;;  %vm3735_vm0 = vcmp.ge.f32.partialorder %v3609_v3, 0.0 }
 0x525   : > { %vm3736_vm1 = vcmp.ge.f32.partialorder %v3612_v58, 0.0  ;;  %v3768_v43 = vmul.f32 0.01, %v3612_v58  ;;  %v5050_v16 = vpop.f32.mrb[100].mxu0  ;;  %v3799_v61 = vsel %vm3735_vm0, %v3609_v3, %v3767_v37  ;;  %v6906_v3 = vpop.permute.xlu0 %3060 }
 0x526   : > { %v5051_v1 = vpop.f32.mrb[101].mxu0 }
 0x527   : > { %v3800_v30 = vsel %vm3736_vm1, %v3612_v58, %v3768_v43  ;;  %v5052_v48 = vadd.f32 %v5051_v1, %v5050_v16  ;;  %v5053_v5 = vpop.f32.mrb[102].mxu0  ;;  %v3464_v58 = vadd.f32 %v6814_v42, %v2956_v23  ;;  %v3472_v23 = vadd.f32 %v6820_v19, %v2966_v0 }
 0x528   : > { %v5054_v59 = vpop.f32.mrb[103].mxu0  ;;  %v6901_v50 = vpack.c.bf16 %v3800_v30, %v3799_v61 }
 0x529   : > { %v3617_v33 = vadd.f32 %v5052_v48, %v3456_v44  ;;  %v5055_v15 = vadd.f32 %v5054_v59, %v5053_v5  ;;  %v3467_v44 = vadd.f32 %v6817_v4, %v2961_v34  ;;  %v2976_v48 = vpop.permute.xlu1 %2975  ;;  %v2981_v59 = vpop.permute.xlu0 %2980 }
 0x52b   : > { %v3769_v52 = vmul.f32 0.01, %v3617_v33  ;;  %v3620_v22 = vadd.f32 %v5055_v15, %v3459_v38  ;;  %vm3737_vm2 = vcmp.ge.f32.partialorder %v3617_v33, 0.0 }
 0x52d   : > { %vm3738_vm3 = vcmp.ge.f32.partialorder %v3620_v22, 0.0  ;;  %v3770_v62 = vmul.f32 0.01, %v3620_v22  ;;  %v5056_v8 = vpop.f32.mrb[104].mxu0  ;;  %v3801_v43 = vsel %vm3737_vm2, %v3617_v33, %v3769_v52 }
 0x52e   : > { %v5057_v37 = vpop.f32.mrb[105].mxu0 }
 0x52f   : > { %v3802_v16 = vsel %vm3738_vm3, %v3620_v22, %v3770_v62  ;;  %v5058_v36 = vadd.f32 %v5057_v37, %v5056_v8  ;;  %v5059_v60 = vpop.f32.mrb[106].mxu0  ;;  %v6913_v8 = vpop.permute.xlu1 %3065  ;;  %v3475_v37 = vadd.f32 %v6823_v20, %v2971_v25 }
 0x530   : > { %v5060_v45 = vpop.f32.mrb[107].mxu0  ;;  %v6909_v1 = vpack.c.bf16 %v3802_v16, %v3801_v43  ;;  %v6918_v16 = vpop.permute.xlu0 %3070 }
 0x531   : > { %v3625_v61 = vadd.f32 %v5058_v36, %v3464_v58  ;;  %v5061_v30 = vadd.f32 %v5060_v45, %v5059_v60 }
 0x533   : > { %v3771_v5 = vmul.f32 0.01, %v3625_v61  ;;  %v3628_v9 = vadd.f32 %v5061_v30, %v3467_v44  ;;  %vm3739_vm4 = vcmp.ge.f32.partialorder %v3625_v61, 0.0  ;;  %v2986_v45 = vpop.permute.xlu1 %2985 }
 0x535   : > { %vm3740_vm5 = vcmp.ge.f32.partialorder %v3628_v9, 0.0  ;;  %v3772_v38 = vmul.f32 0.01, %v3628_v9  ;;  %v5062_v15 = vpop.f32.mrb[108].mxu0  ;;  %v3803_v33 = vsel %vm3739_vm4, %v3625_v61, %v3771_v5  ;;  %v3480_v61 = vadd.f32 %v6826_v7, %v2976_v48 }
 0x536   : > { %v5063_v42 = vpop.f32.mrb[109].mxu0 }
 0x537   : > { %v3804_v52 = vsel %vm3740_vm5, %v3628_v9, %v3772_v38  ;;  %v5064_v22 = vadd.f32 %v5063_v42, %v5062_v15  ;;  %v5065_v62 = vpop.f32.mrb[110].mxu0  ;;  %v2991_v15 = vpop.permute.xlu0 %2990  ;;  %v3483_v42 = vadd.f32 %v6828_v55, %v2981_v59 }
 0x538   : > { %v5066_v4 = vpop.f32.mrb[111].mxu0  ;;  %v6915_v34 = vpack.c.bf16 %v3804_v52, %v3803_v33 }
 0x539   : > { %v3633_v58 = vadd.f32 %v5064_v22, %v3472_v23  ;;  %v5067_v43 = vadd.f32 %v5066_v4, %v5065_v62  ;;  %v6924_v62 = vpop.permute.xlu1 %3075 }
 0x53b   : > { %v3773_v36 = vmul.f32 0.01, %v3633_v58  ;;  %v3636_v60 = vadd.f32 %v5067_v43, %v3475_v37  ;;  %vm3741_vm6 = vcmp.ge.f32.partialorder %v3633_v58, 0.0  ;;  %v6926_v48 = vpop.permute.xlu0 %3080 }
 0x53d   : > { %vm3742_vm7 = vcmp.ge.f32.partialorder %v3636_v60, 0.0  ;;  %v3774_v19 = vmul.f32 0.01, %v3636_v60  ;;  %v5068_v0 = vpop.f32.mrb[112].mxu0  ;;  %v3805_v30 = vsel %vm3741_vm6, %v3633_v58, %v3773_v36  ;;  %v3488_v58 = vadd.f32 %v6830_v18, %v2986_v45 }
 0x53e   : > { %v5069_v44 = vpop.f32.mrb[113].mxu0 }
 0x53f   : > { %v3806_v5 = vsel %vm3742_vm7, %v3636_v60, %v3774_v19  ;;  %v5070_v9 = vadd.f32 %v5069_v44, %v5068_v0  ;;  %v5071_v38 = vpop.f32.mrb[114].mxu0  ;;  %v3491_v0 = vadd.f32 %v6832_v12, %v2991_v15 }
 0x540   : > { %v5072_v20 = vpop.f32.mrb[115].mxu0  ;;  %v6921_v25 = vpack.c.bf16 %v3806_v5, %v3805_v30  ;;  %v2996_v30 = vpop.permute.xlu1 %2995 }
 0x541   : > { %v3641_v23 = vadd.f32 %v5070_v9, %v3480_v61  ;;  %v5073_v33 = vadd.f32 %v5072_v20, %v5071_v38  ;;  %v3001_v38 = vpop.permute.xlu0 %3000 }
 0x543   : > { %v3775_v52 = vmul.f32 0.01, %v3641_v23  ;;  %v3644_v22 = vadd.f32 %v5073_v33, %v3483_v42  ;;  %vm3743_vm8 = vcmp.ge.f32.partialorder %v3641_v23, 0.0  ;;  %v4523_v42 = vld [vmem:[%s5753_s26 + $0x500] sm:$0x7] }
 0x544   : > { %4526 = vperm.xlu1 %5344, %v4523_v42   ;;  %v6934_v12 = vpop.permute.xlu1 %3085 }
 0x545   : > { %vm3744_vm9 = vcmp.ge.f32.partialorder %v3644_v22, 0.0  ;;  %v3776_v4 = vmul.f32 0.01, %v3644_v22  ;;  %v5074_v7 = vpop.f32.mrb[116].mxu0  ;;  %v3807_v43 = vsel %vm3743_vm8, %v3641_v23, %v3775_v52  ;;  %v3496_v23 = vadd.f32 %v6834_v31, %v2996_v30 }
 0x546   : > { %v5075_v37 = vpop.f32.mrb[117].mxu0 }
 0x547   : > { %v3808_v36 = vsel %vm3744_vm9, %v3644_v22, %v3776_v4  ;;  %v5076_v60 = vadd.f32 %v5075_v37, %v5074_v7  ;;  %v5077_v55 = vpop.f32.mrb[118].mxu0  ;;  %v3499_v37 = vadd.f32 %v6836_v53, %v3001_v38 }
 0x548   : > { %v5078_v59 = vpop.f32.mrb[119].mxu0  ;;  %v6929_v19 = vpack.c.bf16 %v3808_v36, %v3807_v43  ;;  %v6939_v36 = vpop.permute.xlu0 %3090 }
 0x549   : > { %v3649_v44 = vadd.f32 %v5076_v60, %v3488_v58  ;;  %v5079_v61 = vadd.f32 %v5078_v59, %v5077_v55 }
 0x54b   : > { %v3777_v5 = vmul.f32 0.01, %v3649_v44  ;;  %v3652_v9 = vadd.f32 %v5079_v61, %v3491_v0  ;;  %vm3745_vm10 = vcmp.ge.f32.partialorder %v3649_v44, 0.0  ;;  %v3006_v0 = vpop.permute.xlu1 %3005 }
 0x54c   : > { %v3504_v61 = vadd.f32 %v6838_v21, %v3006_v0  ;;  %v3512_v21 = vadd.f32 %v6842_v39, %v6858_v40  ;;  %v3520_v39 = vadd.f32 %v6846_v6, %v6868_v41 }
 0x54d   : > { %vm3746_vm11 = vcmp.ge.f32.partialorder %v3652_v9, 0.0  ;;  %v3778_v20 = vmul.f32 0.01, %v3652_v9  ;;  %v5080_v18 = vpop.f32.mrb[120].mxu0  ;;  %v3809_v33 = vsel %vm3745_vm10, %v3649_v44, %v3777_v5 }
 0x54e   : > { %v5081_v45 = vpop.f32.mrb[121].mxu0 }
 0x54f   : > { %v3810_v52 = vsel %vm3746_vm11, %v3652_v9, %v3778_v20  ;;  %v5082_v22 = vadd.f32 %v5081_v45, %v5080_v18  ;;  %v5083_v4 = vpop.f32.mrb[122].mxu0  ;;  %v3011_v18 = vpop.permute.xlu0 %3010 }
 0x550   : > { %v5084_v15 = vpop.f32.mrb[123].mxu0  ;;  %v6936_v7 = vpack.c.bf16 %v3810_v52, %v3809_v33  ;;  %v3507_v45 = vadd.f32 %v6840_v11, %v3011_v18  ;;  %v3515_v11 = vadd.f32 %v6844_v57, %v6860_v10  ;;  %v3523_v57 = vadd.f32 %v6848_v49, %v6872_v13 }
 0x551   : > { %v3657_v58 = vadd.f32 %v5082_v22, %v3496_v23  ;;  %v5085_v43 = vadd.f32 %v5084_v15, %v5083_v4 }
 0x553   : > { %v3779_v60 = vmul.f32 0.01, %v3657_v58  ;;  %v3660_v55 = vadd.f32 %v5085_v43, %v3499_v37  ;;  %vm3747_vm12 = vcmp.ge.f32.partialorder %v3657_v58, 0.0 }
 0x555   : > { %vm3748_vm13 = vcmp.ge.f32.partialorder %v3660_v55, 0.0  ;;  %v3780_v31 = vmul.f32 0.01, %v3660_v55  ;;  %v5086_v59 = vpop.f32.mrb[124].mxu0  ;;  %v3811_v30 = vsel %vm3747_vm12, %v3657_v58, %v3779_v60 }
 0x556   : > { %v5087_v44 = vpop.f32.mrb[125].mxu0 }
 0x557   : > { %v3812_v5 = vsel %vm3748_vm13, %v3660_v55, %v3780_v31  ;;  %v5088_v9 = vadd.f32 %v5087_v44, %v5086_v59  ;;  %v5089_v20 = vpop.f32.mrb[126].mxu0 }
 0x558   : > { %v5090_v53 = vpop.f32.mrb[127].mxu0  ;;  %v6942_v38 = vpack.c.bf16 %v3812_v5, %v3811_v30 }
 0x559   : > { %v3665_v42 = vadd.f32 %v5088_v9, %v3504_v61  ;;  %v5091_v23 = vadd.f32 %v5090_v53, %v5089_v20 }
 0x55b   : > { %v3781_v33 = vmul.f32 0.01, %v3665_v42  ;;  %v3668_v52 = vadd.f32 %v5091_v23, %v3507_v45  ;;  %vm3749_vm14 = vcmp.ge.f32.partialorder %v3665_v42, 0.0 }
 0x55d   : > { %vm3750_vm15 = vcmp.ge.f32.partialorder %v3668_v52, 0.0  ;;  %v3782_v22 = vmul.f32 0.01, %v3668_v52  ;;  %v5092_v4 = vpop.f32.mrb[128].mxu0  ;;  %v3813_v37 = vsel %vm3749_vm14, %v3665_v42, %v3781_v33 }
 0x55e   : > { %v5093_v15 = vpop.f32.mrb[129].mxu0 }
 0x55f   : > { %v3814_v58 = vsel %vm3750_vm15, %v3668_v52, %v3782_v22  ;;  %v5094_v43 = vadd.f32 %v5093_v15, %v5092_v4  ;;  %v5095_v60 = vpop.f32.mrb[130].mxu0  ;;  %v3528_v4 = vadd.f32 %v6850_v47, %v6878_v17 }
 0x560   : > { %v5096_v55 = vpop.f32.mrb[131].mxu0  ;;  %v6947_v31 = vpack.c.bf16 %v3814_v58, %v3813_v37 }
 0x561   : > { %v3673_v59 = vadd.f32 %v5094_v43, %v3512_v21  ;;  %v5097_v0 = vadd.f32 %v5096_v55, %v5095_v60  ;;  %v3531_v43 = vadd.f32 %v6852_v29, %v6880_v14 }
 0x563   : > { %v3783_v44 = vmul.f32 0.01, %v3673_v59  ;;  %v3676_v61 = vadd.f32 %v5097_v0, %v3515_v11  ;;  %vm3751_vm0 = vcmp.ge.f32.partialorder %v3673_v59, 0.0  ;;  %v3536_v0 = vadd.f32 %v6854_v35, %v6887_v32 }
 0x565   : > { %vm3752_vm1 = vcmp.ge.f32.partialorder %v3676_v61, 0.0  ;;  %v3784_v30 = vmul.f32 0.01, %v3676_v61  ;;  %v5098_v5 = vpop.f32.mrb[132].mxu0  ;;  %v3815_v18 = vsel %vm3751_vm0, %v3673_v59, %v3783_v44 }
 0x566   : > { %v5099_v9 = vpop.f32.mrb[133].mxu0 }
 0x567   : > { %v5100_v40 = vadd.f32 %v5099_v9, %v5098_v5  ;;  %v5101_v20 = vpop.f32.mrb[134].mxu0  ;;  %v3816_v53 = vsel %vm3752_vm1, %v3676_v61, %v3784_v30  ;;  %v3539_v9 = vadd.f32 %v6856_v28, %v6890_v63 }
 0x568   : > { %v5102_v45 = vpop.f32.mrb[135].mxu0  ;;  %v3839_v42 = vpack.c.bf16 %v3816_v53, %v3815_v18  ;;  %v3544_v53 = vadd.f32 %v6862_v56, %v6904_v46 }
 0x569   : > { %v3681_v10 = vadd.f32 %v5100_v40, %v3520_v39  ;;  %v5103_v23 = vadd.f32 %v5102_v45, %v5101_v20 }
 0x56a   : > { %5140 = vmatprep.subr.bf16.mxu0 %v3839_v42  ;;  %5252 = vmatprep.subr.bf16.mxu1 %v3839_v42 }
 0x56b   : > { %v3785_v33 = vmul.f32 0.01, %v3681_v10  ;;  %v3684_v52 = vadd.f32 %v5103_v23, %v3523_v57  ;;  %5141 = vmatpush3.bf16.msra.mxu0 %v6901_v50  ;;  %5260 = vmatpush3.bf16.msra.mxu1 %v6901_v50  ;;  %vm3753_vm2 = vcmp.ge.f32.partialorder %v3681_v10, 0.0  ;;  %v3547_v23 = vadd.f32 %v6864_v24, %v6906_v3 }
 0x56d   : > { %vm3754_vm3 = vcmp.ge.f32.partialorder %v3684_v52, 0.0  ;;  %v3786_v6 = vmul.f32 0.01, %v3684_v52  ;;  %v5104_v41 = vpop.f32.mrb[136].mxu0  ;;  %v3817_v13 = vsel %vm3753_vm2, %v3681_v10, %v3785_v33 }
 0x56e   : > { %v5105_v22 = vpop.f32.mrb[137].mxu0 }
 0x56f   : > { %v5106_v15 = vadd.f32 %v5105_v22, %v5104_v41  ;;  %v5107_v49 = vpop.f32.mrb[138].mxu0  ;;  %v3818_v21 = vsel %vm3754_vm3, %v3684_v52, %v3786_v6  ;;  %v3552_v22 = vadd.f32 %v6866_v51, %v6913_v8 }
 0x570   : > { %v5108_v37 = vpop.f32.mrb[139].mxu0  ;;  %v3840_v58 = vpack.c.bf16 %v3818_v21, %v3817_v13  ;;  %v3555_v21 = vadd.f32 %v6870_v54, %v6918_v16 }
 0x571   : > { %v3689_v60 = vadd.f32 %v5106_v15, %v3528_v4  ;;  %v5109_v55 = vadd.f32 %v5108_v37, %v5107_v49 }
 0x572   : > { %5142 = vmatprep.subr.bf16.mxu0 %v3840_v58  ;;  %5253 = vmatprep.subr.bf16.mxu1 %v3840_v58 }
 0x573   : > { %v3787_v50 = vmul.f32 0.01, %v3689_v60  ;;  %v3692_v11 = vadd.f32 %v5109_v55, %v3531_v43  ;;  %5143 = vmatpush3.bf16.msra.mxu0 %v6909_v1  ;;  %5261 = vmatpush3.bf16.msra.mxu1 %v6909_v1  ;;  %vm3755_vm4 = vcmp.ge.f32.partialorder %v3689_v60, 0.0  ;;  %v3560_v55 = vadd.f32 %v6874_v27, %v6924_v62 }
 0x575   : > { %vm3756_vm5 = vcmp.ge.f32.partialorder %v3692_v11, 0.0  ;;  %v3788_v47 = vmul.f32 0.01, %v3692_v11  ;;  %v5110_v17 = vpop.f32.mrb[140].mxu0  ;;  %v3819_v14 = vsel %vm3755_vm4, %v3689_v60, %v3787_v50 }
 0x576   : > { %v5111_v59 = vpop.f32.mrb[141].mxu0 }
 0x577   : > { %v5112_v44 = vadd.f32 %v5111_v59, %v5110_v17  ;;  %v5113_v29 = vpop.f32.mrb[142].mxu0  ;;  %v3820_v61 = vsel %vm3756_vm5, %v3692_v11, %v3788_v47  ;;  %v3563_v59 = vadd.f32 %v6876_v26, %v6926_v48 }
 0x578   : > { %v5114_v30 = vpop.f32.mrb[143].mxu0  ;;  %v3841_v5 = vpack.c.bf16 %v3820_v61, %v3819_v14  ;;  %v3568_v61 = vadd.f32 %v6882_v2, %v6934_v12 }
 0x579   : > { %v3697_v39 = vadd.f32 %v5112_v44, %v3536_v0  ;;  %v5115_v40 = vadd.f32 %v5114_v30, %v5113_v29 }
 0x57a   : > { %5144 = vmatprep.subr.bf16.mxu0 %v3841_v5  ;;  %5254 = vmatprep.subr.bf16.mxu1 %v3841_v5 }
 0x57b   : > { %v3789_v1 = vmul.f32 0.01, %v3697_v39  ;;  %v3700_v20 = vadd.f32 %v5115_v40, %v3539_v9  ;;  %5145 = vmatpush3.bf16.msra.mxu0 %v6915_v34  ;;  %5262 = vmatpush3.bf16.msra.mxu1 %v6915_v34  ;;  %vm3757_vm6 = vcmp.ge.f32.partialorder %v3697_v39, 0.0  ;;  %v7294_v40 = vld [vmem:[#allocation22_spill] sm:$0xff] }
 0x57d   : > { %vm3758_vm7 = vcmp.ge.f32.partialorder %v3700_v20, 0.0  ;;  %v3790_v35 = vmul.f32 0.01, %v3700_v20  ;;  %v5116_v32 = vpop.f32.mrb[144].mxu0  ;;  %v3821_v63 = vsel %vm3757_vm6, %v3697_v39, %v3789_v1  ;;  %v3571_v1 = vadd.f32 %v7294_v40, %v6939_v36 }
 0x57e   : > { %v5117_v18 = vpop.f32.mrb[145].mxu0 }
 0x57f   : > { %v5118_v45 = vadd.f32 %v5117_v18, %v5116_v32  ;;  %v5119_v28 = vpop.f32.mrb[146].mxu0  ;;  %v3822_v42 = vsel %vm3758_vm7, %v3700_v20, %v3790_v35 }
 0x580   : > { %v5120_v57 = vpop.f32.mrb[147].mxu0  ;;  %v3842_v10 = vpack.c.bf16 %v3822_v42, %v3821_v63  ;;  %v5564_v63 = vld [vmem:[%s6896_s25 + $0x10] ss:$8 sps:$4 sm:$0xff]  }
 0x581   : > { %v3705_v33 = vadd.f32 %v5118_v45, %v3544_v53  ;;  %v5121_v52 = vadd.f32 %v5120_v57, %v5119_v28  ;;  %v5554_v53 = vld [vmem:[%s6896_s25] ss:$8 sps:$4 sm:$0xff]   ;;  %v5562_v28 = vld [vmem:[%s6896_s25 + $0x34] ss:$8 sps:$4 sm:$0xff]   ;;  %v5565_v42 = vld [vmem:[%s6896_s25 + $0x30] ss:$8 sps:$4 sm:$0xff]  }
 0x582   : > { %5146 = vmatprep.subr.bf16.mxu0 %v3842_v10  ;;  %5255 = vmatprep.subr.bf16.mxu1 %v3842_v10  ;;  %v5557_v45 = vld [vmem:[%s6896_s25 + $0x20] ss:$8 sps:$4 sm:$0xff]   ;;  %v5566_v57 = vld [vmem:[%s6896_s25 + $0x44] ss:$8 sps:$4 sm:$0xff]  }
 0x583   : > { %v3791_v34 = vmul.f32 0.01, %v3705_v33  ;;  %v3708_v6 = vadd.f32 %v5121_v52, %v3547_v23  ;;  %5147 = vmatpush3.bf16.msra.mxu0 %v6921_v25  ;;  %5263 = vmatpush3.bf16.msra.mxu1 %v6921_v25  ;;  %vm3759_vm8 = vcmp.ge.f32.partialorder %v3705_v33, 0.0  ;;  %v5568_v10 = vld [vmem:[%s6896_s25 + $0x40] ss:$8 sps:$4 sm:$0xff]  }
 0x584   : > { %v5569_v23 = vld [vmem:[%s6896_s25 + $0x54] ss:$8 sps:$4 sm:$0xff]   ;;  %v5574_v52 = vld [vmem:[%s6896_s25 + $0x60] ss:$8 sps:$4 sm:$0xff]  }
 0x585   : > { %vm3760_vm9 = vcmp.ge.f32.partialorder %v3708_v6, 0.0  ;;  %v3792_v56 = vmul.f32 0.01, %v3708_v6  ;;  %v5122_v46 = vpop.f32.mrb[148].mxu0  ;;  %v3823_v3 = vsel %vm3759_vm8, %v3705_v33, %v3791_v34  ;;  %v5572_v33 = vld [vmem:[%s6896_s25 + $0x64] ss:$8 sps:$4 sm:$0xff]  }
 0x586   : > { %v5123_v41 = vpop.f32.mrb[149].mxu0  ;;  %v5575_v34 = vld [vmem:[%s6896_s25 + $0x74] ss:$8 sps:$4 sm:$0xff]  }
 0x587   : > { %v5124_v4 = vadd.f32 %v5123_v41, %v5122_v46  ;;  %v5125_v24 = vpop.f32.mrb[150].mxu0  ;;  %v3824_v15 = vsel %vm3760_vm9, %v3708_v6, %v3792_v56  ;;  %v5577_v6 = vld [vmem:[%s6896_s25 + $0x70] ss:$8 sps:$4 sm:$0xff]   ;;  %v3882_v56 = vpop.permute.xlu1 %3881 }
 0x588   : > { %v5126_v49 = vpop.f32.mrb[151].mxu0  ;;  %v3843_v13 = vpack.c.bf16 %v3824_v15, %v3823_v3  ;;  %v7011_v41 = vpop.permute.xlu0 %3886 }
 0x589   : > { %v3713_v37 = vadd.f32 %v5124_v4, %v3552_v22  ;;  %v5127_v58 = vadd.f32 %v5126_v49, %v5125_v24 }
 0x58a   : > { %5148 = vmatprep.subr.bf16.mxu0 %v3843_v13  ;;  %5256 = vmatprep.subr.bf16.mxu1 %v3843_v13 }
 0x58b   : > { %v3793_v25 = vmul.f32 0.01, %v3713_v37  ;;  %v3716_v43 = vadd.f32 %v5127_v58, %v3555_v21  ;;  %5149 = vmatpush3.bf16.msra.mxu0 %v6929_v19  ;;  %5264 = vmatpush3.bf16.msra.mxu1 %v6929_v19  ;;  %vm3761_vm10 = vcmp.ge.f32.partialorder %v3713_v37, 0.0  ;;  %v7009_v46 = vpop.permute.xlu1 %3891 }
 0x58c   : > { %v7013_v4 = vpop.permute.xlu0 %3896 }
 0x58d   : > { %vm3762_vm11 = vcmp.ge.f32.partialorder %v3716_v43, 0.0  ;;  %v3794_v51 = vmul.f32 0.01, %v3716_v43  ;;  %v5128_v8 = vpop.f32.mrb[152].mxu0  ;;  %v3825_v16 = vsel %vm3761_vm10, %v3713_v37, %v3793_v25 }
 0x58e   : > { %v5129_v60 = vpop.f32.mrb[153].mxu0 }
 0x58f   : > { %v5130_v50 = vadd.f32 %v5129_v60, %v5128_v8  ;;  %v5131_v54 = vpop.f32.mrb[154].mxu0  ;;  %v3826_v11 = vsel %vm3762_vm11, %v3716_v43, %v3794_v51  ;;  %v3902_v22 = vpop.permute.xlu1 %3901 }
 0x590   : > { %v5132_v47 = vpop.f32.mrb[155].mxu0  ;;  %v3844_v17 = vpack.c.bf16 %v3826_v11, %v3825_v16  ;;  %v3907_v3 = vpop.permute.xlu0 %3906 }
 0x591   : > { %v3721_v0 = vadd.f32 %v5130_v50, %v3560_v55  ;;  %v5133_v44 = vadd.f32 %v5132_v47, %v5131_v54 }
 0x592   : > { %5150 = vmatprep.subr.bf16.mxu0 %v3844_v17  ;;  %5257 = vmatprep.subr.bf16.mxu1 %v3844_v17 }
 0x593   : > { %v3795_v19 = vmul.f32 0.01, %v3721_v0  ;;  %v3724_v29 = vadd.f32 %v5133_v44, %v3563_v59  ;;  %5151 = vmatpush3.bf16.msra.mxu0 %v6936_v7  ;;  %5265 = vmatpush3.bf16.msra.mxu1 %v6936_v7  ;;  %vm3763_vm12 = vcmp.ge.f32.partialorder %v3721_v0, 0.0  ;;  %v7015_v24 = vpop.permute.xlu1 %3911 }
 0x594   : > { %v7019_v49 = vpop.permute.xlu0 %3916 }
 0x595   : > { %vm3764_vm13 = vcmp.ge.f32.partialorder %v3724_v29, 0.0  ;;  %v3796_v27 = vmul.f32 0.01, %v3724_v29  ;;  %v5134_v62 = vpop.f32.mrb[156].mxu0  ;;  %v3827_v48 = vsel %vm3763_vm12, %v3721_v0, %v3795_v19 }
 0x596   : > { %v5135_v14 = vpop.f32.mrb[157].mxu0 }
 0x597   : > { %v5136_v30 = vadd.f32 %v5135_v14, %v5134_v62  ;;  %v5137_v26 = vpop.f32.mrb[158].mxu0  ;;  %v3828_v5 = vsel %vm3764_vm13, %v3724_v29, %v3796_v27  ;;  %v7017_v15 = vpop.permute.xlu1 %3921 }
 0x598   : > { %v5138_v9 = vpop.f32.mrb[159].mxu0  ;;  %v3845_v39 = vpack.c.bf16 %v3828_v5, %v3827_v48  ;;  %v7023_v21 = vpop.permute.xlu0 %3926 }
 0x599   : > { %v3729_v20 = vadd.f32 %v5136_v30, %v3568_v61  ;;  %v5139_v7 = vadd.f32 %v5138_v9, %v5137_v26 }
 0x59a   : > { %5152 = vmatprep.subr.bf16.mxu0 %v3845_v39  ;;  %5258 = vmatprep.subr.bf16.mxu1 %v3845_v39 }
 0x59b   : > { %v3797_v35 = vmul.f32 0.01, %v3729_v20  ;;  %v3732_v32 = vadd.f32 %v5139_v7, %v3571_v1  ;;  %5153 = vmatpush3.bf16.msra.mxu0 %v6942_v38  ;;  %5266 = vmatpush3.bf16.msra.mxu1 %v6942_v38  ;;  %vm3765_vm14 = vcmp.ge.f32.partialorder %v3729_v20, 0.0  ;;  %v5560_v38 = vld [vmem:[%s6896_s25 + $0x14] ss:$8 sps:$4 sm:$0xff]   ;;  %v7021_v13 = vpop.permute.xlu1 %3931 }
 0x59c   : > { %v7027_v58 = vpop.permute.xlu0 %3936 }
 0x59d   : > { %vm3766_vm15 = vcmp.ge.f32.partialorder %v3732_v32, 0.0  ;;  %v3798_v2 = vmul.f32 0.01, %v3732_v32  ;;  %v3829_v12 = vsel %vm3765_vm14, %v3729_v20, %v3797_v35 }
 0x59f   : > { %v3830_v36 = vsel %vm3766_vm15, %v3732_v32, %v3798_v2  ;;  %v7025_v37 = vpop.permute.xlu1 %3941 }
 0x5a0   : > { %v3846_v18 = vpack.c.bf16 %v3830_v36, %v3829_v12  ;;  %v7031_v43 = vpop.permute.xlu0 %3946 }
 0x5a1   : > { %7296 = vst [vmem:[#allocation26_spill] sm:$0xff] %v7031_v43 }
 0x5a2   : > { %5154 = vmatprep.subr.bf16.mxu0 %v3846_v18  ;;  %5259 = vmatprep.subr.bf16.mxu1 %v3846_v18 }
 0x5a3   : > { %5155 = vmatpush3.bf16.msra.mxu0 %v6947_v31  ;;  %5267 = vmatpush3.bf16.msra.mxu1 %v6947_v31  ;;  %v5571_v31 = vld [vmem:[%s6896_s25 + $0x50] ss:$8 sps:$4 sm:$0xff]   ;;  %v7029_v25 = vpop.permute.xlu1 %3951 }
 0x5a4   : > { %7295 = vst [vmem:[#allocation5_spill] sm:$0xff] %v7029_v25  ;;  %v7033_v8 = vpop.permute.xlu0 %3956 }
 0x5a5   : > { %7297 = vst [vmem:[#allocation7_spill] sm:$0xff] %v7033_v8 }
 0x5a6   : > { %4072 = vmatmul.mubr.bf16.vlgmr.msra.gmra.mrb[160].mxu0 %v5554_v53  ;;  %4088 = vmatmul.mubr.bf16.vlgmr.msra.gmra.mrb[128].mxu1 %v5557_v45 }
 0x5a7   : > { %4079 = vmatprep.mubr.bf16.mxu0 %v5560_v38  ;;  %4095 = vmatprep.mubr.bf16.mxu1 %v5562_v28  ;;  %v4203_v51 = vpop.permute.xlu1 %4202 }
 0x5a8   : > { %v7037_v55 = vpop.permute.xlu0 %4207 }
 0x5ab   : > { %v7035_v60 = vpop.permute.xlu1 %4212 }
 0x5ac   : > { %v7041_v54 = vpop.permute.xlu0 %4217 }
 0x5ae   : > { %4080 = vmatmul.mubr.bf16.gmra.mrb[164].mxu0 %v5564_v63  ;;  %4096 = vmatmul.mubr.bf16.gmra.mrb[132].mxu1 %v5565_v42 }
 0x5af   : > { %4103 = vmatprep.mubr.bf16.mxu1 %v5566_v57  ;;  %v7039_v50 = vpop.permute.xlu1 %4222 }
 0x5b0   : > { %v7045_v11 = vpop.permute.xlu0 %4227 }
 0x5b3   : > { %v7043_v16 = vpop.permute.xlu1 %4232 }
 0x5b4   : > { %v7049_v17 = vpop.permute.xlu0 %4237 }
 0x5b6   : > { %4104 = vmatmul.mubr.bf16.gmra.mrb[136].mxu1 %v5568_v10 }
 0x5b7   : > { %4111 = vmatprep.mubr.bf16.mxu1 %v5569_v23  ;;  %v7047_v47 = vpop.permute.xlu1 %4242 }
 0x5b8   : > { %v7053_v0 = vpop.permute.xlu0 %4247 }
 0x5bb   : > { %v7051_v59 = vpop.permute.xlu1 %4252 }
 0x5bc   : > { %v7057_v19 = vpop.permute.xlu0 %4257 }
 0x5bd   : > { %7299 = vst [vmem:[#allocation9_spill] sm:$0xff] %v7057_v19 }
 0x5be   : > { %4112 = vmatmul.mubr.bf16.gmra.mrb[140].mxu1 %v5571_v31 }
 0x5bf   : > { %4119 = vmatprep.mubr.bf16.mxu1 %v5572_v33  ;;  %v7055_v44 = vpop.permute.xlu1 %4262 }
 0x5c0   : > { %7298 = vst [vmem:[#allocation30_spill] sm:$0xff] %v7055_v44  ;;  %v7061_v62 = vpop.permute.xlu0 %4267 }
 0x5c1   : > { %7301 = vst [vmem:[#allocation11_spill] sm:$0xff] %v7061_v62 }
 0x5c3   : > { %v7059_v29 = vpop.permute.xlu1 %4272 }
 0x5c4   : > { %7300 = vst [vmem:[#allocation34_spill] sm:$0xff] %v7059_v29  ;;  %v7065_v61 = vpop.permute.xlu0 %4277 }
 0x5c5   : > { %7302 = vst [vmem:[#allocation38_spill] sm:$0xff] %v7065_v61 }
 0x5c6   : > { %4120 = vmatmul.mubr.bf16.gmra.mrb[144].mxu1 %v5574_v52 }
 0x5c7   : > { %4127 = vmatprep.mubr.bf16.mxu1 %v5575_v34  ;;  %v4319_v27 = vpop.permute.xlu1 %4318 }
 0x5c8   : > { %v4323_v30 = vpop.permute.xlu0 %4322 }
 0x5cb   : > { %v7063_v14 = vpop.permute.xlu1 %4326 }
 0x5cc   : > { %v7069_v48 = vpop.permute.xlu0 %4334 }
 0x5ce   : > { %4128 = vmatmul.mubr.bf16.gmra.mrb[148].mxu1 %v5577_v6 }
 0x5cf   : > { %v7067_v26 = vpop.permute.xlu1 %4330 }
 0x5d0   : > { %v4424_v9 = vpop.permute.xlu0 %4423 }
 0x5d3   : > { %v4420_v5 = vpop.permute.xlu1 %4419 }
 0x5d4   : > { %v7073_v40 = vpop.permute.xlu0 %4435 }
 0x5d7   : > { %v7071_v39 = vpop.permute.xlu1 %4427 }
 0x5d8   : > { %v7077_v20 = vpop.permute.xlu0 %4439 }
 0x5db   : > { %v7075_v1 = vpop.permute.xlu1 %4431 }
 0x5dc   : > { %v7081_v35 = vpop.permute.xlu0 %4443 }
 0x5df   : > { %v7079_v7 = vpop.permute.xlu1 %4338 }
 0x5e0   : > { %v7085_v2 = vpop.permute.xlu0 %4447 }
 0x5e3   : > { %v7083_v32 = vpop.permute.xlu1 %4342 }
 0x5e4   : > { %v7090_v8 = vpop.permute.xlu0 %4451 }
 0x5e7   : > { %v7087_v12 = vpop.permute.xlu1 %4346 }
 0x5eb   : > { %v7092_v62 = vpop.permute.xlu1 %4350 }
 0x679   : > { %v5156_v36 = vpop.f32.mrb[160].mxu0  ;;  %v5168_v18 = vpop.f32.mrb[128].mxu1 }
 0x67a   : > { %v5157_v53 = vpop.f32.mrb[161].mxu0  ;;  %v5169_v45 = vpop.f32.mrb[129].mxu1 }
 0x67b   : > { %v5158_v38 = vadd.f32 %v5157_v53, %v5156_v36  ;;  %v5170_v28 = vadd.f32 %v5169_v45, %v5168_v18  ;;  %v5159_v63 = vpop.f32.mrb[162].mxu0  ;;  %v5171_v42 = vpop.f32.mrb[130].mxu1 }
 0x67c   : > { %v5160_v57 = vpop.f32.mrb[163].mxu0  ;;  %v5172_v10 = vpop.f32.mrb[131].mxu1 }
 0x67d   : > { %v4074_v23 = vadd.f32 %v5158_v38, %v3882_v56  ;;  %v4090_v31 = vadd.f32 %v5170_v28, %v3902_v22  ;;  %v5161_v33 = vadd.f32 %v5160_v57, %v5159_v63  ;;  %v5173_v52 = vadd.f32 %v5172_v10, %v5171_v42 }
 0x67f   : > { %vm4136_vm0 = vcmp.ge.f32.partialorder %v4074_v23, 0.0  ;;  %v4152_v34 = vmul.f32 0.01, %v4074_v23  ;;  %v4156_v6 = vmul.f32 0.01, %v4090_v31  ;;  %v4077_v61 = vadd.f32 %v5161_v33, %v7011_v41 }
 0x680   : > { %v4093_v29 = vadd.f32 %v5173_v52, %v3907_v3  ;;  %vm4140_vm1 = vcmp.ge.f32.partialorder %v4090_v31, 0.0 }
 0x681   : > { %v4168_v36 = vsel %vm4136_vm0, %v4074_v23, %v4152_v34  ;;  %vm4137_vm2 = vcmp.ge.f32.partialorder %v4077_v61, 0.0  ;;  %v4153_v18 = vmul.f32 0.01, %v4077_v61  ;;  %v4172_v53 = vsel %vm4140_vm1, %v4090_v31, %v4156_v6  ;;  %v5162_v45 = vpop.f32.mrb[164].mxu0  ;;  %v5174_v56 = vpop.f32.mrb[132].mxu1 }
 0x682   : > { %v4280_v22 = vmul.f32 %v4203_v51, %v4168_v36  ;;  %v5163_v38 = vpop.f32.mrb[165].mxu0  ;;  %v5175_v28 = vpop.f32.mrb[133].mxu1  ;;  %v4381_v63 = vmul.f32 %v4319_v27, %v4168_v36  ;;  %v4482_v42 = vmul.f32 %v4420_v5, %v4168_v36  ;;  %v7095_v41 = vmul.f32 %v7039_v50, %v4172_v53 }
 0x683   : > { %v4169_v57 = vsel %vm4137_vm2, %v4077_v61, %v4153_v18  ;;  %v5165_v3 = vpop.f32.mrb[166].mxu0  ;;  %v5177_v10 = vpop.f32.mrb[134].mxu1  ;;  %v5164_v34 = vadd.f32 %v5163_v38, %v5162_v45  ;;  %v4157_v6 = vmul.f32 0.01, %v4093_v29  ;;  %v5176_v44 = vadd.f32 %v5175_v28, %v5174_v56 }
 0x684   : > { %v4281_v33 = vmul.f32 %v7037_v55, %v4169_v57  ;;  %v4382_v52 = vmul.f32 %v4323_v30, %v4169_v57  ;;  %v4483_v23 = vmul.f32 %v4424_v9, %v4169_v57  ;;  %v5166_v25 = vpop.f32.mrb[167].mxu0  ;;  %v5178_v31 = vpop.f32.mrb[135].mxu1  ;;  %vm4141_vm3 = vcmp.ge.f32.partialorder %v4093_v29, 0.0 }
 0x685   : > { %v5167_v51 = vadd.f32 %v5166_v25, %v5165_v3  ;;  %v5179_v43 = vadd.f32 %v5178_v31, %v5177_v10  ;;  %v4082_v61 = vadd.f32 %v5164_v34, %v7009_v46  ;;  %v4098_v50 = vadd.f32 %v5176_v44, %v7015_v24  ;;  %v7102_v30 = vpop.permute.xlu0 %4455  ;;  %v7104_v18 = vpop.permute.xlu1 %4354 }
 0x686   : > { %v4296_v19 = vadd.f32 %v4281_v33, %v4280_v22  ;;  %v4397_v27 = vadd.f32 %v4382_v52, %v4381_v63  ;;  %v4498_v5 = vadd.f32 %v4483_v23, %v4482_v42  ;;  %v4385_v25 = vmul.f32 %v7069_v48, %v4172_v53 }
 0x687   : > { %v4085_v36 = vadd.f32 %v5167_v51, %v7013_v4  ;;  %v4101_v55 = vadd.f32 %v5179_v43, %v7019_v49  ;;  %vm4138_vm4 = vcmp.ge.f32.partialorder %v4082_v61, 0.0  ;;  %v4154_v9 = vmul.f32 0.01, %v4082_v61 }
 0x688   : > { %v4158_v45 = vmul.f32 0.01, %v4098_v50  ;;  %v4173_v38 = vsel %vm4141_vm3, %v4093_v29, %v4157_v6  ;;  %vm4142_vm6 = vcmp.ge.f32.partialorder %v4098_v50, 0.0  ;;  %vm4519_vm0 = vcmask 1040384  }
 0x689   : > { %vm4139_vm5 = vcmp.ge.f32.partialorder %v4085_v36, 0.0  ;;  %v4155_v56 = vmul.f32 0.01, %v4085_v36  ;;  %v5180_v22 = vpop.f32.mrb[136].mxu1  ;;  %v4170_v46 = vsel %vm4138_vm4, %v4082_v61, %v4154_v9  ;;  %v4159_v24 = vmul.f32 0.01, %v4101_v55 }
 0x68a   : > { %v5181_v44 = vpop.f32.mrb[137].mxu1  ;;  %v4282_v4 = vmul.f32 %v7035_v60, %v4170_v46  ;;  %v4383_v49 = vmul.f32 %v7063_v14, %v4170_v46  ;;  %v4484_v43 = vmul.f32 %v7071_v39, %v4170_v46  ;;  %v4174_v3 = vsel %vm4142_vm6, %v4098_v50, %v4158_v45  ;;  %v7114_v60 = vpop.permute.xlu0 %4459 }
 0x68b   : > { %v4171_v28 = vsel %vm4139_vm5, %v4085_v36, %v4155_v56  ;;  %v5183_v63 = vpop.f32.mrb[138].mxu1  ;;  %v4286_v33 = vmul.f32 %v7043_v16, %v4174_v3  ;;  %vm4143_vm7 = vcmp.ge.f32.partialorder %v4101_v55, 0.0  ;;  %v4486_v14 = vmul.f32 %v7073_v40, %v4172_v53 }
 0x68c   : > { %v4283_v42 = vmul.f32 %v7041_v54, %v4171_v28  ;;  %v4384_v48 = vmul.f32 %v7067_v26, %v4171_v28  ;;  %v4485_v57 = vmul.f32 %v7075_v1, %v4171_v28  ;;  %v5184_v10 = vpop.f32.mrb[139].mxu1  ;;  %v4297_v29 = vadd.f32 %v4296_v19, %v4282_v4  ;;  %v7118_v54 = vpop.permute.xlu1 %4358 }
 0x68d   : > { %v4499_v52 = vadd.f32 %v4498_v5, %v4484_v43  ;;  %v4285_v39 = vmul.f32 %v7045_v11, %v4173_v38  ;;  %v4398_v23 = vadd.f32 %v4397_v27, %v4383_v49  ;;  %v5182_v34 = vadd.f32 %v5181_v44, %v5180_v22 }
 0x68e   : > { %v4487_v26 = vmul.f32 %v7077_v20, %v4173_v38  ;;  %v4386_v1 = vmul.f32 %v7079_v7, %v4173_v38  ;;  %v4298_v31 = vadd.f32 %v4297_v29, %v4283_v42  ;;  %v4175_v51 = vsel %vm4143_vm7, %v4101_v55, %v4159_v24  ;;  %v4464_v22 = vpop.permute.xlu0 %4463 }
 0x68f   : > { %v4500_v19 = vadd.f32 %v4499_v52, %v4485_v57  ;;  %v4399_v6 = vadd.f32 %v4398_v23, %v4384_v48  ;;  %v4106_v16 = vadd.f32 %v5182_v34, %v7017_v15  ;;  %v5185_v5 = vadd.f32 %v5184_v10, %v5183_v63 }
 0x690   : > { %v4299_v61 = vadd.f32 %v4298_v31, %v7095_v41  ;;  %v4488_v40 = vmul.f32 %v7081_v35, %v4174_v3  ;;  %v4387_v53 = vmul.f32 %v7083_v32, %v4174_v3  ;;  %v4287_v15 = vmul.f32 %v7049_v17, %v4175_v51  ;;  %v4363_v32 = vpop.permute.xlu1 %4362 }
 0x691   : > { %v4501_v11 = vadd.f32 %v4500_v19, %v4486_v14  ;;  %v5186_v27 = vpop.f32.mrb[140].mxu1  ;;  %v4400_v50 = vadd.f32 %v4399_v6, %v4385_v25  ;;  %v4160_v36 = vmul.f32 0.01, %v4106_v16  ;;  %v4109_v20 = vadd.f32 %v5185_v5, %v7023_v21 }
 0x692   : > { %vm4144_vm8 = vcmp.ge.f32.partialorder %v4106_v16, 0.0  ;;  %v5187_v7 = vpop.f32.mrb[141].mxu1  ;;  %v4300_v9 = vadd.f32 %v4299_v61, %v4285_v39  ;;  %v4489_v44 = vmul.f32 %v7085_v2, %v4175_v51  ;;  %v4388_v49 = vmul.f32 %v7087_v12, %v4175_v51  ;;  %v4468_v52 = vpop.permute.xlu0 %4467 }
 0x693   : > { %v4502_v45 = vadd.f32 %v4501_v11, %v4487_v26  ;;  %v5188_v55 = vadd.f32 %v5187_v7, %v5186_v27  ;;  %v5189_v56 = vpop.f32.mrb[142].mxu1  ;;  %v4401_v41 = vadd.f32 %v4400_v50, %v4386_v1  ;;  %v4161_v46 = vmul.f32 0.01, %v4109_v20 }
 0x694   : > { %v4176_v35 = vsel %vm4144_vm8, %v4106_v16, %v4160_v36  ;;  %vm4145_vm9 = vcmp.ge.f32.partialorder %v4109_v20, 0.0  ;;  %v5190_v38 = vpop.f32.mrb[143].mxu1  ;;  %v4301_v24 = vadd.f32 %v4300_v9, %v4286_v33  ;;  %vm4521_vm1 = vcmask 1041408  }
 0x695   : > { %v4503_v25 = vadd.f32 %v4502_v45, %v4488_v40  ;;  %v4288_v21 = vmul.f32 %v7047_v47, %v4176_v35  ;;  %v4402_v4 = vadd.f32 %v4401_v41, %v4387_v53  ;;  %v4114_v17 = vadd.f32 %v5188_v55, %v7021_v13  ;;  %v7303_v53 = vld [vmem:[#allocation9_spill] sm:$0xff] }
 0x696   : > { %v4177_v43 = vsel %vm4145_vm9, %v4109_v20, %v4161_v46  ;;  %v4302_v28 = vadd.f32 %v4301_v24, %v4287_v15  ;;  %v4490_v42 = vmul.f32 %v7090_v8, %v4176_v35  ;;  %v4389_v48 = vmul.f32 %v7092_v62, %v4176_v35  ;;  %v4367_v62 = vpop.permute.xlu1 %4366  ;;  %v4472_v7 = vpop.permute.xlu0 %4471 }
 0x697   : > { %v4504_v63 = vadd.f32 %v4503_v25, %v4489_v44  ;;  %v4403_v57 = vadd.f32 %v4402_v4, %v4388_v49  ;;  %v4162_v3 = vmul.f32 0.01, %v4114_v17  ;;  %v4289_v10 = vmul.f32 %v7053_v0, %v4177_v43 }
 0x698   : > { %v5191_v29 = vadd.f32 %v5190_v38, %v5189_v56  ;;  %v4303_v2 = vadd.f32 %v4302_v28, %v4288_v21  ;;  %v4491_v47 = vmul.f32 %v7102_v30, %v4177_v43  ;;  %vm4146_vm10 = vcmp.ge.f32.partialorder %v4114_v17, 0.0  ;;  %v7307_v28 = vld [vmem:[#allocation11_spill] sm:$0xff] }
 0x699   : > { %v4505_v33 = vadd.f32 %v4504_v63, %v4490_v42  ;;  %v5192_v12 = vpop.f32.mrb[144].mxu1  ;;  %v4404_v13 = vadd.f32 %v4403_v57, %v4389_v48  ;;  %v4390_v14 = vmul.f32 %v7104_v18, %v4177_v43  ;;  %v4178_v8 = vsel %vm4146_vm10, %v4114_v17, %v4162_v3  ;;  %v7306_v17 = vld [vmem:[#allocation5_spill] sm:$0xff] }
 0x69a   : > { %v4117_v39 = vadd.f32 %v5191_v29, %v7027_v58  ;;  %v5193_v23 = vpop.f32.mrb[145].mxu1  ;;  %v4304_v34 = vadd.f32 %v4303_v2, %v4289_v10  ;;  %v4290_v0 = vmul.f32 %v7051_v59, %v4178_v8  ;;  %v4492_v1 = vmul.f32 %v7114_v60, %v4178_v8  ;;  %v7304_v60 = vld [vmem:[#allocation26_spill] sm:$0xff]  ;;  %v4476_v3 = vpop.permute.xlu0 %4475 }
 0x69b   : > { %v4506_v26 = vadd.f32 %v4505_v33, %v4491_v47  ;;  %v5195_v31 = vpop.f32.mrb[146].mxu1  ;;  %v4405_v19 = vadd.f32 %v4404_v13, %v4390_v14  ;;  %v4391_v6 = vmul.f32 %v7118_v54, %v4178_v8  ;;  %v5194_v16 = vadd.f32 %v5193_v23, %v5192_v12  ;;  %v4371_v54 = vpop.permute.xlu1 %4370  ;;  %v7308_v12 = vld [vmem:[#allocation7_spill] sm:$0xff] }
 0x69c   : > { %v4163_v30 = vmul.f32 0.01, %v4117_v39  ;;  %v5196_v51 = vpop.f32.mrb[147].mxu1  ;;  %v4305_v5 = vadd.f32 %v4304_v34, %v4290_v0  ;;  %vm4147_vm11 = vcmp.ge.f32.partialorder %v4117_v39, 0.0 }
 0x69d   : > { %v4507_v18 = vadd.f32 %v4506_v26, %v4492_v1  ;;  %v5197_v58 = vadd.f32 %v5196_v51, %v5195_v31  ;;  %v4406_v61 = vadd.f32 %v4405_v19, %v4391_v6  ;;  %v4122_v40 = vadd.f32 %v5194_v16, %v7025_v37  ;;  %v7305_v37 = vld [vmem:[#allocation30_spill] sm:$0xff] }
 0x69e   : > { %v4179_v11 = vsel %vm4147_vm11, %v4117_v39, %v4163_v30  ;;  %v7309_v39 = vld [vmem:[#allocation34_spill] sm:$0xff]  ;;  %v4480_v1 = vpop.permute.xlu0 %4479 }
 0x69f   : > { %v4291_v27 = vmul.f32 %v7303_v53, %v4179_v11  ;;  %v4493_v59 = vmul.f32 %v4464_v22, %v4179_v11  ;;  %v4392_v50 = vmul.f32 %v4363_v32, %v4179_v11  ;;  %v4125_v36 = vadd.f32 %v5197_v58, %v7304_v60  ;;  %v4375_v10 = vpop.permute.xlu1 %4374  ;;  %v7310_v30 = vld [vmem:[#allocation38_spill] sm:$0xff] }
 0x6a0   : > { %v4164_v20 = vmul.f32 0.01, %v4122_v40  ;;  %vm4148_vm12 = vcmp.ge.f32.partialorder %v4122_v40, 0.0 }
 0x6a1   : > { %v4306_v9 = vadd.f32 %v4305_v5, %v4291_v27  ;;  %v4508_v45 = vadd.f32 %v4507_v18, %v4493_v59  ;;  %v4407_v15 = vadd.f32 %v4406_v61, %v4392_v50  ;;  %v4165_v55 = vmul.f32 0.01, %v4125_v36  ;;  %v5198_v56 = vpop.f32.mrb[148].mxu1 }
 0x6a2   : > { %v4180_v41 = vsel %vm4148_vm12, %v4122_v40, %v4164_v20  ;;  %v5199_v46 = vpop.f32.mrb[149].mxu1  ;;  %vm4149_vm13 = vcmp.ge.f32.partialorder %v4125_v36, 0.0 }
 0x6a3   : > { %v4292_v35 = vmul.f32 %v7305_v37, %v4180_v41  ;;  %v4494_v38 = vmul.f32 %v4468_v52, %v4180_v41  ;;  %v4393_v24 = vmul.f32 %v4367_v62, %v4180_v41  ;;  %v5200_v22 = vadd.f32 %v5199_v46, %v5198_v56  ;;  %v5201_v32 = vpop.f32.mrb[150].mxu1  ;;  %v4379_v19 = vpop.permute.xlu1 %4378 }
 0x6a4   : > { %v4181_v25 = vsel %vm4149_vm13, %v4125_v36, %v4165_v55  ;;  %v5202_v44 = vpop.f32.mrb[151].mxu1 }
 0x6a5   : > { %v4307_v21 = vadd.f32 %v4306_v9, %v4292_v35  ;;  %v4509_v4 = vadd.f32 %v4508_v45, %v4494_v38  ;;  %v4408_v49 = vadd.f32 %v4407_v15, %v4393_v24  ;;  %v4130_v43 = vadd.f32 %v5200_v22, %v7306_v17  ;;  %v5578_v24 = vld [vmem:[%s5864_s21] sm:$0x7] }
 0x6a6   : > { %v4293_v63 = vmul.f32 %v7307_v28, %v4181_v25  ;;  %v4495_v42 = vmul.f32 %v4472_v7, %v4181_v25  ;;  %v4394_v48 = vmul.f32 %v4371_v54, %v4181_v25  ;;  %v5203_v57 = vadd.f32 %v5202_v44, %v5201_v32 }
 0x6a7   : > { %v4166_v29 = vmul.f32 0.01, %v4130_v43  ;;  %vm4150_vm14 = vcmp.ge.f32.partialorder %v4130_v43, 0.0  ;;  %v4527_v46 = vpop.permute.xlu1 %4526 }
 0x6a8   : > { %v4308_v2 = vadd.f32 %v4307_v21, %v4293_v63  ;;  %v4510_v33 = vadd.f32 %v4509_v4, %v4495_v42  ;;  %v4409_v47 = vadd.f32 %v4408_v49, %v4394_v48  ;;  %v4133_v52 = vadd.f32 %v5203_v57, %v7308_v12 }
 0x6a9   : > { %v4182_v13 = vsel %vm4150_vm14, %v4130_v43, %v4166_v29 }
 0x6aa   : > { %v4167_v14 = vmul.f32 0.01, %v4133_v52  ;;  %v4294_v8 = vmul.f32 %v7309_v39, %v4182_v13  ;;  %v4496_v23 = vmul.f32 %v4476_v3, %v4182_v13  ;;  %v4395_v62 = vmul.f32 %v4375_v10, %v4182_v13 }
 0x6ab   : > { %vm4151_vm15 = vcmp.ge.f32.partialorder %v4133_v52, 0.0 }
 0x6ac   : > { %v4309_v34 = vadd.f32 %v4308_v2, %v4294_v8  ;;  %v4511_v26 = vadd.f32 %v4510_v33, %v4496_v23  ;;  %v4410_v0 = vadd.f32 %v4409_v47, %v4395_v62  ;;  %v4183_v31 = vsel %vm4151_vm15, %v4133_v52, %v4167_v14 }
 0x6ad   : > { %v4295_v6 = vmul.f32 %v7310_v30, %v4183_v31  ;;  %v4497_v16 = vmul.f32 %v4480_v1, %v4183_v31  ;;  %v4396_v51 = vmul.f32 %v4379_v19, %v4183_v31 }
 0x6af   : > { %v4310_v5 = vadd.f32 %v4309_v34, %v4295_v6  ;;  %v4512_v18 = vadd.f32 %v4511_v26, %v4497_v16  ;;  %v4411_v58 = vadd.f32 %v4410_v0, %v4396_v51 }
 0x6b1   : > { %v4311_v61 = vrot.slane %v4310_v5, 4  ;;  %v4513_v40 = vrot.slane %v4512_v18, 4  ;;  %v4412_v11 = vrot.slane %v4411_v58, 4 }
 0x6b3   : > { %v4312_v53 = vadd.f32 %v4311_v61, %v4310_v5  ;;  %v4514_v27 = vadd.f32 %v4513_v40, %v4512_v18  ;;  %v4413_v59 = vadd.f32 %v4412_v11, %v4411_v58 }
 0x6b5   : > { %v4313_v50 = vrot.slane %v4312_v53, 2  ;;  %v4515_v60 = vrot.slane %v4514_v27, 2  ;;  %v4414_v36 = vrot.slane %v4413_v59, 2 }
 0x6b7   : > { %v4516_v20 = vadd.f32 %v4515_v60, %v4514_v27  ;;  %v4415_v7 = vadd.f32 %v4414_v36, %v4413_v59  ;;  %v4314_v54 = vadd.f32 %v4313_v50, %v4312_v53 }
 0x6b9   : > { %v4416_v9 = vrot.slane %v4415_v7, 1  ;;  %v4315_v45 = vrot.slane %v4314_v54, 1  ;;  %v4517_v15 = vrot.slane %v4516_v20, 1 }
 0x6bb   : > { %v4316_v55 = vadd.f32 %v4315_v45, %v4314_v54  ;;  %v4417_v56 = vadd.f32 %v4416_v9, %v4415_v7  ;;  %v4518_v41 = vadd.f32 %v4517_v15, %v4516_v20 }
 0x6bd   : > { %v4520_v37 = vsel %vm4519_vm0, %v4316_v55, %v4417_v56 }
 0x6be   : > { %v4522_v35 = vsel %vm4521_vm1, %v4520_v37, %v4518_v41 }
 0x6bf   : > { %v4529_v38 = vadd.f32 %v4527_v46, %v4522_v35 }
 0x6c1   : > { %v4530_v22 = vadd.f32 %v5578_v24, %v4529_v38 }
 0x6c3   : > { %4531 = vst [vmem:[%s476_s13] sm:$0x7] %v4530_v22 }
 0x6c4 PF: > { %s18_s9 = sadd.s32 1, %s5617_s9   ;;  %s7311_s27 = smov %s5609_s29 }
 0x6c5   : > { %p15_p7 = scmp.ge.s32.totalorder %s18_s9, 18   ;;  %s7312_s28 = smov %s5613_s30 }
 0x6c6   : > { %s7313_s29 = smov %s7316_s10  ;;  %s7314_s30 = smov %s7320_s11 }
 0x6c7   :  { %17 = sbr.rel (!%p15_p7) target bundleno = 3 (0x3), region = 103 }

</bundles_post_ra>
